<compile_context>
chip_gen: v7x
topology: tpu7x:2x2x1
jax: 0.10.0
libtpu: 0.0.40
codegen_flags: <defaults>
</compile_context>

<pallas_src>
import math
import functools

import jax
import jax.numpy as jnp
from jax.experimental import pallas as pl
from jax.experimental.pallas import tpu as pltpu

# ----------------------------- model config --------------------------------
D_MODEL = 32
N_HEADS = 4
D_HEAD = D_MODEL // N_HEADS
D_FF = 64
N_LAYERS = 2
VOCAB = 16
LN_EPS = 1e-6


# ----------------------------- fused kernel --------------------------------


def _transformer_kernel(x_src_ref, x_tgt_ref, m_enc_ref, m_dec_ref, m_cross_ref,
                        *rest, treedef, nl):
    """One grid step == one batch element.  Everything stays in VMEM.

    x_src_ref: (Ls, D)   embedded source rows for this batch element
    x_tgt_ref: (Lt, D)   embedded target rows
    m_*_ref  : (1, Lq, Lk) float masks (1.0 = keep, 0.0 = masked)
    rest     : flattened stacked weight refs (same treedef as wrapper) + out ref
    """
    *param_refs, o_ref = rest
    p = jax.tree_util.tree_unflatten(treedef, list(param_refs))

    # ---------- in-kernel building blocks (all 2-D, lane-dim = D/3D/FF) ------
    def layer_norm(x, g, b):
        mean = jnp.mean(x, axis=-1, keepdims=True)
        var = jnp.mean((x - mean) ** 2, axis=-1, keepdims=True)
        return (x - mean) * jax.lax.rsqrt(var + LN_EPS) * g + b

    def mha(xq, xkv, mask, wqkv, bqkv, wo, bo):
        # Fused QKV projection: one (D, 3D) matmul for self-attn operands.
        q = jnp.dot(xq, wqkv[:, :D_MODEL],
                    preferred_element_type=jnp.float32) + bqkv[:, :D_MODEL]
        kv = jnp.dot(xkv, wqkv[:, D_MODEL:],
                     preferred_element_type=jnp.float32) + bqkv[:, D_MODEL:]
        k = kv[:, :D_MODEL]
        v = kv[:, D_MODEL:]

        scale = 1.0 / math.sqrt(D_HEAD)
        acc = jnp.zeros((xq.shape[0], D_MODEL), jnp.float32)
        for h in range(N_HEADS):                      # static unroll, H = 4
            sl = slice(h * D_HEAD, (h + 1) * D_HEAD)
            qh, kh, vh = q[:, sl], k[:, sl], v[:, sl]          # (L, Dh)
            s = jax.lax.dot_general(                           # q @ k^T
                qh, kh, (((1,), (1,)), ((), ())),
                preferred_element_type=jnp.float32) * scale     # (Lq, Lk)
            s = jnp.where(mask == 0.0, -1e9, s)                 # masked_fill
            s = s - jnp.max(s, axis=-1, keepdims=True)
            e = jnp.exp(s)
            pr = e * pl.reciprocal(jnp.sum(e, axis=-1, keepdims=True),
                                   approx=True)
            oh = jnp.dot(pr, vh, preferred_element_type=jnp.float32)  # (Lq, Dh)
            # Fold concat-over-heads into the output projection:
            acc = acc + jnp.dot(oh, wo[sl, :],
                                preferred_element_type=jnp.float32)
        return acc + bo

    def ffn(x, w1, b1, w2, b2):
        h = jnp.maximum(
            jnp.dot(x, w1, preferred_element_type=jnp.float32) + b1, 0.0)
        return jnp.dot(h, w2, preferred_element_type=jnp.float32) + b2

    enc = p["enc"]
    dec = p["dec"]

    # ------------------------------ encoder ---------------------------------
    x = x_src_ref[...]                    # (Ls, D)
    m_enc = m_enc_ref[0]                  # (Ls, Ls)
    for li in range(nl):
        h1 = layer_norm(x, enc["ln1_g"][li], enc["ln1_b"][li])
        x = x + mha(h1, h1, m_enc, enc["wqkv"][li], enc["bqkv"][li],
                    enc["wo"][li], enc["bo"][li])
        h2 = layer_norm(x, enc["ln2_g"][li], enc["ln2_b"][li])
        x = x + ffn(h2, enc["w1"][li], enc["b1"][li],
                    enc["w2"][li], enc["b2"][li])
    memory = layer_norm(x, enc["ln_f_g"][...], enc["ln_f_b"][...])

    # ------------------------------ decoder ---------------------------------
    y = x_tgt_ref[...]                    # (Lt, D)
    m_self = m_dec_ref[0]                 # (Lt, Lt)
    m_cross = m_cross_ref[0]              # (Lt, Ls)
    for li in range(nl):
        h1 = layer_norm(y, dec["ln1_g"][li], dec["ln1_b"][li])
        y = y + mha(h1, h1, m_self, dec["sa_wqkv"][li], dec["sa_bqkv"][li],
                    dec["sa_wo"][li], dec["sa_bo"][li])
        h2 = layer_norm(y, dec["ln2_g"][li], dec["ln2_b"][li])
        y = y + mha(h2, memory, m_cross, dec["ca_wqkv"][li], dec["ca_bqkv"][li],
                    dec["ca_wo"][li], dec["ca_bo"][li])
        h3 = layer_norm(y, dec["ln3_g"][li], dec["ln3_b"][li])
        y = y + ffn(h3, dec["w1"][li], dec["b1"][li],
                    dec["w2"][li], dec["b2"][li])
    y = layer_norm(y, dec["ln_f_g"][...], dec["ln_f_b"][...])

    o_ref[...] = y


# ----------------------------- wrapper / glue --------------------------------


def embed(emb_table, tokens, pe):
    # tokens: (B, L) int32 -> (B*L, D)   lut(x) * sqrt(d_model) + PE
    # (Embedding gather + PE add are plain-JAX glue; dropout is identity.)
    B, L = tokens.shape
    x = jnp.take(emb_table, tokens, axis=0) * math.sqrt(D_MODEL)
    x = x + pe[None, :L, :]
    # TODO(synk): dropout after positional encoding skipped (inference mode).
    return x.reshape(B * L, D_MODEL).astype(jnp.float32)


def transformer_forward(params, src, tgt, src_mask, tgt_mask):
    B, Ls = src.shape
    Lt = tgt.shape[1]

    x_src = embed(params["src_emb"], src, params["pe"])        # (B*Ls, D)
    x_tgt = embed(params["tgt_emb"], tgt, params["pe"])        # (B*Lt, D)

    # Compact masks: one (Lq, Lk) slab per batch element, no head replication.
    m_enc = jnp.broadcast_to(src_mask.astype(jnp.float32), (B, Ls, Ls))
    m_dec = jnp.broadcast_to(tgt_mask.astype(jnp.float32), (B, Lt, Lt))
    m_cross = jnp.broadcast_to(src_mask.astype(jnp.float32), (B, Lt, Ls))

    leaves, treedef = jax.tree_util.tree_flatten(params["kernel"])

    kernel = functools.partial(_transformer_kernel, treedef=treedef, nl=N_LAYERS)

    def full_spec(a):
        nd = a.ndim
        return pl.BlockSpec(a.shape, lambda b, _nd=nd: (0,) * _nd)

    in_specs = [
        pl.BlockSpec((Ls, D_MODEL), lambda b: (b, 0)),      # x_src rows of batch b
        pl.BlockSpec((Lt, D_MODEL), lambda b: (b, 0)),      # x_tgt rows of batch b
        pl.BlockSpec((1, Ls, Ls), lambda b: (b, 0, 0)),     # encoder self mask
        pl.BlockSpec((1, Lt, Lt), lambda b: (b, 0, 0)),     # decoder self mask
        pl.BlockSpec((1, Lt, Ls), lambda b: (b, 0, 0)),     # decoder cross mask
    ] + [full_spec(a) for a in leaves]                      # weights, broadcast

    out = pl.pallas_call(
        kernel,
        out_shape=jax.ShapeDtypeStruct((B * Lt, D_MODEL), jnp.float32),
        grid=(B,),                                          # parallel over batch
        in_specs=in_specs,
        out_specs=pl.BlockSpec((Lt, D_MODEL), lambda b: (b, 0)),
        compiler_params=pltpu.CompilerParams(
            dimension_semantics=("parallel",),              # megacore on v7x
            vmem_limit_bytes=32 * 1024 * 1024,
        ),
    )(x_src, x_tgt, m_enc, m_dec, m_cross, *leaves)

    return out.reshape(B, Lt, D_MODEL)


# ----------------------------- parameter init --------------------------------


def _sinusoidal_pe(max_len, d_model):
    pos = jnp.arange(max_len, dtype=jnp.float32)[:, None]
    i = jnp.arange(0, d_model, 2, dtype=jnp.float32)[None, :]
    div = jnp.exp(-i * (math.log(10000.0) / d_model))
    ang = pos * div
    pe = jnp.zeros((max_len, d_model), jnp.float32)
    pe = pe.at[:, 0::2].set(jnp.sin(ang))
    pe = pe.at[:, 1::2].set(jnp.cos(ang))
    return pe


def init_params(key, max_len=64):
    def dense(k, shape):
        return jax.random.normal(k, shape, jnp.float32) * 0.02

    keys = jax.random.split(key, 12)
    NL = N_LAYERS

    enc = {
        # fused Q|K|V projection weights
        "wqkv": dense(keys[2], (NL, D_MODEL, 3 * D_MODEL)),
        "bqkv": jnp.zeros((NL, 1, 3 * D_MODEL), jnp.float32),
        "wo": dense(keys[3], (NL, D_MODEL, D_MODEL)),
        "bo": jnp.zeros((NL, 1, D_MODEL), jnp.float32),
        "w1": dense(keys[4], (NL, D_MODEL, D_FF)),
        "b1": jnp.zeros((NL, 1, D_FF), jnp.float32),
        "w2": dense(keys[5], (NL, D_FF, D_MODEL)),
        "b2": jnp.zeros((NL, 1, D_MODEL), jnp.float32),
        "ln1_g": jnp.ones((NL, 1, D_MODEL), jnp.float32),
        "ln1_b": jnp.zeros((NL, 1, D_MODEL), jnp.float32),
        "ln2_g": jnp.ones((NL, 1, D_MODEL), jnp.float32),
        "ln2_b": jnp.zeros((NL, 1, D_MODEL), jnp.float32),
        "ln_f_g": jnp.ones((1, D_MODEL), jnp.float32),
        "ln_f_b": jnp.zeros((1, D_MODEL), jnp.float32),
    }
    dec = {
        "sa_wqkv": dense(keys[6], (NL, D_MODEL, 3 * D_MODEL)),
        "sa_bqkv": jnp.zeros((NL, 1, 3 * D_MODEL), jnp.float32),
        "sa_wo": dense(keys[7], (NL, D_MODEL, D_MODEL)),
        "sa_bo": jnp.zeros((NL, 1, D_MODEL), jnp.float32),
        "ca_wqkv": dense(keys[8], (NL, D_MODEL, 3 * D_MODEL)),
        "ca_bqkv": jnp.zeros((NL, 1, 3 * D_MODEL), jnp.float32),
        "ca_wo": dense(keys[9], (NL, D_MODEL, D_MODEL)),
        "ca_bo": jnp.zeros((NL, 1, D_MODEL), jnp.float32),
        "w1": dense(keys[10], (NL, D_MODEL, D_FF)),
        "b1": jnp.zeros((NL, 1, D_FF), jnp.float32),
        "w2": dense(keys[11], (NL, D_FF, D_MODEL)),
        "b2": jnp.zeros((NL, 1, D_MODEL), jnp.float32),
        "ln1_g": jnp.ones((NL, 1, D_MODEL), jnp.float32),
        "ln1_b": jnp.zeros((NL, 1, D_MODEL), jnp.float32),
        "ln2_g": jnp.ones((NL, 1, D_MODEL), jnp.float32),
        "ln2_b": jnp.zeros((NL, 1, D_MODEL), jnp.float32),
        "ln3_g": jnp.ones((NL, 1, D_MODEL), jnp.float32),
        "ln3_b": jnp.zeros((NL, 1, D_MODEL), jnp.float32),
        "ln_f_g": jnp.ones((1, D_MODEL), jnp.float32),
        "ln_f_b": jnp.zeros((1, D_MODEL), jnp.float32),
    }

    return {
        "src_emb": dense(keys[0], (VOCAB, D_MODEL)),
        "tgt_emb": dense(keys[1], (VOCAB, D_MODEL)),
        "pe": _sinusoidal_pe(max_len, D_MODEL),
        "kernel": {"enc": enc, "dec": dec},
    }


# ----------------------------------- main ------------------------------------

if __name__ == "__main__":
    key = jax.random.PRNGKey(0)
    k_params, k_src, k_tgt = jax.random.split(key, 3)

    B, LS, LT = 2, 8, 8
    params = init_params(k_params)

    src = jax.random.randint(k_src, (B, LS), 0, VOCAB, dtype=jnp.int32)
    tgt = jax.random.randint(k_tgt, (B, LT), 0, VOCAB, dtype=jnp.int32)

    # src_mask: (B, 1, LS) all-ones; tgt_mask: (B, LT, LT) causal mask.
    src_mask = jnp.ones((B, 1, LS), jnp.float32)
    tgt_mask = jnp.broadcast_to(
        jnp.tril(jnp.ones((LT, LT), jnp.float32))[None, :, :], (B, LT, LT)
    )

    fwd = jax.jit(transformer_forward)
    out = jax.block_until_ready(fwd(params, src, tgt, src_mask, tgt_mask))

    assert out.shape == (B, LT, D_MODEL)
    assert bool(jnp.all(jnp.isfinite(out)))
    print("KERNEL_OK")
</pallas_src>

<mosaic_0001>
module attributes {stable_mosaic.version = 11 : i64} {
  func.func @_transformer_kernel(%arg0: i32, %arg1: memref<8x32xf32, #tpu.memory_space<vmem>>, %arg2: memref<8x32xf32, #tpu.memory_space<vmem>>, %arg3: memref<1x8x8xf32, #tpu.memory_space<vmem>>, %arg4: memref<1x8x8xf32, #tpu.memory_space<vmem>>, %arg5: memref<1x8x8xf32, #tpu.memory_space<vmem>>, %arg6: memref<2x1x64xf32, #tpu.memory_space<vmem>>, %arg7: memref<2x1x32xf32, #tpu.memory_space<vmem>>, %arg8: memref<2x1x32xf32, #tpu.memory_space<vmem>>, %arg9: memref<2x1x96xf32, #tpu.memory_space<vmem>>, %arg10: memref<2x32x32xf32, #tpu.memory_space<vmem>>, %arg11: memref<2x32x96xf32, #tpu.memory_space<vmem>>, %arg12: memref<2x1x32xf32, #tpu.memory_space<vmem>>, %arg13: memref<2x1x32xf32, #tpu.memory_space<vmem>>, %arg14: memref<2x1x32xf32, #tpu.memory_space<vmem>>, %arg15: memref<2x1x32xf32, #tpu.memory_space<vmem>>, %arg16: memref<2x1x32xf32, #tpu.memory_space<vmem>>, %arg17: memref<2x1x32xf32, #tpu.memory_space<vmem>>, %arg18: memref<1x32xf32, #tpu.memory_space<vmem>>, %arg19: memref<1x32xf32, #tpu.memory_space<vmem>>, %arg20: memref<2x1x32xf32, #tpu.memory_space<vmem>>, %arg21: memref<2x1x96xf32, #tpu.memory_space<vmem>>, %arg22: memref<2x32x32xf32, #tpu.memory_space<vmem>>, %arg23: memref<2x32x96xf32, #tpu.memory_space<vmem>>, %arg24: memref<2x32x64xf32, #tpu.memory_space<vmem>>, %arg25: memref<2x64x32xf32, #tpu.memory_space<vmem>>, %arg26: memref<2x1x64xf32, #tpu.memory_space<vmem>>, %arg27: memref<2x1x32xf32, #tpu.memory_space<vmem>>, %arg28: memref<2x1x32xf32, #tpu.memory_space<vmem>>, %arg29: memref<2x1x96xf32, #tpu.memory_space<vmem>>, %arg30: memref<2x1x32xf32, #tpu.memory_space<vmem>>, %arg31: memref<2x1x32xf32, #tpu.memory_space<vmem>>, %arg32: memref<2x1x32xf32, #tpu.memory_space<vmem>>, %arg33: memref<2x1x32xf32, #tpu.memory_space<vmem>>, %arg34: memref<1x32xf32, #tpu.memory_space<vmem>>, %arg35: memref<1x32xf32, #tpu.memory_space<vmem>>, %arg36: memref<2x32x64xf32, #tpu.memory_space<vmem>>, %arg37: memref<2x64x32xf32, #tpu.memory_space<vmem>>, %arg38: memref<2x32x32xf32, #tpu.memory_space<vmem>>, %arg39: memref<2x32x96xf32, #tpu.memory_space<vmem>>, %arg40: memref<8x32xf32, #tpu.memory_space<vmem>>) attributes {dimension_semantics = [#tpu.dimension_semantics<parallel>], iteration_bounds = array<i64: 2>, scalar_prefetch = 0 : i64, scratch_operands = 0 : i64, tpu.core_type = #tpu.core_type<tc>, window_params = [{transform_indices = @transform_0, window_bounds = array<i64: 8, 32>}, {transform_indices = @transform_1, window_bounds = array<i64: 8, 32>}, {transform_indices = @transform_2, window_bounds = array<i64: 1, 8, 8>}, {transform_indices = @transform_3, window_bounds = array<i64: 1, 8, 8>}, {transform_indices = @transform_4, window_bounds = array<i64: 1, 8, 8>}, {pipeline_mode = #tpu.pipeline_mode<synchronous>, transform_indices = @transform_5, window_bounds = array<i64: 2, 1, 64>}, {pipeline_mode = #tpu.pipeline_mode<synchronous>, transform_indices = @transform_6, window_bounds = array<i64: 2, 1, 32>}, {pipeline_mode = #tpu.pipeline_mode<synchronous>, transform_indices = @transform_7, window_bounds = array<i64: 2, 1, 32>}, {pipeline_mode = #tpu.pipeline_mode<synchronous>, transform_indices = @transform_8, window_bounds = array<i64: 2, 1, 96>}, {pipeline_mode = #tpu.pipeline_mode<synchronous>, transform_indices = @transform_9, window_bounds = array<i64: 2, 32, 32>}, {pipeline_mode = #tpu.pipeline_mode<synchronous>, transform_indices = @transform_10, window_bounds = array<i64: 2, 32, 96>}, {pipeline_mode = #tpu.pipeline_mode<synchronous>, transform_indices = @transform_11, window_bounds = array<i64: 2, 1, 32>}, {pipeline_mode = #tpu.pipeline_mode<synchronous>, transform_indices = @transform_12, window_bounds = array<i64: 2, 1, 32>}, {pipeline_mode = #tpu.pipeline_mode<synchronous>, transform_indices = @transform_13, window_bounds = array<i64: 2, 1, 32>}, {pipeline_mode = #tpu.pipeline_mode<synchronous>, transform_indices = @transform_14, window_bounds = array<i64: 2, 1, 32>}, {pipeline_mode = #tpu.pipeline_mode<synchronous>, transform_indices = @transform_15, window_bounds = array<i64: 2, 1, 32>}, {pipeline_mode = #tpu.pipeline_mode<synchronous>, transform_indices = @transform_16, window_bounds = array<i64: 2, 1, 32>}, {pipeline_mode = #tpu.pipeline_mode<synchronous>, transform_indices = @transform_17, window_bounds = array<i64: 1, 32>}, {pipeline_mode = #tpu.pipeline_mode<synchronous>, transform_indices = @transform_18, window_bounds = array<i64: 1, 32>}, {pipeline_mode = #tpu.pipeline_mode<synchronous>, transform_indices = @transform_19, window_bounds = array<i64: 2, 1, 32>}, {pipeline_mode = #tpu.pipeline_mode<synchronous>, transform_indices = @transform_20, window_bounds = array<i64: 2, 1, 96>}, {pipeline_mode = #tpu.pipeline_mode<synchronous>, transform_indices = @transform_21, window_bounds = array<i64: 2, 32, 32>}, {pipeline_mode = #tpu.pipeline_mode<synchronous>, transform_indices = @transform_22, window_bounds = array<i64: 2, 32, 96>}, {pipeline_mode = #tpu.pipeline_mode<synchronous>, transform_indices = @transform_23, window_bounds = array<i64: 2, 32, 64>}, {pipeline_mode = #tpu.pipeline_mode<synchronous>, transform_indices = @transform_24, window_bounds = array<i64: 2, 64, 32>}, {pipeline_mode = #tpu.pipeline_mode<synchronous>, transform_indices = @transform_25, window_bounds = array<i64: 2, 1, 64>}, {pipeline_mode = #tpu.pipeline_mode<synchronous>, transform_indices = @transform_26, window_bounds = array<i64: 2, 1, 32>}, {pipeline_mode = #tpu.pipeline_mode<synchronous>, transform_indices = @transform_27, window_bounds = array<i64: 2, 1, 32>}, {pipeline_mode = #tpu.pipeline_mode<synchronous>, transform_indices = @transform_28, window_bounds = array<i64: 2, 1, 96>}, {pipeline_mode = #tpu.pipeline_mode<synchronous>, transform_indices = @transform_29, window_bounds = array<i64: 2, 1, 32>}, {pipeline_mode = #tpu.pipeline_mode<synchronous>, transform_indices = @transform_30, window_bounds = array<i64: 2, 1, 32>}, {pipeline_mode = #tpu.pipeline_mode<synchronous>, transform_indices = @transform_31, window_bounds = array<i64: 2, 1, 32>}, {pipeline_mode = #tpu.pipeline_mode<synchronous>, transform_indices = @transform_32, window_bounds = array<i64: 2, 1, 32>}, {pipeline_mode = #tpu.pipeline_mode<synchronous>, transform_indices = @transform_33, window_bounds = array<i64: 1, 32>}, {pipeline_mode = #tpu.pipeline_mode<synchronous>, transform_indices = @transform_34, window_bounds = array<i64: 1, 32>}, {pipeline_mode = #tpu.pipeline_mode<synchronous>, transform_indices = @transform_35, window_bounds = array<i64: 2, 32, 64>}, {pipeline_mode = #tpu.pipeline_mode<synchronous>, transform_indices = @transform_36, window_bounds = array<i64: 2, 64, 32>}, {pipeline_mode = #tpu.pipeline_mode<synchronous>, transform_indices = @transform_37, window_bounds = array<i64: 2, 32, 32>}, {pipeline_mode = #tpu.pipeline_mode<synchronous>, transform_indices = @transform_38, window_bounds = array<i64: 2, 32, 96>}, {transform_indices = @transform_39, window_bounds = array<i64: 8, 32>}]} {
    %c0 = arith.constant 0 : index
    %c0_0 = arith.constant 0 : index
    %0 = vector.load %arg1[%c0, %c0_0] : memref<8x32xf32, #tpu.memory_space<vmem>>, vector<8x32xf32>
    %c0_1 = arith.constant 0 : index
    %c0_2 = arith.constant 0 : index
    %c0_3 = arith.constant 0 : index
    %1 = vector.load %arg3[%c0_1, %c0_2, %c0_3] : memref<1x8x8xf32, #tpu.memory_space<vmem>>, vector<1x8x8xf32>
    %2 = vector.shape_cast %1 : vector<1x8x8xf32> to vector<8x8xf32>
    %c0_4 = arith.constant 0 : index
    %c0_5 = arith.constant 0 : index
    %c0_6 = arith.constant 0 : index
    %3 = vector.load %arg31[%c0_4, %c0_5, %c0_6] : memref<2x1x32xf32, #tpu.memory_space<vmem>>, vector<1x1x32xf32>
    %4 = vector.shape_cast %3 : vector<1x1x32xf32> to vector<1x32xf32>
    %c0_7 = arith.constant 0 : index
    %c0_8 = arith.constant 0 : index
    %c0_9 = arith.constant 0 : index
    %5 = vector.load %arg30[%c0_7, %c0_8, %c0_9] : memref<2x1x32xf32, #tpu.memory_space<vmem>>, vector<1x1x32xf32>
    %6 = vector.shape_cast %5 : vector<1x1x32xf32> to vector<1x32xf32>
    %cst = arith.constant dense<0.000000e+00> : vector<8xf32>
    %7 = vector.multi_reduction <add>, %0, %cst [1] : vector<8x32xf32> to vector<8xf32>
    %8 = vector.shape_cast %7 : vector<8xf32> to vector<8x1xf32>
    %cst_10 = arith.constant 3.200000e+01 : f32
    %9 = vector.broadcast %cst_10 : f32 to vector<8x1xf32>
    %10 = arith.divf %8, %9 : vector<8x1xf32>
    %11 = vector.broadcast %10 : vector<8x1xf32> to vector<8x32xf32>
    %12 = arith.subf %0, %11 : vector<8x32xf32>
    %13 = arith.mulf %12, %12 : vector<8x32xf32>
    %cst_11 = arith.constant dense<0.000000e+00> : vector<8xf32>
    %14 = vector.multi_reduction <add>, %13, %cst_11 [1] : vector<8x32xf32> to vector<8xf32>
    %15 = vector.shape_cast %14 : vector<8xf32> to vector<8x1xf32>
    %cst_12 = arith.constant 3.200000e+01 : f32
    %16 = vector.broadcast %cst_12 : f32 to vector<8x1xf32>
    %17 = arith.divf %15, %16 : vector<8x1xf32>
    %18 = vector.broadcast %10 : vector<8x1xf32> to vector<8x32xf32>
    %19 = arith.subf %0, %18 : vector<8x32xf32>
    %cst_13 = arith.constant 9.99999997E-7 : f32
    %20 = vector.broadcast %cst_13 : f32 to vector<8x1xf32>
    %21 = arith.addf %17, %20 : vector<8x1xf32>
    %22 = math.rsqrt %21 : vector<8x1xf32>
    %23 = vector.broadcast %22 : vector<8x1xf32> to vector<8x32xf32>
    %24 = arith.mulf %19, %23 : vector<8x32xf32>
    %25 = vector.broadcast %4 : vector<1x32xf32> to vector<8x32xf32>
    %26 = arith.mulf %24, %25 : vector<8x32xf32>
    %27 = vector.broadcast %6 : vector<1x32xf32> to vector<8x32xf32>
    %28 = arith.addf %26, %27 : vector<8x32xf32>
    %c0_14 = arith.constant 0 : index
    %c0_15 = arith.constant 0 : index
    %c0_16 = arith.constant 0 : index
    %29 = vector.load %arg39[%c0_14, %c0_15, %c0_16] : memref<2x32x96xf32, #tpu.memory_space<vmem>>, vector<1x32x96xf32>
    %30 = vector.shape_cast %29 : vector<1x32x96xf32> to vector<32x96xf32>
    %c0_17 = arith.constant 0 : index
    %c0_18 = arith.constant 0 : index
    %c0_19 = arith.constant 0 : index
    %31 = vector.load %arg29[%c0_17, %c0_18, %c0_19] : memref<2x1x96xf32, #tpu.memory_space<vmem>>, vector<1x1x96xf32>
    %32 = vector.shape_cast %31 : vector<1x1x96xf32> to vector<1x96xf32>
    %c0_20 = arith.constant 0 : index
    %c0_21 = arith.constant 0 : index
    %c0_22 = arith.constant 0 : index
    %33 = vector.load %arg38[%c0_20, %c0_21, %c0_22] : memref<2x32x32xf32, #tpu.memory_space<vmem>>, vector<1x32x32xf32>
    %34 = vector.shape_cast %33 : vector<1x32x32xf32> to vector<32x32xf32>
    %c0_23 = arith.constant 0 : index
    %c0_24 = arith.constant 0 : index
    %c0_25 = arith.constant 0 : index
    %35 = vector.load %arg28[%c0_23, %c0_24, %c0_25] : memref<2x1x32xf32, #tpu.memory_space<vmem>>, vector<1x1x32xf32>
    %36 = vector.shape_cast %35 : vector<1x1x32xf32> to vector<1x32xf32>
    %37 = vector.extract_strided_slice %30 {offsets = [0, 0], sizes = [32, 32], strides = [1, 1]} : vector<32x96xf32> to vector<32x32xf32>
    %cst_26 = arith.constant dense<0.000000e+00> : vector<8x32xf32>
    %38 = tpu.matmul %28, %37, %cst_26 {dimension_numbers = #tpu.dot_dimension_numbers<[1], [0], [0], [1], [0, 0, 1, 1], [], []>} : vector<8x32xf32>, vector<32x32xf32>, vector<8x32xf32> -> vector<8x32xf32>
    %39 = vector.extract_strided_slice %32 {offsets = [0, 0], sizes = [1, 32], strides = [1, 1]} : vector<1x96xf32> to vector<1x32xf32>
    %40 = vector.broadcast %39 : vector<1x32xf32> to vector<8x32xf32>
    %41 = arith.addf %38, %40 : vector<8x32xf32>
    %42 = vector.extract_strided_slice %30 {offsets = [0, 32], sizes = [32, 64], strides = [1, 1]} : vector<32x96xf32> to vector<32x64xf32>
    %cst_27 = arith.constant dense<0.000000e+00> : vector<8x64xf32>
    %43 = tpu.matmul %28, %42, %cst_27 {dimension_numbers = #tpu.dot_dimension_numbers<[1], [0], [0], [1], [0, 0, 1, 1], [], []>} : vector<8x32xf32>, vector<32x64xf32>, vector<8x64xf32> -> vector<8x64xf32>
    %44 = vector.extract_strided_slice %32 {offsets = [0, 32], sizes = [1, 64], strides = [1, 1]} : vector<1x96xf32> to vector<1x64xf32>
    %45 = vector.broadcast %44 : vector<1x64xf32> to vector<8x64xf32>
    %46 = arith.addf %43, %45 : vector<8x64xf32>
    %47 = vector.extract_strided_slice %46 {offsets = [0, 0], sizes = [8, 32], strides = [1, 1]} : vector<8x64xf32> to vector<8x32xf32>
    %48 = vector.extract_strided_slice %46 {offsets = [0, 32], sizes = [8, 32], strides = [1, 1]} : vector<8x64xf32> to vector<8x32xf32>
    %cst_28 = arith.constant 0.000000e+00 : f32
    %49 = vector.broadcast %cst_28 : f32 to vector<8x32xf32>
    %50 = vector.extract_strided_slice %41 {offsets = [0, 0], sizes = [8, 8], strides = [1, 1]} : vector<8x32xf32> to vector<8x8xf32>
    %51 = vector.extract_strided_slice %47 {offsets = [0, 0], sizes = [8, 8], strides = [1, 1]} : vector<8x32xf32> to vector<8x8xf32>
    %52 = vector.extract_strided_slice %48 {offsets = [0, 0], sizes = [8, 8], strides = [1, 1]} : vector<8x32xf32> to vector<8x8xf32>
    %cst_29 = arith.constant dense<0.000000e+00> : vector<8x8xf32>
    %53 = tpu.matmul %50, %51, %cst_29 {dimension_numbers = #tpu.dot_dimension_numbers<[1], [1], [0], [0], [0, 0, 1, 0], [], []>} : vector<8x8xf32>, vector<8x8xf32>, vector<8x8xf32> -> vector<8x8xf32>
    %cst_30 = arith.constant 0.353553385 : f32
    %54 = vector.broadcast %cst_30 : f32 to vector<8x8xf32>
    %55 = arith.mulf %53, %54 : vector<8x8xf32>
    %cst_31 = arith.constant 0.000000e+00 : f32
    %56 = vector.broadcast %cst_31 : f32 to vector<8x8xf32>
    %57 = arith.cmpf oeq, %2, %56 : vector<8x8xf32>
    %cst_32 = arith.constant -1.000000e+09 : f32
    %58 = vector.broadcast %cst_32 : f32 to vector<8x8xf32>
    %59 = arith.select %57, %58, %55 : vector<8x8xi1>, vector<8x8xf32>
    %cst_33 = arith.constant dense<0xFF800000> : vector<8xf32>
    %60 = vector.multi_reduction <maximumf>, %59, %cst_33 [1] : vector<8x8xf32> to vector<8xf32>
    %61 = vector.shape_cast %60 : vector<8xf32> to vector<8x1xf32>
    %62 = vector.broadcast %61 : vector<8x1xf32> to vector<8x8xf32>
    %63 = arith.subf %59, %62 : vector<8x8xf32>
    %64 = math.exp %63 : vector<8x8xf32>
    %cst_34 = arith.constant dense<0.000000e+00> : vector<8xf32>
    %65 = vector.multi_reduction <add>, %64, %cst_34 [1] : vector<8x8xf32> to vector<8xf32>
    %66 = vector.shape_cast %65 : vector<8xf32> to vector<8x1xf32>
    %67 = tpu.reciprocal %66 {approx = true} : vector<8x1xf32> -> vector<8x1xf32>
    %68 = vector.broadcast %67 : vector<8x1xf32> to vector<8x8xf32>
    %69 = arith.mulf %64, %68 : vector<8x8xf32>
    %cst_35 = arith.constant dense<0.000000e+00> : vector<8x8xf32>
    %70 = tpu.matmul %69, %52, %cst_35 {dimension_numbers = #tpu.dot_dimension_numbers<[1], [0], [0], [1], [0, 0, 1, 1], [], []>} : vector<8x8xf32>, vector<8x8xf32>, vector<8x8xf32> -> vector<8x8xf32>
    %71 = vector.extract_strided_slice %34 {offsets = [0, 0], sizes = [8, 32], strides = [1, 1]} : vector<32x32xf32> to vector<8x32xf32>
    %cst_36 = arith.constant dense<0.000000e+00> : vector<8x32xf32>
    %72 = tpu.matmul %70, %71, %cst_36 {dimension_numbers = #tpu.dot_dimension_numbers<[1], [0], [0], [1], [0, 0, 1, 1], [], []>} : vector<8x8xf32>, vector<8x32xf32>, vector<8x32xf32> -> vector<8x32xf32>
    %73 = arith.addf %49, %72 : vector<8x32xf32>
    %74 = vector.extract_strided_slice %41 {offsets = [0, 8], sizes = [8, 8], strides = [1, 1]} : vector<8x32xf32> to vector<8x8xf32>
    %75 = vector.extract_strided_slice %47 {offsets = [0, 8], sizes = [8, 8], strides = [1, 1]} : vector<8x32xf32> to vector<8x8xf32>
    %76 = vector.extract_strided_slice %48 {offsets = [0, 8], sizes = [8, 8], strides = [1, 1]} : vector<8x32xf32> to vector<8x8xf32>
    %cst_37 = arith.constant dense<0.000000e+00> : vector<8x8xf32>
    %77 = tpu.matmul %74, %75, %cst_37 {dimension_numbers = #tpu.dot_dimension_numbers<[1], [1], [0], [0], [0, 0, 1, 0], [], []>} : vector<8x8xf32>, vector<8x8xf32>, vector<8x8xf32> -> vector<8x8xf32>
    %cst_38 = arith.constant 0.353553385 : f32
    %78 = vector.broadcast %cst_38 : f32 to vector<8x8xf32>
    %79 = arith.mulf %77, %78 : vector<8x8xf32>
    %cst_39 = arith.constant 0.000000e+00 : f32
    %80 = vector.broadcast %cst_39 : f32 to vector<8x8xf32>
    %81 = arith.cmpf oeq, %2, %80 : vector<8x8xf32>
    %cst_40 = arith.constant -1.000000e+09 : f32
    %82 = vector.broadcast %cst_40 : f32 to vector<8x8xf32>
    %83 = arith.select %81, %82, %79 : vector<8x8xi1>, vector<8x8xf32>
    %cst_41 = arith.constant dense<0xFF800000> : vector<8xf32>
    %84 = vector.multi_reduction <maximumf>, %83, %cst_41 [1] : vector<8x8xf32> to vector<8xf32>
    %85 = vector.shape_cast %84 : vector<8xf32> to vector<8x1xf32>
    %86 = vector.broadcast %85 : vector<8x1xf32> to vector<8x8xf32>
    %87 = arith.subf %83, %86 : vector<8x8xf32>
    %88 = math.exp %87 : vector<8x8xf32>
    %cst_42 = arith.constant dense<0.000000e+00> : vector<8xf32>
    %89 = vector.multi_reduction <add>, %88, %cst_42 [1] : vector<8x8xf32> to vector<8xf32>
    %90 = vector.shape_cast %89 : vector<8xf32> to vector<8x1xf32>
    %91 = tpu.reciprocal %90 {approx = true} : vector<8x1xf32> -> vector<8x1xf32>
    %92 = vector.broadcast %91 : vector<8x1xf32> to vector<8x8xf32>
    %93 = arith.mulf %88, %92 : vector<8x8xf32>
    %cst_43 = arith.constant dense<0.000000e+00> : vector<8x8xf32>
    %94 = tpu.matmul %93, %76, %cst_43 {dimension_numbers = #tpu.dot_dimension_numbers<[1], [0], [0], [1], [0, 0, 1, 1], [], []>} : vector<8x8xf32>, vector<8x8xf32>, vector<8x8xf32> -> vector<8x8xf32>
    %95 = vector.extract_strided_slice %34 {offsets = [8, 0], sizes = [8, 32], strides = [1, 1]} : vector<32x32xf32> to vector<8x32xf32>
    %cst_44 = arith.constant dense<0.000000e+00> : vector<8x32xf32>
    %96 = tpu.matmul %94, %95, %cst_44 {dimension_numbers = #tpu.dot_dimension_numbers<[1], [0], [0], [1], [0, 0, 1, 1], [], []>} : vector<8x8xf32>, vector<8x32xf32>, vector<8x32xf32> -> vector<8x32xf32>
    %97 = arith.addf %73, %96 : vector<8x32xf32>
    %98 = vector.extract_strided_slice %41 {offsets = [0, 16], sizes = [8, 8], strides = [1, 1]} : vector<8x32xf32> to vector<8x8xf32>
    %99 = vector.extract_strided_slice %47 {offsets = [0, 16], sizes = [8, 8], strides = [1, 1]} : vector<8x32xf32> to vector<8x8xf32>
    %100 = vector.extract_strided_slice %48 {offsets = [0, 16], sizes = [8, 8], strides = [1, 1]} : vector<8x32xf32> to vector<8x8xf32>
    %cst_45 = arith.constant dense<0.000000e+00> : vector<8x8xf32>
    %101 = tpu.matmul %98, %99, %cst_45 {dimension_numbers = #tpu.dot_dimension_numbers<[1], [1], [0], [0], [0, 0, 1, 0], [], []>} : vector<8x8xf32>, vector<8x8xf32>, vector<8x8xf32> -> vector<8x8xf32>
    %cst_46 = arith.constant 0.353553385 : f32
    %102 = vector.broadcast %cst_46 : f32 to vector<8x8xf32>
    %103 = arith.mulf %101, %102 : vector<8x8xf32>
    %cst_47 = arith.constant 0.000000e+00 : f32
    %104 = vector.broadcast %cst_47 : f32 to vector<8x8xf32>
    %105 = arith.cmpf oeq, %2, %104 : vector<8x8xf32>
    %cst_48 = arith.constant -1.000000e+09 : f32
    %106 = vector.broadcast %cst_48 : f32 to vector<8x8xf32>
    %107 = arith.select %105, %106, %103 : vector<8x8xi1>, vector<8x8xf32>
    %cst_49 = arith.constant dense<0xFF800000> : vector<8xf32>
    %108 = vector.multi_reduction <maximumf>, %107, %cst_49 [1] : vector<8x8xf32> to vector<8xf32>
    %109 = vector.shape_cast %108 : vector<8xf32> to vector<8x1xf32>
    %110 = vector.broadcast %109 : vector<8x1xf32> to vector<8x8xf32>
    %111 = arith.subf %107, %110 : vector<8x8xf32>
    %112 = math.exp %111 : vector<8x8xf32>
    %cst_50 = arith.constant dense<0.000000e+00> : vector<8xf32>
    %113 = vector.multi_reduction <add>, %112, %cst_50 [1] : vector<8x8xf32> to vector<8xf32>
    %114 = vector.shape_cast %113 : vector<8xf32> to vector<8x1xf32>
    %115 = tpu.reciprocal %114 {approx = true} : vector<8x1xf32> -> vector<8x1xf32>
    %116 = vector.broadcast %115 : vector<8x1xf32> to vector<8x8xf32>
    %117 = arith.mulf %112, %116 : vector<8x8xf32>
    %cst_51 = arith.constant dense<0.000000e+00> : vector<8x8xf32>
    %118 = tpu.matmul %117, %100, %cst_51 {dimension_numbers = #tpu.dot_dimension_numbers<[1], [0], [0], [1], [0, 0, 1, 1], [], []>} : vector<8x8xf32>, vector<8x8xf32>, vector<8x8xf32> -> vector<8x8xf32>
    %119 = vector.extract_strided_slice %34 {offsets = [16, 0], sizes = [8, 32], strides = [1, 1]} : vector<32x32xf32> to vector<8x32xf32>
    %cst_52 = arith.constant dense<0.000000e+00> : vector<8x32xf32>
    %120 = tpu.matmul %118, %119, %cst_52 {dimension_numbers = #tpu.dot_dimension_numbers<[1], [0], [0], [1], [0, 0, 1, 1], [], []>} : vector<8x8xf32>, vector<8x32xf32>, vector<8x32xf32> -> vector<8x32xf32>
    %121 = arith.addf %97, %120 : vector<8x32xf32>
    %122 = vector.extract_strided_slice %41 {offsets = [0, 24], sizes = [8, 8], strides = [1, 1]} : vector<8x32xf32> to vector<8x8xf32>
    %123 = vector.extract_strided_slice %47 {offsets = [0, 24], sizes = [8, 8], strides = [1, 1]} : vector<8x32xf32> to vector<8x8xf32>
    %124 = vector.extract_strided_slice %48 {offsets = [0, 24], sizes = [8, 8], strides = [1, 1]} : vector<8x32xf32> to vector<8x8xf32>
    %cst_53 = arith.constant dense<0.000000e+00> : vector<8x8xf32>
    %125 = tpu.matmul %122, %123, %cst_53 {dimension_numbers = #tpu.dot_dimension_numbers<[1], [1], [0], [0], [0, 0, 1, 0], [], []>} : vector<8x8xf32>, vector<8x8xf32>, vector<8x8xf32> -> vector<8x8xf32>
    %cst_54 = arith.constant 0.353553385 : f32
    %126 = vector.broadcast %cst_54 : f32 to vector<8x8xf32>
    %127 = arith.mulf %125, %126 : vector<8x8xf32>
    %cst_55 = arith.constant 0.000000e+00 : f32
    %128 = vector.broadcast %cst_55 : f32 to vector<8x8xf32>
    %129 = arith.cmpf oeq, %2, %128 : vector<8x8xf32>
    %cst_56 = arith.constant -1.000000e+09 : f32
    %130 = vector.broadcast %cst_56 : f32 to vector<8x8xf32>
    %131 = arith.select %129, %130, %127 : vector<8x8xi1>, vector<8x8xf32>
    %cst_57 = arith.constant dense<0xFF800000> : vector<8xf32>
    %132 = vector.multi_reduction <maximumf>, %131, %cst_57 [1] : vector<8x8xf32> to vector<8xf32>
    %133 = vector.shape_cast %132 : vector<8xf32> to vector<8x1xf32>
    %134 = vector.broadcast %133 : vector<8x1xf32> to vector<8x8xf32>
    %135 = arith.subf %131, %134 : vector<8x8xf32>
    %136 = math.exp %135 : vector<8x8xf32>
    %cst_58 = arith.constant dense<0.000000e+00> : vector<8xf32>
    %137 = vector.multi_reduction <add>, %136, %cst_58 [1] : vector<8x8xf32> to vector<8xf32>
    %138 = vector.shape_cast %137 : vector<8xf32> to vector<8x1xf32>
    %139 = tpu.reciprocal %138 {approx = true} : vector<8x1xf32> -> vector<8x1xf32>
    %140 = vector.broadcast %139 : vector<8x1xf32> to vector<8x8xf32>
    %141 = arith.mulf %136, %140 : vector<8x8xf32>
    %cst_59 = arith.constant dense<0.000000e+00> : vector<8x8xf32>
    %142 = tpu.matmul %141, %124, %cst_59 {dimension_numbers = #tpu.dot_dimension_numbers<[1], [0], [0], [1], [0, 0, 1, 1], [], []>} : vector<8x8xf32>, vector<8x8xf32>, vector<8x8xf32> -> vector<8x8xf32>
    %143 = vector.extract_strided_slice %34 {offsets = [24, 0], sizes = [8, 32], strides = [1, 1]} : vector<32x32xf32> to vector<8x32xf32>
    %cst_60 = arith.constant dense<0.000000e+00> : vector<8x32xf32>
    %144 = tpu.matmul %142, %143, %cst_60 {dimension_numbers = #tpu.dot_dimension_numbers<[1], [0], [0], [1], [0, 0, 1, 1], [], []>} : vector<8x8xf32>, vector<8x32xf32>, vector<8x32xf32> -> vector<8x32xf32>
    %145 = arith.addf %121, %144 : vector<8x32xf32>
    %146 = vector.broadcast %36 : vector<1x32xf32> to vector<8x32xf32>
    %147 = arith.addf %145, %146 : vector<8x32xf32>
    %148 = arith.addf %0, %147 : vector<8x32xf32>
    %c0_61 = arith.constant 0 : index
    %c0_62 = arith.constant 0 : index
    %c0_63 = arith.constant 0 : index
    %149 = vector.load %arg33[%c0_61, %c0_62, %c0_63] : memref<2x1x32xf32, #tpu.memory_space<vmem>>, vector<1x1x32xf32>
    %150 = vector.shape_cast %149 : vector<1x1x32xf32> to vector<1x32xf32>
    %c0_64 = arith.constant 0 : index
    %c0_65 = arith.constant 0 : index
    %c0_66 = arith.constant 0 : index
    %151 = vector.load %arg32[%c0_64, %c0_65, %c0_66] : memref<2x1x32xf32, #tpu.memory_space<vmem>>, vector<1x1x32xf32>
    %152 = vector.shape_cast %151 : vector<1x1x32xf32> to vector<1x32xf32>
    %cst_67 = arith.constant dense<0.000000e+00> : vector<8xf32>
    %153 = vector.multi_reduction <add>, %148, %cst_67 [1] : vector<8x32xf32> to vector<8xf32>
    %154 = vector.shape_cast %153 : vector<8xf32> to vector<8x1xf32>
    %cst_68 = arith.constant 3.200000e+01 : f32
    %155 = vector.broadcast %cst_68 : f32 to vector<8x1xf32>
    %156 = arith.divf %154, %155 : vector<8x1xf32>
    %157 = vector.broadcast %156 : vector<8x1xf32> to vector<8x32xf32>
    %158 = arith.subf %148, %157 : vector<8x32xf32>
    %159 = arith.mulf %158, %158 : vector<8x32xf32>
    %cst_69 = arith.constant dense<0.000000e+00> : vector<8xf32>
    %160 = vector.multi_reduction <add>, %159, %cst_69 [1] : vector<8x32xf32> to vector<8xf32>
    %161 = vector.shape_cast %160 : vector<8xf32> to vector<8x1xf32>
    %cst_70 = arith.constant 3.200000e+01 : f32
    %162 = vector.broadcast %cst_70 : f32 to vector<8x1xf32>
    %163 = arith.divf %161, %162 : vector<8x1xf32>
    %164 = vector.broadcast %156 : vector<8x1xf32> to vector<8x32xf32>
    %165 = arith.subf %148, %164 : vector<8x32xf32>
    %cst_71 = arith.constant 9.99999997E-7 : f32
    %166 = vector.broadcast %cst_71 : f32 to vector<8x1xf32>
    %167 = arith.addf %163, %166 : vector<8x1xf32>
    %168 = math.rsqrt %167 : vector<8x1xf32>
    %169 = vector.broadcast %168 : vector<8x1xf32> to vector<8x32xf32>
    %170 = arith.mulf %165, %169 : vector<8x32xf32>
    %171 = vector.broadcast %150 : vector<1x32xf32> to vector<8x32xf32>
    %172 = arith.mulf %170, %171 : vector<8x32xf32>
    %173 = vector.broadcast %152 : vector<1x32xf32> to vector<8x32xf32>
    %174 = arith.addf %172, %173 : vector<8x32xf32>
    %c0_72 = arith.constant 0 : index
    %c0_73 = arith.constant 0 : index
    %c0_74 = arith.constant 0 : index
    %175 = vector.load %arg36[%c0_72, %c0_73, %c0_74] : memref<2x32x64xf32, #tpu.memory_space<vmem>>, vector<1x32x64xf32>
    %176 = vector.shape_cast %175 : vector<1x32x64xf32> to vector<32x64xf32>
    %c0_75 = arith.constant 0 : index
    %c0_76 = arith.constant 0 : index
    %c0_77 = arith.constant 0 : index
    %177 = vector.load %arg26[%c0_75, %c0_76, %c0_77] : memref<2x1x64xf32, #tpu.memory_space<vmem>>, vector<1x1x64xf32>
    %178 = vector.shape_cast %177 : vector<1x1x64xf32> to vector<1x64xf32>
    %c0_78 = arith.constant 0 : index
    %c0_79 = arith.constant 0 : index
    %c0_80 = arith.constant 0 : index
    %179 = vector.load %arg37[%c0_78, %c0_79, %c0_80] : memref<2x64x32xf32, #tpu.memory_space<vmem>>, vector<1x64x32xf32>
    %180 = vector.shape_cast %179 : vector<1x64x32xf32> to vector<64x32xf32>
    %c0_81 = arith.constant 0 : index
    %c0_82 = arith.constant 0 : index
    %c0_83 = arith.constant 0 : index
    %181 = vector.load %arg27[%c0_81, %c0_82, %c0_83] : memref<2x1x32xf32, #tpu.memory_space<vmem>>, vector<1x1x32xf32>
    %182 = vector.shape_cast %181 : vector<1x1x32xf32> to vector<1x32xf32>
    %cst_84 = arith.constant dense<0.000000e+00> : vector<8x64xf32>
    %183 = tpu.matmul %174, %176, %cst_84 {dimension_numbers = #tpu.dot_dimension_numbers<[1], [0], [0], [1], [0, 0, 1, 1], [], []>} : vector<8x32xf32>, vector<32x64xf32>, vector<8x64xf32> -> vector<8x64xf32>
    %184 = vector.broadcast %178 : vector<1x64xf32> to vector<8x64xf32>
    %185 = arith.addf %183, %184 : vector<8x64xf32>
    %cst_85 = arith.constant 0.000000e+00 : f32
    %186 = vector.broadcast %cst_85 : f32 to vector<8x64xf32>
    %187 = arith.maximumf %185, %186 : vector<8x64xf32>
    %cst_86 = arith.constant dense<0.000000e+00> : vector<8x32xf32>
    %188 = tpu.matmul %187, %180, %cst_86 {dimension_numbers = #tpu.dot_dimension_numbers<[1], [0], [0], [1], [0, 0, 1, 1], [], []>} : vector<8x64xf32>, vector<64x32xf32>, vector<8x32xf32> -> vector<8x32xf32>
    %189 = vector.broadcast %182 : vector<1x32xf32> to vector<8x32xf32>
    %190 = arith.addf %188, %189 : vector<8x32xf32>
    %191 = arith.addf %148, %190 : vector<8x32xf32>
    %c1 = arith.constant 1 : index
    %c0_87 = arith.constant 0 : index
    %c0_88 = arith.constant 0 : index
    %192 = vector.load %arg31[%c1, %c0_87, %c0_88] : memref<2x1x32xf32, #tpu.memory_space<vmem>>, vector<1x1x32xf32>
    %193 = vector.shape_cast %192 : vector<1x1x32xf32> to vector<1x32xf32>
    %c1_89 = arith.constant 1 : index
    %c0_90 = arith.constant 0 : index
    %c0_91 = arith.constant 0 : index
    %194 = vector.load %arg30[%c1_89, %c0_90, %c0_91] : memref<2x1x32xf32, #tpu.memory_space<vmem>>, vector<1x1x32xf32>
    %195 = vector.shape_cast %194 : vector<1x1x32xf32> to vector<1x32xf32>
    %cst_92 = arith.constant dense<0.000000e+00> : vector<8xf32>
    %196 = vector.multi_reduction <add>, %191, %cst_92 [1] : vector<8x32xf32> to vector<8xf32>
    %197 = vector.shape_cast %196 : vector<8xf32> to vector<8x1xf32>
    %cst_93 = arith.constant 3.200000e+01 : f32
    %198 = vector.broadcast %cst_93 : f32 to vector<8x1xf32>
    %199 = arith.divf %197, %198 : vector<8x1xf32>
    %200 = vector.broadcast %199 : vector<8x1xf32> to vector<8x32xf32>
    %201 = arith.subf %191, %200 : vector<8x32xf32>
    %202 = arith.mulf %201, %201 : vector<8x32xf32>
    %cst_94 = arith.constant dense<0.000000e+00> : vector<8xf32>
    %203 = vector.multi_reduction <add>, %202, %cst_94 [1] : vector<8x32xf32> to vector<8xf32>
    %204 = vector.shape_cast %203 : vector<8xf32> to vector<8x1xf32>
    %cst_95 = arith.constant 3.200000e+01 : f32
    %205 = vector.broadcast %cst_95 : f32 to vector<8x1xf32>
    %206 = arith.divf %204, %205 : vector<8x1xf32>
    %207 = vector.broadcast %199 : vector<8x1xf32> to vector<8x32xf32>
    %208 = arith.subf %191, %207 : vector<8x32xf32>
    %cst_96 = arith.constant 9.99999997E-7 : f32
    %209 = vector.broadcast %cst_96 : f32 to vector<8x1xf32>
    %210 = arith.addf %206, %209 : vector<8x1xf32>
    %211 = math.rsqrt %210 : vector<8x1xf32>
    %212 = vector.broadcast %211 : vector<8x1xf32> to vector<8x32xf32>
    %213 = arith.mulf %208, %212 : vector<8x32xf32>
    %214 = vector.broadcast %193 : vector<1x32xf32> to vector<8x32xf32>
    %215 = arith.mulf %213, %214 : vector<8x32xf32>
    %216 = vector.broadcast %195 : vector<1x32xf32> to vector<8x32xf32>
    %217 = arith.addf %215, %216 : vector<8x32xf32>
    %c1_97 = arith.constant 1 : index
    %c0_98 = arith.constant 0 : index
    %c0_99 = arith.constant 0 : index
    %218 = vector.load %arg39[%c1_97, %c0_98, %c0_99] : memref<2x32x96xf32, #tpu.memory_space<vmem>>, vector<1x32x96xf32>
    %219 = vector.shape_cast %218 : vector<1x32x96xf32> to vector<32x96xf32>
    %c1_100 = arith.constant 1 : index
    %c0_101 = arith.constant 0 : index
    %c0_102 = arith.constant 0 : index
    %220 = vector.load %arg29[%c1_100, %c0_101, %c0_102] : memref<2x1x96xf32, #tpu.memory_space<vmem>>, vector<1x1x96xf32>
    %221 = vector.shape_cast %220 : vector<1x1x96xf32> to vector<1x96xf32>
    %c1_103 = arith.constant 1 : index
    %c0_104 = arith.constant 0 : index
    %c0_105 = arith.constant 0 : index
    %222 = vector.load %arg38[%c1_103, %c0_104, %c0_105] : memref<2x32x32xf32, #tpu.memory_space<vmem>>, vector<1x32x32xf32>
    %223 = vector.shape_cast %222 : vector<1x32x32xf32> to vector<32x32xf32>
    %c1_106 = arith.constant 1 : index
    %c0_107 = arith.constant 0 : index
    %c0_108 = arith.constant 0 : index
    %224 = vector.load %arg28[%c1_106, %c0_107, %c0_108] : memref<2x1x32xf32, #tpu.memory_space<vmem>>, vector<1x1x32xf32>
    %225 = vector.shape_cast %224 : vector<1x1x32xf32> to vector<1x32xf32>
    %226 = vector.extract_strided_slice %219 {offsets = [0, 0], sizes = [32, 32], strides = [1, 1]} : vector<32x96xf32> to vector<32x32xf32>
    %cst_109 = arith.constant dense<0.000000e+00> : vector<8x32xf32>
    %227 = tpu.matmul %217, %226, %cst_109 {dimension_numbers = #tpu.dot_dimension_numbers<[1], [0], [0], [1], [0, 0, 1, 1], [], []>} : vector<8x32xf32>, vector<32x32xf32>, vector<8x32xf32> -> vector<8x32xf32>
    %228 = vector.extract_strided_slice %221 {offsets = [0, 0], sizes = [1, 32], strides = [1, 1]} : vector<1x96xf32> to vector<1x32xf32>
    %229 = vector.broadcast %228 : vector<1x32xf32> to vector<8x32xf32>
    %230 = arith.addf %227, %229 : vector<8x32xf32>
    %231 = vector.extract_strided_slice %219 {offsets = [0, 32], sizes = [32, 64], strides = [1, 1]} : vector<32x96xf32> to vector<32x64xf32>
    %cst_110 = arith.constant dense<0.000000e+00> : vector<8x64xf32>
    %232 = tpu.matmul %217, %231, %cst_110 {dimension_numbers = #tpu.dot_dimension_numbers<[1], [0], [0], [1], [0, 0, 1, 1], [], []>} : vector<8x32xf32>, vector<32x64xf32>, vector<8x64xf32> -> vector<8x64xf32>
    %233 = vector.extract_strided_slice %221 {offsets = [0, 32], sizes = [1, 64], strides = [1, 1]} : vector<1x96xf32> to vector<1x64xf32>
    %234 = vector.broadcast %233 : vector<1x64xf32> to vector<8x64xf32>
    %235 = arith.addf %232, %234 : vector<8x64xf32>
    %236 = vector.extract_strided_slice %235 {offsets = [0, 0], sizes = [8, 32], strides = [1, 1]} : vector<8x64xf32> to vector<8x32xf32>
    %237 = vector.extract_strided_slice %235 {offsets = [0, 32], sizes = [8, 32], strides = [1, 1]} : vector<8x64xf32> to vector<8x32xf32>
    %cst_111 = arith.constant 0.000000e+00 : f32
    %238 = vector.broadcast %cst_111 : f32 to vector<8x32xf32>
    %239 = vector.extract_strided_slice %230 {offsets = [0, 0], sizes = [8, 8], strides = [1, 1]} : vector<8x32xf32> to vector<8x8xf32>
    %240 = vector.extract_strided_slice %236 {offsets = [0, 0], sizes = [8, 8], strides = [1, 1]} : vector<8x32xf32> to vector<8x8xf32>
    %241 = vector.extract_strided_slice %237 {offsets = [0, 0], sizes = [8, 8], strides = [1, 1]} : vector<8x32xf32> to vector<8x8xf32>
    %cst_112 = arith.constant dense<0.000000e+00> : vector<8x8xf32>
    %242 = tpu.matmul %239, %240, %cst_112 {dimension_numbers = #tpu.dot_dimension_numbers<[1], [1], [0], [0], [0, 0, 1, 0], [], []>} : vector<8x8xf32>, vector<8x8xf32>, vector<8x8xf32> -> vector<8x8xf32>
    %cst_113 = arith.constant 0.353553385 : f32
    %243 = vector.broadcast %cst_113 : f32 to vector<8x8xf32>
    %244 = arith.mulf %242, %243 : vector<8x8xf32>
    %cst_114 = arith.constant 0.000000e+00 : f32
    %245 = vector.broadcast %cst_114 : f32 to vector<8x8xf32>
    %246 = arith.cmpf oeq, %2, %245 : vector<8x8xf32>
    %cst_115 = arith.constant -1.000000e+09 : f32
    %247 = vector.broadcast %cst_115 : f32 to vector<8x8xf32>
    %248 = arith.select %246, %247, %244 : vector<8x8xi1>, vector<8x8xf32>
    %cst_116 = arith.constant dense<0xFF800000> : vector<8xf32>
    %249 = vector.multi_reduction <maximumf>, %248, %cst_116 [1] : vector<8x8xf32> to vector<8xf32>
    %250 = vector.shape_cast %249 : vector<8xf32> to vector<8x1xf32>
    %251 = vector.broadcast %250 : vector<8x1xf32> to vector<8x8xf32>
    %252 = arith.subf %248, %251 : vector<8x8xf32>
    %253 = math.exp %252 : vector<8x8xf32>
    %cst_117 = arith.constant dense<0.000000e+00> : vector<8xf32>
    %254 = vector.multi_reduction <add>, %253, %cst_117 [1] : vector<8x8xf32> to vector<8xf32>
    %255 = vector.shape_cast %254 : vector<8xf32> to vector<8x1xf32>
    %256 = tpu.reciprocal %255 {approx = true} : vector<8x1xf32> -> vector<8x1xf32>
    %257 = vector.broadcast %256 : vector<8x1xf32> to vector<8x8xf32>
    %258 = arith.mulf %253, %257 : vector<8x8xf32>
    %cst_118 = arith.constant dense<0.000000e+00> : vector<8x8xf32>
    %259 = tpu.matmul %258, %241, %cst_118 {dimension_numbers = #tpu.dot_dimension_numbers<[1], [0], [0], [1], [0, 0, 1, 1], [], []>} : vector<8x8xf32>, vector<8x8xf32>, vector<8x8xf32> -> vector<8x8xf32>
    %260 = vector.extract_strided_slice %223 {offsets = [0, 0], sizes = [8, 32], strides = [1, 1]} : vector<32x32xf32> to vector<8x32xf32>
    %cst_119 = arith.constant dense<0.000000e+00> : vector<8x32xf32>
    %261 = tpu.matmul %259, %260, %cst_119 {dimension_numbers = #tpu.dot_dimension_numbers<[1], [0], [0], [1], [0, 0, 1, 1], [], []>} : vector<8x8xf32>, vector<8x32xf32>, vector<8x32xf32> -> vector<8x32xf32>
    %262 = arith.addf %238, %261 : vector<8x32xf32>
    %263 = vector.extract_strided_slice %230 {offsets = [0, 8], sizes = [8, 8], strides = [1, 1]} : vector<8x32xf32> to vector<8x8xf32>
    %264 = vector.extract_strided_slice %236 {offsets = [0, 8], sizes = [8, 8], strides = [1, 1]} : vector<8x32xf32> to vector<8x8xf32>
    %265 = vector.extract_strided_slice %237 {offsets = [0, 8], sizes = [8, 8], strides = [1, 1]} : vector<8x32xf32> to vector<8x8xf32>
    %cst_120 = arith.constant dense<0.000000e+00> : vector<8x8xf32>
    %266 = tpu.matmul %263, %264, %cst_120 {dimension_numbers = #tpu.dot_dimension_numbers<[1], [1], [0], [0], [0, 0, 1, 0], [], []>} : vector<8x8xf32>, vector<8x8xf32>, vector<8x8xf32> -> vector<8x8xf32>
    %cst_121 = arith.constant 0.353553385 : f32
    %267 = vector.broadcast %cst_121 : f32 to vector<8x8xf32>
    %268 = arith.mulf %266, %267 : vector<8x8xf32>
    %cst_122 = arith.constant 0.000000e+00 : f32
    %269 = vector.broadcast %cst_122 : f32 to vector<8x8xf32>
    %270 = arith.cmpf oeq, %2, %269 : vector<8x8xf32>
    %cst_123 = arith.constant -1.000000e+09 : f32
    %271 = vector.broadcast %cst_123 : f32 to vector<8x8xf32>
    %272 = arith.select %270, %271, %268 : vector<8x8xi1>, vector<8x8xf32>
    %cst_124 = arith.constant dense<0xFF800000> : vector<8xf32>
    %273 = vector.multi_reduction <maximumf>, %272, %cst_124 [1] : vector<8x8xf32> to vector<8xf32>
    %274 = vector.shape_cast %273 : vector<8xf32> to vector<8x1xf32>
    %275 = vector.broadcast %274 : vector<8x1xf32> to vector<8x8xf32>
    %276 = arith.subf %272, %275 : vector<8x8xf32>
    %277 = math.exp %276 : vector<8x8xf32>
    %cst_125 = arith.constant dense<0.000000e+00> : vector<8xf32>
    %278 = vector.multi_reduction <add>, %277, %cst_125 [1] : vector<8x8xf32> to vector<8xf32>
    %279 = vector.shape_cast %278 : vector<8xf32> to vector<8x1xf32>
    %280 = tpu.reciprocal %279 {approx = true} : vector<8x1xf32> -> vector<8x1xf32>
    %281 = vector.broadcast %280 : vector<8x1xf32> to vector<8x8xf32>
    %282 = arith.mulf %277, %281 : vector<8x8xf32>
    %cst_126 = arith.constant dense<0.000000e+00> : vector<8x8xf32>
    %283 = tpu.matmul %282, %265, %cst_126 {dimension_numbers = #tpu.dot_dimension_numbers<[1], [0], [0], [1], [0, 0, 1, 1], [], []>} : vector<8x8xf32>, vector<8x8xf32>, vector<8x8xf32> -> vector<8x8xf32>
    %284 = vector.extract_strided_slice %223 {offsets = [8, 0], sizes = [8, 32], strides = [1, 1]} : vector<32x32xf32> to vector<8x32xf32>
    %cst_127 = arith.constant dense<0.000000e+00> : vector<8x32xf32>
    %285 = tpu.matmul %283, %284, %cst_127 {dimension_numbers = #tpu.dot_dimension_numbers<[1], [0], [0], [1], [0, 0, 1, 1], [], []>} : vector<8x8xf32>, vector<8x32xf32>, vector<8x32xf32> -> vector<8x32xf32>
    %286 = arith.addf %262, %285 : vector<8x32xf32>
    %287 = vector.extract_strided_slice %230 {offsets = [0, 16], sizes = [8, 8], strides = [1, 1]} : vector<8x32xf32> to vector<8x8xf32>
    %288 = vector.extract_strided_slice %236 {offsets = [0, 16], sizes = [8, 8], strides = [1, 1]} : vector<8x32xf32> to vector<8x8xf32>
    %289 = vector.extract_strided_slice %237 {offsets = [0, 16], sizes = [8, 8], strides = [1, 1]} : vector<8x32xf32> to vector<8x8xf32>
    %cst_128 = arith.constant dense<0.000000e+00> : vector<8x8xf32>
    %290 = tpu.matmul %287, %288, %cst_128 {dimension_numbers = #tpu.dot_dimension_numbers<[1], [1], [0], [0], [0, 0, 1, 0], [], []>} : vector<8x8xf32>, vector<8x8xf32>, vector<8x8xf32> -> vector<8x8xf32>
    %cst_129 = arith.constant 0.353553385 : f32
    %291 = vector.broadcast %cst_129 : f32 to vector<8x8xf32>
    %292 = arith.mulf %290, %291 : vector<8x8xf32>
    %cst_130 = arith.constant 0.000000e+00 : f32
    %293 = vector.broadcast %cst_130 : f32 to vector<8x8xf32>
    %294 = arith.cmpf oeq, %2, %293 : vector<8x8xf32>
    %cst_131 = arith.constant -1.000000e+09 : f32
    %295 = vector.broadcast %cst_131 : f32 to vector<8x8xf32>
    %296 = arith.select %294, %295, %292 : vector<8x8xi1>, vector<8x8xf32>
    %cst_132 = arith.constant dense<0xFF800000> : vector<8xf32>
    %297 = vector.multi_reduction <maximumf>, %296, %cst_132 [1] : vector<8x8xf32> to vector<8xf32>
    %298 = vector.shape_cast %297 : vector<8xf32> to vector<8x1xf32>
    %299 = vector.broadcast %298 : vector<8x1xf32> to vector<8x8xf32>
    %300 = arith.subf %296, %299 : vector<8x8xf32>
    %301 = math.exp %300 : vector<8x8xf32>
    %cst_133 = arith.constant dense<0.000000e+00> : vector<8xf32>
    %302 = vector.multi_reduction <add>, %301, %cst_133 [1] : vector<8x8xf32> to vector<8xf32>
    %303 = vector.shape_cast %302 : vector<8xf32> to vector<8x1xf32>
    %304 = tpu.reciprocal %303 {approx = true} : vector<8x1xf32> -> vector<8x1xf32>
    %305 = vector.broadcast %304 : vector<8x1xf32> to vector<8x8xf32>
    %306 = arith.mulf %301, %305 : vector<8x8xf32>
    %cst_134 = arith.constant dense<0.000000e+00> : vector<8x8xf32>
    %307 = tpu.matmul %306, %289, %cst_134 {dimension_numbers = #tpu.dot_dimension_numbers<[1], [0], [0], [1], [0, 0, 1, 1], [], []>} : vector<8x8xf32>, vector<8x8xf32>, vector<8x8xf32> -> vector<8x8xf32>
    %308 = vector.extract_strided_slice %223 {offsets = [16, 0], sizes = [8, 32], strides = [1, 1]} : vector<32x32xf32> to vector<8x32xf32>
    %cst_135 = arith.constant dense<0.000000e+00> : vector<8x32xf32>
    %309 = tpu.matmul %307, %308, %cst_135 {dimension_numbers = #tpu.dot_dimension_numbers<[1], [0], [0], [1], [0, 0, 1, 1], [], []>} : vector<8x8xf32>, vector<8x32xf32>, vector<8x32xf32> -> vector<8x32xf32>
    %310 = arith.addf %286, %309 : vector<8x32xf32>
    %311 = vector.extract_strided_slice %230 {offsets = [0, 24], sizes = [8, 8], strides = [1, 1]} : vector<8x32xf32> to vector<8x8xf32>
    %312 = vector.extract_strided_slice %236 {offsets = [0, 24], sizes = [8, 8], strides = [1, 1]} : vector<8x32xf32> to vector<8x8xf32>
    %313 = vector.extract_strided_slice %237 {offsets = [0, 24], sizes = [8, 8], strides = [1, 1]} : vector<8x32xf32> to vector<8x8xf32>
    %cst_136 = arith.constant dense<0.000000e+00> : vector<8x8xf32>
    %314 = tpu.matmul %311, %312, %cst_136 {dimension_numbers = #tpu.dot_dimension_numbers<[1], [1], [0], [0], [0, 0, 1, 0], [], []>} : vector<8x8xf32>, vector<8x8xf32>, vector<8x8xf32> -> vector<8x8xf32>
    %cst_137 = arith.constant 0.353553385 : f32
    %315 = vector.broadcast %cst_137 : f32 to vector<8x8xf32>
    %316 = arith.mulf %314, %315 : vector<8x8xf32>
    %cst_138 = arith.constant 0.000000e+00 : f32
    %317 = vector.broadcast %cst_138 : f32 to vector<8x8xf32>
    %318 = arith.cmpf oeq, %2, %317 : vector<8x8xf32>
    %cst_139 = arith.constant -1.000000e+09 : f32
    %319 = vector.broadcast %cst_139 : f32 to vector<8x8xf32>
    %320 = arith.select %318, %319, %316 : vector<8x8xi1>, vector<8x8xf32>
    %cst_140 = arith.constant dense<0xFF800000> : vector<8xf32>
    %321 = vector.multi_reduction <maximumf>, %320, %cst_140 [1] : vector<8x8xf32> to vector<8xf32>
    %322 = vector.shape_cast %321 : vector<8xf32> to vector<8x1xf32>
    %323 = vector.broadcast %322 : vector<8x1xf32> to vector<8x8xf32>
    %324 = arith.subf %320, %323 : vector<8x8xf32>
    %325 = math.exp %324 : vector<8x8xf32>
    %cst_141 = arith.constant dense<0.000000e+00> : vector<8xf32>
    %326 = vector.multi_reduction <add>, %325, %cst_141 [1] : vector<8x8xf32> to vector<8xf32>
    %327 = vector.shape_cast %326 : vector<8xf32> to vector<8x1xf32>
    %328 = tpu.reciprocal %327 {approx = true} : vector<8x1xf32> -> vector<8x1xf32>
    %329 = vector.broadcast %328 : vector<8x1xf32> to vector<8x8xf32>
    %330 = arith.mulf %325, %329 : vector<8x8xf32>
    %cst_142 = arith.constant dense<0.000000e+00> : vector<8x8xf32>
    %331 = tpu.matmul %330, %313, %cst_142 {dimension_numbers = #tpu.dot_dimension_numbers<[1], [0], [0], [1], [0, 0, 1, 1], [], []>} : vector<8x8xf32>, vector<8x8xf32>, vector<8x8xf32> -> vector<8x8xf32>
    %332 = vector.extract_strided_slice %223 {offsets = [24, 0], sizes = [8, 32], strides = [1, 1]} : vector<32x32xf32> to vector<8x32xf32>
    %cst_143 = arith.constant dense<0.000000e+00> : vector<8x32xf32>
    %333 = tpu.matmul %331, %332, %cst_143 {dimension_numbers = #tpu.dot_dimension_numbers<[1], [0], [0], [1], [0, 0, 1, 1], [], []>} : vector<8x8xf32>, vector<8x32xf32>, vector<8x32xf32> -> vector<8x32xf32>
    %334 = arith.addf %310, %333 : vector<8x32xf32>
    %335 = vector.broadcast %225 : vector<1x32xf32> to vector<8x32xf32>
    %336 = arith.addf %334, %335 : vector<8x32xf32>
    %337 = arith.addf %191, %336 : vector<8x32xf32>
    %c1_144 = arith.constant 1 : index
    %c0_145 = arith.constant 0 : index
    %c0_146 = arith.constant 0 : index
    %338 = vector.load %arg33[%c1_144, %c0_145, %c0_146] : memref<2x1x32xf32, #tpu.memory_space<vmem>>, vector<1x1x32xf32>
    %339 = vector.shape_cast %338 : vector<1x1x32xf32> to vector<1x32xf32>
    %c1_147 = arith.constant 1 : index
    %c0_148 = arith.constant 0 : index
    %c0_149 = arith.constant 0 : index
    %340 = vector.load %arg32[%c1_147, %c0_148, %c0_149] : memref<2x1x32xf32, #tpu.memory_space<vmem>>, vector<1x1x32xf32>
    %341 = vector.shape_cast %340 : vector<1x1x32xf32> to vector<1x32xf32>
    %cst_150 = arith.constant dense<0.000000e+00> : vector<8xf32>
    %342 = vector.multi_reduction <add>, %337, %cst_150 [1] : vector<8x32xf32> to vector<8xf32>
    %343 = vector.shape_cast %342 : vector<8xf32> to vector<8x1xf32>
    %cst_151 = arith.constant 3.200000e+01 : f32
    %344 = vector.broadcast %cst_151 : f32 to vector<8x1xf32>
    %345 = arith.divf %343, %344 : vector<8x1xf32>
    %346 = vector.broadcast %345 : vector<8x1xf32> to vector<8x32xf32>
    %347 = arith.subf %337, %346 : vector<8x32xf32>
    %348 = arith.mulf %347, %347 : vector<8x32xf32>
    %cst_152 = arith.constant dense<0.000000e+00> : vector<8xf32>
    %349 = vector.multi_reduction <add>, %348, %cst_152 [1] : vector<8x32xf32> to vector<8xf32>
    %350 = vector.shape_cast %349 : vector<8xf32> to vector<8x1xf32>
    %cst_153 = arith.constant 3.200000e+01 : f32
    %351 = vector.broadcast %cst_153 : f32 to vector<8x1xf32>
    %352 = arith.divf %350, %351 : vector<8x1xf32>
    %353 = vector.broadcast %345 : vector<8x1xf32> to vector<8x32xf32>
    %354 = arith.subf %337, %353 : vector<8x32xf32>
    %cst_154 = arith.constant 9.99999997E-7 : f32
    %355 = vector.broadcast %cst_154 : f32 to vector<8x1xf32>
    %356 = arith.addf %352, %355 : vector<8x1xf32>
    %357 = math.rsqrt %356 : vector<8x1xf32>
    %358 = vector.broadcast %357 : vector<8x1xf32> to vector<8x32xf32>
    %359 = arith.mulf %354, %358 : vector<8x32xf32>
    %360 = vector.broadcast %339 : vector<1x32xf32> to vector<8x32xf32>
    %361 = arith.mulf %359, %360 : vector<8x32xf32>
    %362 = vector.broadcast %341 : vector<1x32xf32> to vector<8x32xf32>
    %363 = arith.addf %361, %362 : vector<8x32xf32>
    %c1_155 = arith.constant 1 : index
    %c0_156 = arith.constant 0 : index
    %c0_157 = arith.constant 0 : index
    %364 = vector.load %arg36[%c1_155, %c0_156, %c0_157] : memref<2x32x64xf32, #tpu.memory_space<vmem>>, vector<1x32x64xf32>
    %365 = vector.shape_cast %364 : vector<1x32x64xf32> to vector<32x64xf32>
    %c1_158 = arith.constant 1 : index
    %c0_159 = arith.constant 0 : index
    %c0_160 = arith.constant 0 : index
    %366 = vector.load %arg26[%c1_158, %c0_159, %c0_160] : memref<2x1x64xf32, #tpu.memory_space<vmem>>, vector<1x1x64xf32>
    %367 = vector.shape_cast %366 : vector<1x1x64xf32> to vector<1x64xf32>
    %c1_161 = arith.constant 1 : index
    %c0_162 = arith.constant 0 : index
    %c0_163 = arith.constant 0 : index
    %368 = vector.load %arg37[%c1_161, %c0_162, %c0_163] : memref<2x64x32xf32, #tpu.memory_space<vmem>>, vector<1x64x32xf32>
    %369 = vector.shape_cast %368 : vector<1x64x32xf32> to vector<64x32xf32>
    %c1_164 = arith.constant 1 : index
    %c0_165 = arith.constant 0 : index
    %c0_166 = arith.constant 0 : index
    %370 = vector.load %arg27[%c1_164, %c0_165, %c0_166] : memref<2x1x32xf32, #tpu.memory_space<vmem>>, vector<1x1x32xf32>
    %371 = vector.shape_cast %370 : vector<1x1x32xf32> to vector<1x32xf32>
    %cst_167 = arith.constant dense<0.000000e+00> : vector<8x64xf32>
    %372 = tpu.matmul %363, %365, %cst_167 {dimension_numbers = #tpu.dot_dimension_numbers<[1], [0], [0], [1], [0, 0, 1, 1], [], []>} : vector<8x32xf32>, vector<32x64xf32>, vector<8x64xf32> -> vector<8x64xf32>
    %373 = vector.broadcast %367 : vector<1x64xf32> to vector<8x64xf32>
    %374 = arith.addf %372, %373 : vector<8x64xf32>
    %cst_168 = arith.constant 0.000000e+00 : f32
    %375 = vector.broadcast %cst_168 : f32 to vector<8x64xf32>
    %376 = arith.maximumf %374, %375 : vector<8x64xf32>
    %cst_169 = arith.constant dense<0.000000e+00> : vector<8x32xf32>
    %377 = tpu.matmul %376, %369, %cst_169 {dimension_numbers = #tpu.dot_dimension_numbers<[1], [0], [0], [1], [0, 0, 1, 1], [], []>} : vector<8x64xf32>, vector<64x32xf32>, vector<8x32xf32> -> vector<8x32xf32>
    %378 = vector.broadcast %371 : vector<1x32xf32> to vector<8x32xf32>
    %379 = arith.addf %377, %378 : vector<8x32xf32>
    %380 = arith.addf %337, %379 : vector<8x32xf32>
    %c0_170 = arith.constant 0 : index
    %c0_171 = arith.constant 0 : index
    %381 = vector.load %arg35[%c0_170, %c0_171] : memref<1x32xf32, #tpu.memory_space<vmem>>, vector<1x32xf32>
    %c0_172 = arith.constant 0 : index
    %c0_173 = arith.constant 0 : index
    %382 = vector.load %arg34[%c0_172, %c0_173] : memref<1x32xf32, #tpu.memory_space<vmem>>, vector<1x32xf32>
    %cst_174 = arith.constant dense<0.000000e+00> : vector<8xf32>
    %383 = vector.multi_reduction <add>, %380, %cst_174 [1] : vector<8x32xf32> to vector<8xf32>
    %384 = vector.shape_cast %383 : vector<8xf32> to vector<8x1xf32>
    %cst_175 = arith.constant 3.200000e+01 : f32
    %385 = vector.broadcast %cst_175 : f32 to vector<8x1xf32>
    %386 = arith.divf %384, %385 : vector<8x1xf32>
    %387 = vector.broadcast %386 : vector<8x1xf32> to vector<8x32xf32>
    %388 = arith.subf %380, %387 : vector<8x32xf32>
    %389 = arith.mulf %388, %388 : vector<8x32xf32>
    %cst_176 = arith.constant dense<0.000000e+00> : vector<8xf32>
    %390 = vector.multi_reduction <add>, %389, %cst_176 [1] : vector<8x32xf32> to vector<8xf32>
    %391 = vector.shape_cast %390 : vector<8xf32> to vector<8x1xf32>
    %cst_177 = arith.constant 3.200000e+01 : f32
    %392 = vector.broadcast %cst_177 : f32 to vector<8x1xf32>
    %393 = arith.divf %391, %392 : vector<8x1xf32>
    %394 = vector.broadcast %386 : vector<8x1xf32> to vector<8x32xf32>
    %395 = arith.subf %380, %394 : vector<8x32xf32>
    %cst_178 = arith.constant 9.99999997E-7 : f32
    %396 = vector.broadcast %cst_178 : f32 to vector<8x1xf32>
    %397 = arith.addf %393, %396 : vector<8x1xf32>
    %398 = math.rsqrt %397 : vector<8x1xf32>
    %399 = vector.broadcast %398 : vector<8x1xf32> to vector<8x32xf32>
    %400 = arith.mulf %395, %399 : vector<8x32xf32>
    %401 = vector.broadcast %381 : vector<1x32xf32> to vector<8x32xf32>
    %402 = arith.mulf %400, %401 : vector<8x32xf32>
    %403 = vector.broadcast %382 : vector<1x32xf32> to vector<8x32xf32>
    %404 = arith.addf %402, %403 : vector<8x32xf32>
    %c0_179 = arith.constant 0 : index
    %c0_180 = arith.constant 0 : index
    %405 = vector.load %arg2[%c0_179, %c0_180] : memref<8x32xf32, #tpu.memory_space<vmem>>, vector<8x32xf32>
    %c0_181 = arith.constant 0 : index
    %c0_182 = arith.constant 0 : index
    %c0_183 = arith.constant 0 : index
    %406 = vector.load %arg4[%c0_181, %c0_182, %c0_183] : memref<1x8x8xf32, #tpu.memory_space<vmem>>, vector<1x8x8xf32>
    %407 = vector.shape_cast %406 : vector<1x8x8xf32> to vector<8x8xf32>
    %c0_184 = arith.constant 0 : index
    %c0_185 = arith.constant 0 : index
    %c0_186 = arith.constant 0 : index
    %408 = vector.load %arg5[%c0_184, %c0_185, %c0_186] : memref<1x8x8xf32, #tpu.memory_space<vmem>>, vector<1x8x8xf32>
    %409 = vector.shape_cast %408 : vector<1x8x8xf32> to vector<8x8xf32>
    %c0_187 = arith.constant 0 : index
    %c0_188 = arith.constant 0 : index
    %c0_189 = arith.constant 0 : index
    %410 = vector.load %arg13[%c0_187, %c0_188, %c0_189] : memref<2x1x32xf32, #tpu.memory_space<vmem>>, vector<1x1x32xf32>
    %411 = vector.shape_cast %410 : vector<1x1x32xf32> to vector<1x32xf32>
    %c0_190 = arith.constant 0 : index
    %c0_191 = arith.constant 0 : index
    %c0_192 = arith.constant 0 : index
    %412 = vector.load %arg12[%c0_190, %c0_191, %c0_192] : memref<2x1x32xf32, #tpu.memory_space<vmem>>, vector<1x1x32xf32>
    %413 = vector.shape_cast %412 : vector<1x1x32xf32> to vector<1x32xf32>
    %cst_193 = arith.constant dense<0.000000e+00> : vector<8xf32>
    %414 = vector.multi_reduction <add>, %405, %cst_193 [1] : vector<8x32xf32> to vector<8xf32>
    %415 = vector.shape_cast %414 : vector<8xf32> to vector<8x1xf32>
    %cst_194 = arith.constant 3.200000e+01 : f32
    %416 = vector.broadcast %cst_194 : f32 to vector<8x1xf32>
    %417 = arith.divf %415, %416 : vector<8x1xf32>
    %418 = vector.broadcast %417 : vector<8x1xf32> to vector<8x32xf32>
    %419 = arith.subf %405, %418 : vector<8x32xf32>
    %420 = arith.mulf %419, %419 : vector<8x32xf32>
    %cst_195 = arith.constant dense<0.000000e+00> : vector<8xf32>
    %421 = vector.multi_reduction <add>, %420, %cst_195 [1] : vector<8x32xf32> to vector<8xf32>
    %422 = vector.shape_cast %421 : vector<8xf32> to vector<8x1xf32>
    %cst_196 = arith.constant 3.200000e+01 : f32
    %423 = vector.broadcast %cst_196 : f32 to vector<8x1xf32>
    %424 = arith.divf %422, %423 : vector<8x1xf32>
    %425 = vector.broadcast %417 : vector<8x1xf32> to vector<8x32xf32>
    %426 = arith.subf %405, %425 : vector<8x32xf32>
    %cst_197 = arith.constant 9.99999997E-7 : f32
    %427 = vector.broadcast %cst_197 : f32 to vector<8x1xf32>
    %428 = arith.addf %424, %427 : vector<8x1xf32>
    %429 = math.rsqrt %428 : vector<8x1xf32>
    %430 = vector.broadcast %429 : vector<8x1xf32> to vector<8x32xf32>
    %431 = arith.mulf %426, %430 : vector<8x32xf32>
    %432 = vector.broadcast %411 : vector<1x32xf32> to vector<8x32xf32>
    %433 = arith.mulf %431, %432 : vector<8x32xf32>
    %434 = vector.broadcast %413 : vector<1x32xf32> to vector<8x32xf32>
    %435 = arith.addf %433, %434 : vector<8x32xf32>
    %c0_198 = arith.constant 0 : index
    %c0_199 = arith.constant 0 : index
    %c0_200 = arith.constant 0 : index
    %436 = vector.load %arg23[%c0_198, %c0_199, %c0_200] : memref<2x32x96xf32, #tpu.memory_space<vmem>>, vector<1x32x96xf32>
    %437 = vector.shape_cast %436 : vector<1x32x96xf32> to vector<32x96xf32>
    %c0_201 = arith.constant 0 : index
    %c0_202 = arith.constant 0 : index
    %c0_203 = arith.constant 0 : index
    %438 = vector.load %arg21[%c0_201, %c0_202, %c0_203] : memref<2x1x96xf32, #tpu.memory_space<vmem>>, vector<1x1x96xf32>
    %439 = vector.shape_cast %438 : vector<1x1x96xf32> to vector<1x96xf32>
    %c0_204 = arith.constant 0 : index
    %c0_205 = arith.constant 0 : index
    %c0_206 = arith.constant 0 : index
    %440 = vector.load %arg22[%c0_204, %c0_205, %c0_206] : memref<2x32x32xf32, #tpu.memory_space<vmem>>, vector<1x32x32xf32>
    %441 = vector.shape_cast %440 : vector<1x32x32xf32> to vector<32x32xf32>
    %c0_207 = arith.constant 0 : index
    %c0_208 = arith.constant 0 : index
    %c0_209 = arith.constant 0 : index
    %442 = vector.load %arg20[%c0_207, %c0_208, %c0_209] : memref<2x1x32xf32, #tpu.memory_space<vmem>>, vector<1x1x32xf32>
    %443 = vector.shape_cast %442 : vector<1x1x32xf32> to vector<1x32xf32>
    %444 = vector.extract_strided_slice %437 {offsets = [0, 0], sizes = [32, 32], strides = [1, 1]} : vector<32x96xf32> to vector<32x32xf32>
    %cst_210 = arith.constant dense<0.000000e+00> : vector<8x32xf32>
    %445 = tpu.matmul %435, %444, %cst_210 {dimension_numbers = #tpu.dot_dimension_numbers<[1], [0], [0], [1], [0, 0, 1, 1], [], []>} : vector<8x32xf32>, vector<32x32xf32>, vector<8x32xf32> -> vector<8x32xf32>
    %446 = vector.extract_strided_slice %439 {offsets = [0, 0], sizes = [1, 32], strides = [1, 1]} : vector<1x96xf32> to vector<1x32xf32>
    %447 = vector.broadcast %446 : vector<1x32xf32> to vector<8x32xf32>
    %448 = arith.addf %445, %447 : vector<8x32xf32>
    %449 = vector.extract_strided_slice %437 {offsets = [0, 32], sizes = [32, 64], strides = [1, 1]} : vector<32x96xf32> to vector<32x64xf32>
    %cst_211 = arith.constant dense<0.000000e+00> : vector<8x64xf32>
    %450 = tpu.matmul %435, %449, %cst_211 {dimension_numbers = #tpu.dot_dimension_numbers<[1], [0], [0], [1], [0, 0, 1, 1], [], []>} : vector<8x32xf32>, vector<32x64xf32>, vector<8x64xf32> -> vector<8x64xf32>
    %451 = vector.extract_strided_slice %439 {offsets = [0, 32], sizes = [1, 64], strides = [1, 1]} : vector<1x96xf32> to vector<1x64xf32>
    %452 = vector.broadcast %451 : vector<1x64xf32> to vector<8x64xf32>
    %453 = arith.addf %450, %452 : vector<8x64xf32>
    %454 = vector.extract_strided_slice %453 {offsets = [0, 0], sizes = [8, 32], strides = [1, 1]} : vector<8x64xf32> to vector<8x32xf32>
    %455 = vector.extract_strided_slice %453 {offsets = [0, 32], sizes = [8, 32], strides = [1, 1]} : vector<8x64xf32> to vector<8x32xf32>
    %cst_212 = arith.constant 0.000000e+00 : f32
    %456 = vector.broadcast %cst_212 : f32 to vector<8x32xf32>
    %457 = vector.extract_strided_slice %448 {offsets = [0, 0], sizes = [8, 8], strides = [1, 1]} : vector<8x32xf32> to vector<8x8xf32>
    %458 = vector.extract_strided_slice %454 {offsets = [0, 0], sizes = [8, 8], strides = [1, 1]} : vector<8x32xf32> to vector<8x8xf32>
    %459 = vector.extract_strided_slice %455 {offsets = [0, 0], sizes = [8, 8], strides = [1, 1]} : vector<8x32xf32> to vector<8x8xf32>
    %cst_213 = arith.constant dense<0.000000e+00> : vector<8x8xf32>
    %460 = tpu.matmul %457, %458, %cst_213 {dimension_numbers = #tpu.dot_dimension_numbers<[1], [1], [0], [0], [0, 0, 1, 0], [], []>} : vector<8x8xf32>, vector<8x8xf32>, vector<8x8xf32> -> vector<8x8xf32>
    %cst_214 = arith.constant 0.353553385 : f32
    %461 = vector.broadcast %cst_214 : f32 to vector<8x8xf32>
    %462 = arith.mulf %460, %461 : vector<8x8xf32>
    %cst_215 = arith.constant 0.000000e+00 : f32
    %463 = vector.broadcast %cst_215 : f32 to vector<8x8xf32>
    %464 = arith.cmpf oeq, %407, %463 : vector<8x8xf32>
    %cst_216 = arith.constant -1.000000e+09 : f32
    %465 = vector.broadcast %cst_216 : f32 to vector<8x8xf32>
    %466 = arith.select %464, %465, %462 : vector<8x8xi1>, vector<8x8xf32>
    %cst_217 = arith.constant dense<0xFF800000> : vector<8xf32>
    %467 = vector.multi_reduction <maximumf>, %466, %cst_217 [1] : vector<8x8xf32> to vector<8xf32>
    %468 = vector.shape_cast %467 : vector<8xf32> to vector<8x1xf32>
    %469 = vector.broadcast %468 : vector<8x1xf32> to vector<8x8xf32>
    %470 = arith.subf %466, %469 : vector<8x8xf32>
    %471 = math.exp %470 : vector<8x8xf32>
    %cst_218 = arith.constant dense<0.000000e+00> : vector<8xf32>
    %472 = vector.multi_reduction <add>, %471, %cst_218 [1] : vector<8x8xf32> to vector<8xf32>
    %473 = vector.shape_cast %472 : vector<8xf32> to vector<8x1xf32>
    %474 = tpu.reciprocal %473 {approx = true} : vector<8x1xf32> -> vector<8x1xf32>
    %475 = vector.broadcast %474 : vector<8x1xf32> to vector<8x8xf32>
    %476 = arith.mulf %471, %475 : vector<8x8xf32>
    %cst_219 = arith.constant dense<0.000000e+00> : vector<8x8xf32>
    %477 = tpu.matmul %476, %459, %cst_219 {dimension_numbers = #tpu.dot_dimension_numbers<[1], [0], [0], [1], [0, 0, 1, 1], [], []>} : vector<8x8xf32>, vector<8x8xf32>, vector<8x8xf32> -> vector<8x8xf32>
    %478 = vector.extract_strided_slice %441 {offsets = [0, 0], sizes = [8, 32], strides = [1, 1]} : vector<32x32xf32> to vector<8x32xf32>
    %cst_220 = arith.constant dense<0.000000e+00> : vector<8x32xf32>
    %479 = tpu.matmul %477, %478, %cst_220 {dimension_numbers = #tpu.dot_dimension_numbers<[1], [0], [0], [1], [0, 0, 1, 1], [], []>} : vector<8x8xf32>, vector<8x32xf32>, vector<8x32xf32> -> vector<8x32xf32>
    %480 = arith.addf %456, %479 : vector<8x32xf32>
    %481 = vector.extract_strided_slice %448 {offsets = [0, 8], sizes = [8, 8], strides = [1, 1]} : vector<8x32xf32> to vector<8x8xf32>
    %482 = vector.extract_strided_slice %454 {offsets = [0, 8], sizes = [8, 8], strides = [1, 1]} : vector<8x32xf32> to vector<8x8xf32>
    %483 = vector.extract_strided_slice %455 {offsets = [0, 8], sizes = [8, 8], strides = [1, 1]} : vector<8x32xf32> to vector<8x8xf32>
    %cst_221 = arith.constant dense<0.000000e+00> : vector<8x8xf32>
    %484 = tpu.matmul %481, %482, %cst_221 {dimension_numbers = #tpu.dot_dimension_numbers<[1], [1], [0], [0], [0, 0, 1, 0], [], []>} : vector<8x8xf32>, vector<8x8xf32>, vector<8x8xf32> -> vector<8x8xf32>
    %cst_222 = arith.constant 0.353553385 : f32
    %485 = vector.broadcast %cst_222 : f32 to vector<8x8xf32>
    %486 = arith.mulf %484, %485 : vector<8x8xf32>
    %cst_223 = arith.constant 0.000000e+00 : f32
    %487 = vector.broadcast %cst_223 : f32 to vector<8x8xf32>
    %488 = arith.cmpf oeq, %407, %487 : vector<8x8xf32>
    %cst_224 = arith.constant -1.000000e+09 : f32
    %489 = vector.broadcast %cst_224 : f32 to vector<8x8xf32>
    %490 = arith.select %488, %489, %486 : vector<8x8xi1>, vector<8x8xf32>
    %cst_225 = arith.constant dense<0xFF800000> : vector<8xf32>
    %491 = vector.multi_reduction <maximumf>, %490, %cst_225 [1] : vector<8x8xf32> to vector<8xf32>
    %492 = vector.shape_cast %491 : vector<8xf32> to vector<8x1xf32>
    %493 = vector.broadcast %492 : vector<8x1xf32> to vector<8x8xf32>
    %494 = arith.subf %490, %493 : vector<8x8xf32>
    %495 = math.exp %494 : vector<8x8xf32>
    %cst_226 = arith.constant dense<0.000000e+00> : vector<8xf32>
    %496 = vector.multi_reduction <add>, %495, %cst_226 [1] : vector<8x8xf32> to vector<8xf32>
    %497 = vector.shape_cast %496 : vector<8xf32> to vector<8x1xf32>
    %498 = tpu.reciprocal %497 {approx = true} : vector<8x1xf32> -> vector<8x1xf32>
    %499 = vector.broadcast %498 : vector<8x1xf32> to vector<8x8xf32>
    %500 = arith.mulf %495, %499 : vector<8x8xf32>
    %cst_227 = arith.constant dense<0.000000e+00> : vector<8x8xf32>
    %501 = tpu.matmul %500, %483, %cst_227 {dimension_numbers = #tpu.dot_dimension_numbers<[1], [0], [0], [1], [0, 0, 1, 1], [], []>} : vector<8x8xf32>, vector<8x8xf32>, vector<8x8xf32> -> vector<8x8xf32>
    %502 = vector.extract_strided_slice %441 {offsets = [8, 0], sizes = [8, 32], strides = [1, 1]} : vector<32x32xf32> to vector<8x32xf32>
    %cst_228 = arith.constant dense<0.000000e+00> : vector<8x32xf32>
    %503 = tpu.matmul %501, %502, %cst_228 {dimension_numbers = #tpu.dot_dimension_numbers<[1], [0], [0], [1], [0, 0, 1, 1], [], []>} : vector<8x8xf32>, vector<8x32xf32>, vector<8x32xf32> -> vector<8x32xf32>
    %504 = arith.addf %480, %503 : vector<8x32xf32>
    %505 = vector.extract_strided_slice %448 {offsets = [0, 16], sizes = [8, 8], strides = [1, 1]} : vector<8x32xf32> to vector<8x8xf32>
    %506 = vector.extract_strided_slice %454 {offsets = [0, 16], sizes = [8, 8], strides = [1, 1]} : vector<8x32xf32> to vector<8x8xf32>
    %507 = vector.extract_strided_slice %455 {offsets = [0, 16], sizes = [8, 8], strides = [1, 1]} : vector<8x32xf32> to vector<8x8xf32>
    %cst_229 = arith.constant dense<0.000000e+00> : vector<8x8xf32>
    %508 = tpu.matmul %505, %506, %cst_229 {dimension_numbers = #tpu.dot_dimension_numbers<[1], [1], [0], [0], [0, 0, 1, 0], [], []>} : vector<8x8xf32>, vector<8x8xf32>, vector<8x8xf32> -> vector<8x8xf32>
    %cst_230 = arith.constant 0.353553385 : f32
    %509 = vector.broadcast %cst_230 : f32 to vector<8x8xf32>
    %510 = arith.mulf %508, %509 : vector<8x8xf32>
    %cst_231 = arith.constant 0.000000e+00 : f32
    %511 = vector.broadcast %cst_231 : f32 to vector<8x8xf32>
    %512 = arith.cmpf oeq, %407, %511 : vector<8x8xf32>
    %cst_232 = arith.constant -1.000000e+09 : f32
    %513 = vector.broadcast %cst_232 : f32 to vector<8x8xf32>
    %514 = arith.select %512, %513, %510 : vector<8x8xi1>, vector<8x8xf32>
    %cst_233 = arith.constant dense<0xFF800000> : vector<8xf32>
    %515 = vector.multi_reduction <maximumf>, %514, %cst_233 [1] : vector<8x8xf32> to vector<8xf32>
    %516 = vector.shape_cast %515 : vector<8xf32> to vector<8x1xf32>
    %517 = vector.broadcast %516 : vector<8x1xf32> to vector<8x8xf32>
    %518 = arith.subf %514, %517 : vector<8x8xf32>
    %519 = math.exp %518 : vector<8x8xf32>
    %cst_234 = arith.constant dense<0.000000e+00> : vector<8xf32>
    %520 = vector.multi_reduction <add>, %519, %cst_234 [1] : vector<8x8xf32> to vector<8xf32>
    %521 = vector.shape_cast %520 : vector<8xf32> to vector<8x1xf32>
    %522 = tpu.reciprocal %521 {approx = true} : vector<8x1xf32> -> vector<8x1xf32>
    %523 = vector.broadcast %522 : vector<8x1xf32> to vector<8x8xf32>
    %524 = arith.mulf %519, %523 : vector<8x8xf32>
    %cst_235 = arith.constant dense<0.000000e+00> : vector<8x8xf32>
    %525 = tpu.matmul %524, %507, %cst_235 {dimension_numbers = #tpu.dot_dimension_numbers<[1], [0], [0], [1], [0, 0, 1, 1], [], []>} : vector<8x8xf32>, vector<8x8xf32>, vector<8x8xf32> -> vector<8x8xf32>
    %526 = vector.extract_strided_slice %441 {offsets = [16, 0], sizes = [8, 32], strides = [1, 1]} : vector<32x32xf32> to vector<8x32xf32>
    %cst_236 = arith.constant dense<0.000000e+00> : vector<8x32xf32>
    %527 = tpu.matmul %525, %526, %cst_236 {dimension_numbers = #tpu.dot_dimension_numbers<[1], [0], [0], [1], [0, 0, 1, 1], [], []>} : vector<8x8xf32>, vector<8x32xf32>, vector<8x32xf32> -> vector<8x32xf32>
    %528 = arith.addf %504, %527 : vector<8x32xf32>
    %529 = vector.extract_strided_slice %448 {offsets = [0, 24], sizes = [8, 8], strides = [1, 1]} : vector<8x32xf32> to vector<8x8xf32>
    %530 = vector.extract_strided_slice %454 {offsets = [0, 24], sizes = [8, 8], strides = [1, 1]} : vector<8x32xf32> to vector<8x8xf32>
    %531 = vector.extract_strided_slice %455 {offsets = [0, 24], sizes = [8, 8], strides = [1, 1]} : vector<8x32xf32> to vector<8x8xf32>
    %cst_237 = arith.constant dense<0.000000e+00> : vector<8x8xf32>
    %532 = tpu.matmul %529, %530, %cst_237 {dimension_numbers = #tpu.dot_dimension_numbers<[1], [1], [0], [0], [0, 0, 1, 0], [], []>} : vector<8x8xf32>, vector<8x8xf32>, vector<8x8xf32> -> vector<8x8xf32>
    %cst_238 = arith.constant 0.353553385 : f32
    %533 = vector.broadcast %cst_238 : f32 to vector<8x8xf32>
    %534 = arith.mulf %532, %533 : vector<8x8xf32>
    %cst_239 = arith.constant 0.000000e+00 : f32
    %535 = vector.broadcast %cst_239 : f32 to vector<8x8xf32>
    %536 = arith.cmpf oeq, %407, %535 : vector<8x8xf32>
    %cst_240 = arith.constant -1.000000e+09 : f32
    %537 = vector.broadcast %cst_240 : f32 to vector<8x8xf32>
    %538 = arith.select %536, %537, %534 : vector<8x8xi1>, vector<8x8xf32>
    %cst_241 = arith.constant dense<0xFF800000> : vector<8xf32>
    %539 = vector.multi_reduction <maximumf>, %538, %cst_241 [1] : vector<8x8xf32> to vector<8xf32>
    %540 = vector.shape_cast %539 : vector<8xf32> to vector<8x1xf32>
    %541 = vector.broadcast %540 : vector<8x1xf32> to vector<8x8xf32>
    %542 = arith.subf %538, %541 : vector<8x8xf32>
    %543 = math.exp %542 : vector<8x8xf32>
    %cst_242 = arith.constant dense<0.000000e+00> : vector<8xf32>
    %544 = vector.multi_reduction <add>, %543, %cst_242 [1] : vector<8x8xf32> to vector<8xf32>
    %545 = vector.shape_cast %544 : vector<8xf32> to vector<8x1xf32>
    %546 = tpu.reciprocal %545 {approx = true} : vector<8x1xf32> -> vector<8x1xf32>
    %547 = vector.broadcast %546 : vector<8x1xf32> to vector<8x8xf32>
    %548 = arith.mulf %543, %547 : vector<8x8xf32>
    %cst_243 = arith.constant dense<0.000000e+00> : vector<8x8xf32>
    %549 = tpu.matmul %548, %531, %cst_243 {dimension_numbers = #tpu.dot_dimension_numbers<[1], [0], [0], [1], [0, 0, 1, 1], [], []>} : vector<8x8xf32>, vector<8x8xf32>, vector<8x8xf32> -> vector<8x8xf32>
    %550 = vector.extract_strided_slice %441 {offsets = [24, 0], sizes = [8, 32], strides = [1, 1]} : vector<32x32xf32> to vector<8x32xf32>
    %cst_244 = arith.constant dense<0.000000e+00> : vector<8x32xf32>
    %551 = tpu.matmul %549, %550, %cst_244 {dimension_numbers = #tpu.dot_dimension_numbers<[1], [0], [0], [1], [0, 0, 1, 1], [], []>} : vector<8x8xf32>, vector<8x32xf32>, vector<8x32xf32> -> vector<8x32xf32>
    %552 = arith.addf %528, %551 : vector<8x32xf32>
    %553 = vector.broadcast %443 : vector<1x32xf32> to vector<8x32xf32>
    %554 = arith.addf %552, %553 : vector<8x32xf32>
    %555 = arith.addf %405, %554 : vector<8x32xf32>
    %c0_245 = arith.constant 0 : index
    %c0_246 = arith.constant 0 : index
    %c0_247 = arith.constant 0 : index
    %556 = vector.load %arg15[%c0_245, %c0_246, %c0_247] : memref<2x1x32xf32, #tpu.memory_space<vmem>>, vector<1x1x32xf32>
    %557 = vector.shape_cast %556 : vector<1x1x32xf32> to vector<1x32xf32>
    %c0_248 = arith.constant 0 : index
    %c0_249 = arith.constant 0 : index
    %c0_250 = arith.constant 0 : index
    %558 = vector.load %arg14[%c0_248, %c0_249, %c0_250] : memref<2x1x32xf32, #tpu.memory_space<vmem>>, vector<1x1x32xf32>
    %559 = vector.shape_cast %558 : vector<1x1x32xf32> to vector<1x32xf32>
    %cst_251 = arith.constant dense<0.000000e+00> : vector<8xf32>
    %560 = vector.multi_reduction <add>, %555, %cst_251 [1] : vector<8x32xf32> to vector<8xf32>
    %561 = vector.shape_cast %560 : vector<8xf32> to vector<8x1xf32>
    %cst_252 = arith.constant 3.200000e+01 : f32
    %562 = vector.broadcast %cst_252 : f32 to vector<8x1xf32>
    %563 = arith.divf %561, %562 : vector<8x1xf32>
    %564 = vector.broadcast %563 : vector<8x1xf32> to vector<8x32xf32>
    %565 = arith.subf %555, %564 : vector<8x32xf32>
    %566 = arith.mulf %565, %565 : vector<8x32xf32>
    %cst_253 = arith.constant dense<0.000000e+00> : vector<8xf32>
    %567 = vector.multi_reduction <add>, %566, %cst_253 [1] : vector<8x32xf32> to vector<8xf32>
    %568 = vector.shape_cast %567 : vector<8xf32> to vector<8x1xf32>
    %cst_254 = arith.constant 3.200000e+01 : f32
    %569 = vector.broadcast %cst_254 : f32 to vector<8x1xf32>
    %570 = arith.divf %568, %569 : vector<8x1xf32>
    %571 = vector.broadcast %563 : vector<8x1xf32> to vector<8x32xf32>
    %572 = arith.subf %555, %571 : vector<8x32xf32>
    %cst_255 = arith.constant 9.99999997E-7 : f32
    %573 = vector.broadcast %cst_255 : f32 to vector<8x1xf32>
    %574 = arith.addf %570, %573 : vector<8x1xf32>
    %575 = math.rsqrt %574 : vector<8x1xf32>
    %576 = vector.broadcast %575 : vector<8x1xf32> to vector<8x32xf32>
    %577 = arith.mulf %572, %576 : vector<8x32xf32>
    %578 = vector.broadcast %557 : vector<1x32xf32> to vector<8x32xf32>
    %579 = arith.mulf %577, %578 : vector<8x32xf32>
    %580 = vector.broadcast %559 : vector<1x32xf32> to vector<8x32xf32>
    %581 = arith.addf %579, %580 : vector<8x32xf32>
    %c0_256 = arith.constant 0 : index
    %c0_257 = arith.constant 0 : index
    %c0_258 = arith.constant 0 : index
    %582 = vector.load %arg11[%c0_256, %c0_257, %c0_258] : memref<2x32x96xf32, #tpu.memory_space<vmem>>, vector<1x32x96xf32>
    %583 = vector.shape_cast %582 : vector<1x32x96xf32> to vector<32x96xf32>
    %c0_259 = arith.constant 0 : index
    %c0_260 = arith.constant 0 : index
    %c0_261 = arith.constant 0 : index
    %584 = vector.load %arg9[%c0_259, %c0_260, %c0_261] : memref<2x1x96xf32, #tpu.memory_space<vmem>>, vector<1x1x96xf32>
    %585 = vector.shape_cast %584 : vector<1x1x96xf32> to vector<1x96xf32>
    %c0_262 = arith.constant 0 : index
    %c0_263 = arith.constant 0 : index
    %c0_264 = arith.constant 0 : index
    %586 = vector.load %arg10[%c0_262, %c0_263, %c0_264] : memref<2x32x32xf32, #tpu.memory_space<vmem>>, vector<1x32x32xf32>
    %587 = vector.shape_cast %586 : vector<1x32x32xf32> to vector<32x32xf32>
    %c0_265 = arith.constant 0 : index
    %c0_266 = arith.constant 0 : index
    %c0_267 = arith.constant 0 : index
    %588 = vector.load %arg8[%c0_265, %c0_266, %c0_267] : memref<2x1x32xf32, #tpu.memory_space<vmem>>, vector<1x1x32xf32>
    %589 = vector.shape_cast %588 : vector<1x1x32xf32> to vector<1x32xf32>
    %590 = vector.extract_strided_slice %583 {offsets = [0, 0], sizes = [32, 32], strides = [1, 1]} : vector<32x96xf32> to vector<32x32xf32>
    %cst_268 = arith.constant dense<0.000000e+00> : vector<8x32xf32>
    %591 = tpu.matmul %581, %590, %cst_268 {dimension_numbers = #tpu.dot_dimension_numbers<[1], [0], [0], [1], [0, 0, 1, 1], [], []>} : vector<8x32xf32>, vector<32x32xf32>, vector<8x32xf32> -> vector<8x32xf32>
    %592 = vector.extract_strided_slice %585 {offsets = [0, 0], sizes = [1, 32], strides = [1, 1]} : vector<1x96xf32> to vector<1x32xf32>
    %593 = vector.broadcast %592 : vector<1x32xf32> to vector<8x32xf32>
    %594 = arith.addf %591, %593 : vector<8x32xf32>
    %595 = vector.extract_strided_slice %583 {offsets = [0, 32], sizes = [32, 64], strides = [1, 1]} : vector<32x96xf32> to vector<32x64xf32>
    %cst_269 = arith.constant dense<0.000000e+00> : vector<8x64xf32>
    %596 = tpu.matmul %404, %595, %cst_269 {dimension_numbers = #tpu.dot_dimension_numbers<[1], [0], [0], [1], [0, 0, 1, 1], [], []>} : vector<8x32xf32>, vector<32x64xf32>, vector<8x64xf32> -> vector<8x64xf32>
    %597 = vector.extract_strided_slice %585 {offsets = [0, 32], sizes = [1, 64], strides = [1, 1]} : vector<1x96xf32> to vector<1x64xf32>
    %598 = vector.broadcast %597 : vector<1x64xf32> to vector<8x64xf32>
    %599 = arith.addf %596, %598 : vector<8x64xf32>
    %600 = vector.extract_strided_slice %599 {offsets = [0, 0], sizes = [8, 32], strides = [1, 1]} : vector<8x64xf32> to vector<8x32xf32>
    %601 = vector.extract_strided_slice %599 {offsets = [0, 32], sizes = [8, 32], strides = [1, 1]} : vector<8x64xf32> to vector<8x32xf32>
    %cst_270 = arith.constant 0.000000e+00 : f32
    %602 = vector.broadcast %cst_270 : f32 to vector<8x32xf32>
    %603 = vector.extract_strided_slice %594 {offsets = [0, 0], sizes = [8, 8], strides = [1, 1]} : vector<8x32xf32> to vector<8x8xf32>
    %604 = vector.extract_strided_slice %600 {offsets = [0, 0], sizes = [8, 8], strides = [1, 1]} : vector<8x32xf32> to vector<8x8xf32>
    %605 = vector.extract_strided_slice %601 {offsets = [0, 0], sizes = [8, 8], strides = [1, 1]} : vector<8x32xf32> to vector<8x8xf32>
    %cst_271 = arith.constant dense<0.000000e+00> : vector<8x8xf32>
    %606 = tpu.matmul %603, %604, %cst_271 {dimension_numbers = #tpu.dot_dimension_numbers<[1], [1], [0], [0], [0, 0, 1, 0], [], []>} : vector<8x8xf32>, vector<8x8xf32>, vector<8x8xf32> -> vector<8x8xf32>
    %cst_272 = arith.constant 0.353553385 : f32
    %607 = vector.broadcast %cst_272 : f32 to vector<8x8xf32>
    %608 = arith.mulf %606, %607 : vector<8x8xf32>
    %cst_273 = arith.constant 0.000000e+00 : f32
    %609 = vector.broadcast %cst_273 : f32 to vector<8x8xf32>
    %610 = arith.cmpf oeq, %409, %609 : vector<8x8xf32>
    %cst_274 = arith.constant -1.000000e+09 : f32
    %611 = vector.broadcast %cst_274 : f32 to vector<8x8xf32>
    %612 = arith.select %610, %611, %608 : vector<8x8xi1>, vector<8x8xf32>
    %cst_275 = arith.constant dense<0xFF800000> : vector<8xf32>
    %613 = vector.multi_reduction <maximumf>, %612, %cst_275 [1] : vector<8x8xf32> to vector<8xf32>
    %614 = vector.shape_cast %613 : vector<8xf32> to vector<8x1xf32>
    %615 = vector.broadcast %614 : vector<8x1xf32> to vector<8x8xf32>
    %616 = arith.subf %612, %615 : vector<8x8xf32>
    %617 = math.exp %616 : vector<8x8xf32>
    %cst_276 = arith.constant dense<0.000000e+00> : vector<8xf32>
    %618 = vector.multi_reduction <add>, %617, %cst_276 [1] : vector<8x8xf32> to vector<8xf32>
    %619 = vector.shape_cast %618 : vector<8xf32> to vector<8x1xf32>
    %620 = tpu.reciprocal %619 {approx = true} : vector<8x1xf32> -> vector<8x1xf32>
    %621 = vector.broadcast %620 : vector<8x1xf32> to vector<8x8xf32>
    %622 = arith.mulf %617, %621 : vector<8x8xf32>
    %cst_277 = arith.constant dense<0.000000e+00> : vector<8x8xf32>
    %623 = tpu.matmul %622, %605, %cst_277 {dimension_numbers = #tpu.dot_dimension_numbers<[1], [0], [0], [1], [0, 0, 1, 1], [], []>} : vector<8x8xf32>, vector<8x8xf32>, vector<8x8xf32> -> vector<8x8xf32>
    %624 = vector.extract_strided_slice %587 {offsets = [0, 0], sizes = [8, 32], strides = [1, 1]} : vector<32x32xf32> to vector<8x32xf32>
    %cst_278 = arith.constant dense<0.000000e+00> : vector<8x32xf32>
    %625 = tpu.matmul %623, %624, %cst_278 {dimension_numbers = #tpu.dot_dimension_numbers<[1], [0], [0], [1], [0, 0, 1, 1], [], []>} : vector<8x8xf32>, vector<8x32xf32>, vector<8x32xf32> -> vector<8x32xf32>
    %626 = arith.addf %602, %625 : vector<8x32xf32>
    %627 = vector.extract_strided_slice %594 {offsets = [0, 8], sizes = [8, 8], strides = [1, 1]} : vector<8x32xf32> to vector<8x8xf32>
    %628 = vector.extract_strided_slice %600 {offsets = [0, 8], sizes = [8, 8], strides = [1, 1]} : vector<8x32xf32> to vector<8x8xf32>
    %629 = vector.extract_strided_slice %601 {offsets = [0, 8], sizes = [8, 8], strides = [1, 1]} : vector<8x32xf32> to vector<8x8xf32>
    %cst_279 = arith.constant dense<0.000000e+00> : vector<8x8xf32>
    %630 = tpu.matmul %627, %628, %cst_279 {dimension_numbers = #tpu.dot_dimension_numbers<[1], [1], [0], [0], [0, 0, 1, 0], [], []>} : vector<8x8xf32>, vector<8x8xf32>, vector<8x8xf32> -> vector<8x8xf32>
    %cst_280 = arith.constant 0.353553385 : f32
    %631 = vector.broadcast %cst_280 : f32 to vector<8x8xf32>
    %632 = arith.mulf %630, %631 : vector<8x8xf32>
    %cst_281 = arith.constant 0.000000e+00 : f32
    %633 = vector.broadcast %cst_281 : f32 to vector<8x8xf32>
    %634 = arith.cmpf oeq, %409, %633 : vector<8x8xf32>
    %cst_282 = arith.constant -1.000000e+09 : f32
    %635 = vector.broadcast %cst_282 : f32 to vector<8x8xf32>
    %636 = arith.select %634, %635, %632 : vector<8x8xi1>, vector<8x8xf32>
    %cst_283 = arith.constant dense<0xFF800000> : vector<8xf32>
    %637 = vector.multi_reduction <maximumf>, %636, %cst_283 [1] : vector<8x8xf32> to vector<8xf32>
    %638 = vector.shape_cast %637 : vector<8xf32> to vector<8x1xf32>
    %639 = vector.broadcast %638 : vector<8x1xf32> to vector<8x8xf32>
    %640 = arith.subf %636, %639 : vector<8x8xf32>
    %641 = math.exp %640 : vector<8x8xf32>
    %cst_284 = arith.constant dense<0.000000e+00> : vector<8xf32>
    %642 = vector.multi_reduction <add>, %641, %cst_284 [1] : vector<8x8xf32> to vector<8xf32>
    %643 = vector.shape_cast %642 : vector<8xf32> to vector<8x1xf32>
    %644 = tpu.reciprocal %643 {approx = true} : vector<8x1xf32> -> vector<8x1xf32>
    %645 = vector.broadcast %644 : vector<8x1xf32> to vector<8x8xf32>
    %646 = arith.mulf %641, %645 : vector<8x8xf32>
    %cst_285 = arith.constant dense<0.000000e+00> : vector<8x8xf32>
    %647 = tpu.matmul %646, %629, %cst_285 {dimension_numbers = #tpu.dot_dimension_numbers<[1], [0], [0], [1], [0, 0, 1, 1], [], []>} : vector<8x8xf32>, vector<8x8xf32>, vector<8x8xf32> -> vector<8x8xf32>
    %648 = vector.extract_strided_slice %587 {offsets = [8, 0], sizes = [8, 32], strides = [1, 1]} : vector<32x32xf32> to vector<8x32xf32>
    %cst_286 = arith.constant dense<0.000000e+00> : vector<8x32xf32>
    %649 = tpu.matmul %647, %648, %cst_286 {dimension_numbers = #tpu.dot_dimension_numbers<[1], [0], [0], [1], [0, 0, 1, 1], [], []>} : vector<8x8xf32>, vector<8x32xf32>, vector<8x32xf32> -> vector<8x32xf32>
    %650 = arith.addf %626, %649 : vector<8x32xf32>
    %651 = vector.extract_strided_slice %594 {offsets = [0, 16], sizes = [8, 8], strides = [1, 1]} : vector<8x32xf32> to vector<8x8xf32>
    %652 = vector.extract_strided_slice %600 {offsets = [0, 16], sizes = [8, 8], strides = [1, 1]} : vector<8x32xf32> to vector<8x8xf32>
    %653 = vector.extract_strided_slice %601 {offsets = [0, 16], sizes = [8, 8], strides = [1, 1]} : vector<8x32xf32> to vector<8x8xf32>
    %cst_287 = arith.constant dense<0.000000e+00> : vector<8x8xf32>
    %654 = tpu.matmul %651, %652, %cst_287 {dimension_numbers = #tpu.dot_dimension_numbers<[1], [1], [0], [0], [0, 0, 1, 0], [], []>} : vector<8x8xf32>, vector<8x8xf32>, vector<8x8xf32> -> vector<8x8xf32>
    %cst_288 = arith.constant 0.353553385 : f32
    %655 = vector.broadcast %cst_288 : f32 to vector<8x8xf32>
    %656 = arith.mulf %654, %655 : vector<8x8xf32>
    %cst_289 = arith.constant 0.000000e+00 : f32
    %657 = vector.broadcast %cst_289 : f32 to vector<8x8xf32>
    %658 = arith.cmpf oeq, %409, %657 : vector<8x8xf32>
    %cst_290 = arith.constant -1.000000e+09 : f32
    %659 = vector.broadcast %cst_290 : f32 to vector<8x8xf32>
    %660 = arith.select %658, %659, %656 : vector<8x8xi1>, vector<8x8xf32>
    %cst_291 = arith.constant dense<0xFF800000> : vector<8xf32>
    %661 = vector.multi_reduction <maximumf>, %660, %cst_291 [1] : vector<8x8xf32> to vector<8xf32>
    %662 = vector.shape_cast %661 : vector<8xf32> to vector<8x1xf32>
    %663 = vector.broadcast %662 : vector<8x1xf32> to vector<8x8xf32>
    %664 = arith.subf %660, %663 : vector<8x8xf32>
    %665 = math.exp %664 : vector<8x8xf32>
    %cst_292 = arith.constant dense<0.000000e+00> : vector<8xf32>
    %666 = vector.multi_reduction <add>, %665, %cst_292 [1] : vector<8x8xf32> to vector<8xf32>
    %667 = vector.shape_cast %666 : vector<8xf32> to vector<8x1xf32>
    %668 = tpu.reciprocal %667 {approx = true} : vector<8x1xf32> -> vector<8x1xf32>
    %669 = vector.broadcast %668 : vector<8x1xf32> to vector<8x8xf32>
    %670 = arith.mulf %665, %669 : vector<8x8xf32>
    %cst_293 = arith.constant dense<0.000000e+00> : vector<8x8xf32>
    %671 = tpu.matmul %670, %653, %cst_293 {dimension_numbers = #tpu.dot_dimension_numbers<[1], [0], [0], [1], [0, 0, 1, 1], [], []>} : vector<8x8xf32>, vector<8x8xf32>, vector<8x8xf32> -> vector<8x8xf32>
    %672 = vector.extract_strided_slice %587 {offsets = [16, 0], sizes = [8, 32], strides = [1, 1]} : vector<32x32xf32> to vector<8x32xf32>
    %cst_294 = arith.constant dense<0.000000e+00> : vector<8x32xf32>
    %673 = tpu.matmul %671, %672, %cst_294 {dimension_numbers = #tpu.dot_dimension_numbers<[1], [0], [0], [1], [0, 0, 1, 1], [], []>} : vector<8x8xf32>, vector<8x32xf32>, vector<8x32xf32> -> vector<8x32xf32>
    %674 = arith.addf %650, %673 : vector<8x32xf32>
    %675 = vector.extract_strided_slice %594 {offsets = [0, 24], sizes = [8, 8], strides = [1, 1]} : vector<8x32xf32> to vector<8x8xf32>
    %676 = vector.extract_strided_slice %600 {offsets = [0, 24], sizes = [8, 8], strides = [1, 1]} : vector<8x32xf32> to vector<8x8xf32>
    %677 = vector.extract_strided_slice %601 {offsets = [0, 24], sizes = [8, 8], strides = [1, 1]} : vector<8x32xf32> to vector<8x8xf32>
    %cst_295 = arith.constant dense<0.000000e+00> : vector<8x8xf32>
    %678 = tpu.matmul %675, %676, %cst_295 {dimension_numbers = #tpu.dot_dimension_numbers<[1], [1], [0], [0], [0, 0, 1, 0], [], []>} : vector<8x8xf32>, vector<8x8xf32>, vector<8x8xf32> -> vector<8x8xf32>
    %cst_296 = arith.constant 0.353553385 : f32
    %679 = vector.broadcast %cst_296 : f32 to vector<8x8xf32>
    %680 = arith.mulf %678, %679 : vector<8x8xf32>
    %cst_297 = arith.constant 0.000000e+00 : f32
    %681 = vector.broadcast %cst_297 : f32 to vector<8x8xf32>
    %682 = arith.cmpf oeq, %409, %681 : vector<8x8xf32>
    %cst_298 = arith.constant -1.000000e+09 : f32
    %683 = vector.broadcast %cst_298 : f32 to vector<8x8xf32>
    %684 = arith.select %682, %683, %680 : vector<8x8xi1>, vector<8x8xf32>
    %cst_299 = arith.constant dense<0xFF800000> : vector<8xf32>
    %685 = vector.multi_reduction <maximumf>, %684, %cst_299 [1] : vector<8x8xf32> to vector<8xf32>
    %686 = vector.shape_cast %685 : vector<8xf32> to vector<8x1xf32>
    %687 = vector.broadcast %686 : vector<8x1xf32> to vector<8x8xf32>
    %688 = arith.subf %684, %687 : vector<8x8xf32>
    %689 = math.exp %688 : vector<8x8xf32>
    %cst_300 = arith.constant dense<0.000000e+00> : vector<8xf32>
    %690 = vector.multi_reduction <add>, %689, %cst_300 [1] : vector<8x8xf32> to vector<8xf32>
    %691 = vector.shape_cast %690 : vector<8xf32> to vector<8x1xf32>
    %692 = tpu.reciprocal %691 {approx = true} : vector<8x1xf32> -> vector<8x1xf32>
    %693 = vector.broadcast %692 : vector<8x1xf32> to vector<8x8xf32>
    %694 = arith.mulf %689, %693 : vector<8x8xf32>
    %cst_301 = arith.constant dense<0.000000e+00> : vector<8x8xf32>
    %695 = tpu.matmul %694, %677, %cst_301 {dimension_numbers = #tpu.dot_dimension_numbers<[1], [0], [0], [1], [0, 0, 1, 1], [], []>} : vector<8x8xf32>, vector<8x8xf32>, vector<8x8xf32> -> vector<8x8xf32>
    %696 = vector.extract_strided_slice %587 {offsets = [24, 0], sizes = [8, 32], strides = [1, 1]} : vector<32x32xf32> to vector<8x32xf32>
    %cst_302 = arith.constant dense<0.000000e+00> : vector<8x32xf32>
    %697 = tpu.matmul %695, %696, %cst_302 {dimension_numbers = #tpu.dot_dimension_numbers<[1], [0], [0], [1], [0, 0, 1, 1], [], []>} : vector<8x8xf32>, vector<8x32xf32>, vector<8x32xf32> -> vector<8x32xf32>
    %698 = arith.addf %674, %697 : vector<8x32xf32>
    %699 = vector.broadcast %589 : vector<1x32xf32> to vector<8x32xf32>
    %700 = arith.addf %698, %699 : vector<8x32xf32>
    %701 = arith.addf %555, %700 : vector<8x32xf32>
    %c0_303 = arith.constant 0 : index
    %c0_304 = arith.constant 0 : index
    %c0_305 = arith.constant 0 : index
    %702 = vector.load %arg17[%c0_303, %c0_304, %c0_305] : memref<2x1x32xf32, #tpu.memory_space<vmem>>, vector<1x1x32xf32>
    %703 = vector.shape_cast %702 : vector<1x1x32xf32> to vector<1x32xf32>
    %c0_306 = arith.constant 0 : index
    %c0_307 = arith.constant 0 : index
    %c0_308 = arith.constant 0 : index
    %704 = vector.load %arg16[%c0_306, %c0_307, %c0_308] : memref<2x1x32xf32, #tpu.memory_space<vmem>>, vector<1x1x32xf32>
    %705 = vector.shape_cast %704 : vector<1x1x32xf32> to vector<1x32xf32>
    %cst_309 = arith.constant dense<0.000000e+00> : vector<8xf32>
    %706 = vector.multi_reduction <add>, %701, %cst_309 [1] : vector<8x32xf32> to vector<8xf32>
    %707 = vector.shape_cast %706 : vector<8xf32> to vector<8x1xf32>
    %cst_310 = arith.constant 3.200000e+01 : f32
    %708 = vector.broadcast %cst_310 : f32 to vector<8x1xf32>
    %709 = arith.divf %707, %708 : vector<8x1xf32>
    %710 = vector.broadcast %709 : vector<8x1xf32> to vector<8x32xf32>
    %711 = arith.subf %701, %710 : vector<8x32xf32>
    %712 = arith.mulf %711, %711 : vector<8x32xf32>
    %cst_311 = arith.constant dense<0.000000e+00> : vector<8xf32>
    %713 = vector.multi_reduction <add>, %712, %cst_311 [1] : vector<8x32xf32> to vector<8xf32>
    %714 = vector.shape_cast %713 : vector<8xf32> to vector<8x1xf32>
    %cst_312 = arith.constant 3.200000e+01 : f32
    %715 = vector.broadcast %cst_312 : f32 to vector<8x1xf32>
    %716 = arith.divf %714, %715 : vector<8x1xf32>
    %717 = vector.broadcast %709 : vector<8x1xf32> to vector<8x32xf32>
    %718 = arith.subf %701, %717 : vector<8x32xf32>
    %cst_313 = arith.constant 9.99999997E-7 : f32
    %719 = vector.broadcast %cst_313 : f32 to vector<8x1xf32>
    %720 = arith.addf %716, %719 : vector<8x1xf32>
    %721 = math.rsqrt %720 : vector<8x1xf32>
    %722 = vector.broadcast %721 : vector<8x1xf32> to vector<8x32xf32>
    %723 = arith.mulf %718, %722 : vector<8x32xf32>
    %724 = vector.broadcast %703 : vector<1x32xf32> to vector<8x32xf32>
    %725 = arith.mulf %723, %724 : vector<8x32xf32>
    %726 = vector.broadcast %705 : vector<1x32xf32> to vector<8x32xf32>
    %727 = arith.addf %725, %726 : vector<8x32xf32>
    %c0_314 = arith.constant 0 : index
    %c0_315 = arith.constant 0 : index
    %c0_316 = arith.constant 0 : index
    %728 = vector.load %arg24[%c0_314, %c0_315, %c0_316] : memref<2x32x64xf32, #tpu.memory_space<vmem>>, vector<1x32x64xf32>
    %729 = vector.shape_cast %728 : vector<1x32x64xf32> to vector<32x64xf32>
    %c0_317 = arith.constant 0 : index
    %c0_318 = arith.constant 0 : index
    %c0_319 = arith.constant 0 : index
    %730 = vector.load %arg6[%c0_317, %c0_318, %c0_319] : memref<2x1x64xf32, #tpu.memory_space<vmem>>, vector<1x1x64xf32>
    %731 = vector.shape_cast %730 : vector<1x1x64xf32> to vector<1x64xf32>
    %c0_320 = arith.constant 0 : index
    %c0_321 = arith.constant 0 : index
    %c0_322 = arith.constant 0 : index
    %732 = vector.load %arg25[%c0_320, %c0_321, %c0_322] : memref<2x64x32xf32, #tpu.memory_space<vmem>>, vector<1x64x32xf32>
    %733 = vector.shape_cast %732 : vector<1x64x32xf32> to vector<64x32xf32>
    %c0_323 = arith.constant 0 : index
    %c0_324 = arith.constant 0 : index
    %c0_325 = arith.constant 0 : index
    %734 = vector.load %arg7[%c0_323, %c0_324, %c0_325] : memref<2x1x32xf32, #tpu.memory_space<vmem>>, vector<1x1x32xf32>
    %735 = vector.shape_cast %734 : vector<1x1x32xf32> to vector<1x32xf32>
    %cst_326 = arith.constant dense<0.000000e+00> : vector<8x64xf32>
    %736 = tpu.matmul %727, %729, %cst_326 {dimension_numbers = #tpu.dot_dimension_numbers<[1], [0], [0], [1], [0, 0, 1, 1], [], []>} : vector<8x32xf32>, vector<32x64xf32>, vector<8x64xf32> -> vector<8x64xf32>
    %737 = vector.broadcast %731 : vector<1x64xf32> to vector<8x64xf32>
    %738 = arith.addf %736, %737 : vector<8x64xf32>
    %cst_327 = arith.constant 0.000000e+00 : f32
    %739 = vector.broadcast %cst_327 : f32 to vector<8x64xf32>
    %740 = arith.maximumf %738, %739 : vector<8x64xf32>
    %cst_328 = arith.constant dense<0.000000e+00> : vector<8x32xf32>
    %741 = tpu.matmul %740, %733, %cst_328 {dimension_numbers = #tpu.dot_dimension_numbers<[1], [0], [0], [1], [0, 0, 1, 1], [], []>} : vector<8x64xf32>, vector<64x32xf32>, vector<8x32xf32> -> vector<8x32xf32>
    %742 = vector.broadcast %735 : vector<1x32xf32> to vector<8x32xf32>
    %743 = arith.addf %741, %742 : vector<8x32xf32>
    %744 = arith.addf %701, %743 : vector<8x32xf32>
    %c1_329 = arith.constant 1 : index
    %c0_330 = arith.constant 0 : index
    %c0_331 = arith.constant 0 : index
    %745 = vector.load %arg13[%c1_329, %c0_330, %c0_331] : memref<2x1x32xf32, #tpu.memory_space<vmem>>, vector<1x1x32xf32>
    %746 = vector.shape_cast %745 : vector<1x1x32xf32> to vector<1x32xf32>
    %c1_332 = arith.constant 1 : index
    %c0_333 = arith.constant 0 : index
    %c0_334 = arith.constant 0 : index
    %747 = vector.load %arg12[%c1_332, %c0_333, %c0_334] : memref<2x1x32xf32, #tpu.memory_space<vmem>>, vector<1x1x32xf32>
    %748 = vector.shape_cast %747 : vector<1x1x32xf32> to vector<1x32xf32>
    %cst_335 = arith.constant dense<0.000000e+00> : vector<8xf32>
    %749 = vector.multi_reduction <add>, %744, %cst_335 [1] : vector<8x32xf32> to vector<8xf32>
    %750 = vector.shape_cast %749 : vector<8xf32> to vector<8x1xf32>
    %cst_336 = arith.constant 3.200000e+01 : f32
    %751 = vector.broadcast %cst_336 : f32 to vector<8x1xf32>
    %752 = arith.divf %750, %751 : vector<8x1xf32>
    %753 = vector.broadcast %752 : vector<8x1xf32> to vector<8x32xf32>
    %754 = arith.subf %744, %753 : vector<8x32xf32>
    %755 = arith.mulf %754, %754 : vector<8x32xf32>
    %cst_337 = arith.constant dense<0.000000e+00> : vector<8xf32>
    %756 = vector.multi_reduction <add>, %755, %cst_337 [1] : vector<8x32xf32> to vector<8xf32>
    %757 = vector.shape_cast %756 : vector<8xf32> to vector<8x1xf32>
    %cst_338 = arith.constant 3.200000e+01 : f32
    %758 = vector.broadcast %cst_338 : f32 to vector<8x1xf32>
    %759 = arith.divf %757, %758 : vector<8x1xf32>
    %760 = vector.broadcast %752 : vector<8x1xf32> to vector<8x32xf32>
    %761 = arith.subf %744, %760 : vector<8x32xf32>
    %cst_339 = arith.constant 9.99999997E-7 : f32
    %762 = vector.broadcast %cst_339 : f32 to vector<8x1xf32>
    %763 = arith.addf %759, %762 : vector<8x1xf32>
    %764 = math.rsqrt %763 : vector<8x1xf32>
    %765 = vector.broadcast %764 : vector<8x1xf32> to vector<8x32xf32>
    %766 = arith.mulf %761, %765 : vector<8x32xf32>
    %767 = vector.broadcast %746 : vector<1x32xf32> to vector<8x32xf32>
    %768 = arith.mulf %766, %767 : vector<8x32xf32>
    %769 = vector.broadcast %748 : vector<1x32xf32> to vector<8x32xf32>
    %770 = arith.addf %768, %769 : vector<8x32xf32>
    %c1_340 = arith.constant 1 : index
    %c0_341 = arith.constant 0 : index
    %c0_342 = arith.constant 0 : index
    %771 = vector.load %arg23[%c1_340, %c0_341, %c0_342] : memref<2x32x96xf32, #tpu.memory_space<vmem>>, vector<1x32x96xf32>
    %772 = vector.shape_cast %771 : vector<1x32x96xf32> to vector<32x96xf32>
    %c1_343 = arith.constant 1 : index
    %c0_344 = arith.constant 0 : index
    %c0_345 = arith.constant 0 : index
    %773 = vector.load %arg21[%c1_343, %c0_344, %c0_345] : memref<2x1x96xf32, #tpu.memory_space<vmem>>, vector<1x1x96xf32>
    %774 = vector.shape_cast %773 : vector<1x1x96xf32> to vector<1x96xf32>
    %c1_346 = arith.constant 1 : index
    %c0_347 = arith.constant 0 : index
    %c0_348 = arith.constant 0 : index
    %775 = vector.load %arg22[%c1_346, %c0_347, %c0_348] : memref<2x32x32xf32, #tpu.memory_space<vmem>>, vector<1x32x32xf32>
    %776 = vector.shape_cast %775 : vector<1x32x32xf32> to vector<32x32xf32>
    %c1_349 = arith.constant 1 : index
    %c0_350 = arith.constant 0 : index
    %c0_351 = arith.constant 0 : index
    %777 = vector.load %arg20[%c1_349, %c0_350, %c0_351] : memref<2x1x32xf32, #tpu.memory_space<vmem>>, vector<1x1x32xf32>
    %778 = vector.shape_cast %777 : vector<1x1x32xf32> to vector<1x32xf32>
    %779 = vector.extract_strided_slice %772 {offsets = [0, 0], sizes = [32, 32], strides = [1, 1]} : vector<32x96xf32> to vector<32x32xf32>
    %cst_352 = arith.constant dense<0.000000e+00> : vector<8x32xf32>
    %780 = tpu.matmul %770, %779, %cst_352 {dimension_numbers = #tpu.dot_dimension_numbers<[1], [0], [0], [1], [0, 0, 1, 1], [], []>} : vector<8x32xf32>, vector<32x32xf32>, vector<8x32xf32> -> vector<8x32xf32>
    %781 = vector.extract_strided_slice %774 {offsets = [0, 0], sizes = [1, 32], strides = [1, 1]} : vector<1x96xf32> to vector<1x32xf32>
    %782 = vector.broadcast %781 : vector<1x32xf32> to vector<8x32xf32>
    %783 = arith.addf %780, %782 : vector<8x32xf32>
    %784 = vector.extract_strided_slice %772 {offsets = [0, 32], sizes = [32, 64], strides = [1, 1]} : vector<32x96xf32> to vector<32x64xf32>
    %cst_353 = arith.constant dense<0.000000e+00> : vector<8x64xf32>
    %785 = tpu.matmul %770, %784, %cst_353 {dimension_numbers = #tpu.dot_dimension_numbers<[1], [0], [0], [1], [0, 0, 1, 1], [], []>} : vector<8x32xf32>, vector<32x64xf32>, vector<8x64xf32> -> vector<8x64xf32>
    %786 = vector.extract_strided_slice %774 {offsets = [0, 32], sizes = [1, 64], strides = [1, 1]} : vector<1x96xf32> to vector<1x64xf32>
    %787 = vector.broadcast %786 : vector<1x64xf32> to vector<8x64xf32>
    %788 = arith.addf %785, %787 : vector<8x64xf32>
    %789 = vector.extract_strided_slice %788 {offsets = [0, 0], sizes = [8, 32], strides = [1, 1]} : vector<8x64xf32> to vector<8x32xf32>
    %790 = vector.extract_strided_slice %788 {offsets = [0, 32], sizes = [8, 32], strides = [1, 1]} : vector<8x64xf32> to vector<8x32xf32>
    %cst_354 = arith.constant 0.000000e+00 : f32
    %791 = vector.broadcast %cst_354 : f32 to vector<8x32xf32>
    %792 = vector.extract_strided_slice %783 {offsets = [0, 0], sizes = [8, 8], strides = [1, 1]} : vector<8x32xf32> to vector<8x8xf32>
    %793 = vector.extract_strided_slice %789 {offsets = [0, 0], sizes = [8, 8], strides = [1, 1]} : vector<8x32xf32> to vector<8x8xf32>
    %794 = vector.extract_strided_slice %790 {offsets = [0, 0], sizes = [8, 8], strides = [1, 1]} : vector<8x32xf32> to vector<8x8xf32>
    %cst_355 = arith.constant dense<0.000000e+00> : vector<8x8xf32>
    %795 = tpu.matmul %792, %793, %cst_355 {dimension_numbers = #tpu.dot_dimension_numbers<[1], [1], [0], [0], [0, 0, 1, 0], [], []>} : vector<8x8xf32>, vector<8x8xf32>, vector<8x8xf32> -> vector<8x8xf32>
    %cst_356 = arith.constant 0.353553385 : f32
    %796 = vector.broadcast %cst_356 : f32 to vector<8x8xf32>
    %797 = arith.mulf %795, %796 : vector<8x8xf32>
    %cst_357 = arith.constant 0.000000e+00 : f32
    %798 = vector.broadcast %cst_357 : f32 to vector<8x8xf32>
    %799 = arith.cmpf oeq, %407, %798 : vector<8x8xf32>
    %cst_358 = arith.constant -1.000000e+09 : f32
    %800 = vector.broadcast %cst_358 : f32 to vector<8x8xf32>
    %801 = arith.select %799, %800, %797 : vector<8x8xi1>, vector<8x8xf32>
    %cst_359 = arith.constant dense<0xFF800000> : vector<8xf32>
    %802 = vector.multi_reduction <maximumf>, %801, %cst_359 [1] : vector<8x8xf32> to vector<8xf32>
    %803 = vector.shape_cast %802 : vector<8xf32> to vector<8x1xf32>
    %804 = vector.broadcast %803 : vector<8x1xf32> to vector<8x8xf32>
    %805 = arith.subf %801, %804 : vector<8x8xf32>
    %806 = math.exp %805 : vector<8x8xf32>
    %cst_360 = arith.constant dense<0.000000e+00> : vector<8xf32>
    %807 = vector.multi_reduction <add>, %806, %cst_360 [1] : vector<8x8xf32> to vector<8xf32>
    %808 = vector.shape_cast %807 : vector<8xf32> to vector<8x1xf32>
    %809 = tpu.reciprocal %808 {approx = true} : vector<8x1xf32> -> vector<8x1xf32>
    %810 = vector.broadcast %809 : vector<8x1xf32> to vector<8x8xf32>
    %811 = arith.mulf %806, %810 : vector<8x8xf32>
    %cst_361 = arith.constant dense<0.000000e+00> : vector<8x8xf32>
    %812 = tpu.matmul %811, %794, %cst_361 {dimension_numbers = #tpu.dot_dimension_numbers<[1], [0], [0], [1], [0, 0, 1, 1], [], []>} : vector<8x8xf32>, vector<8x8xf32>, vector<8x8xf32> -> vector<8x8xf32>
    %813 = vector.extract_strided_slice %776 {offsets = [0, 0], sizes = [8, 32], strides = [1, 1]} : vector<32x32xf32> to vector<8x32xf32>
    %cst_362 = arith.constant dense<0.000000e+00> : vector<8x32xf32>
    %814 = tpu.matmul %812, %813, %cst_362 {dimension_numbers = #tpu.dot_dimension_numbers<[1], [0], [0], [1], [0, 0, 1, 1], [], []>} : vector<8x8xf32>, vector<8x32xf32>, vector<8x32xf32> -> vector<8x32xf32>
    %815 = arith.addf %791, %814 : vector<8x32xf32>
    %816 = vector.extract_strided_slice %783 {offsets = [0, 8], sizes = [8, 8], strides = [1, 1]} : vector<8x32xf32> to vector<8x8xf32>
    %817 = vector.extract_strided_slice %789 {offsets = [0, 8], sizes = [8, 8], strides = [1, 1]} : vector<8x32xf32> to vector<8x8xf32>
    %818 = vector.extract_strided_slice %790 {offsets = [0, 8], sizes = [8, 8], strides = [1, 1]} : vector<8x32xf32> to vector<8x8xf32>
    %cst_363 = arith.constant dense<0.000000e+00> : vector<8x8xf32>
    %819 = tpu.matmul %816, %817, %cst_363 {dimension_numbers = #tpu.dot_dimension_numbers<[1], [1], [0], [0], [0, 0, 1, 0], [], []>} : vector<8x8xf32>, vector<8x8xf32>, vector<8x8xf32> -> vector<8x8xf32>
    %cst_364 = arith.constant 0.353553385 : f32
    %820 = vector.broadcast %cst_364 : f32 to vector<8x8xf32>
    %821 = arith.mulf %819, %820 : vector<8x8xf32>
    %cst_365 = arith.constant 0.000000e+00 : f32
    %822 = vector.broadcast %cst_365 : f32 to vector<8x8xf32>
    %823 = arith.cmpf oeq, %407, %822 : vector<8x8xf32>
    %cst_366 = arith.constant -1.000000e+09 : f32
    %824 = vector.broadcast %cst_366 : f32 to vector<8x8xf32>
    %825 = arith.select %823, %824, %821 : vector<8x8xi1>, vector<8x8xf32>
    %cst_367 = arith.constant dense<0xFF800000> : vector<8xf32>
    %826 = vector.multi_reduction <maximumf>, %825, %cst_367 [1] : vector<8x8xf32> to vector<8xf32>
    %827 = vector.shape_cast %826 : vector<8xf32> to vector<8x1xf32>
    %828 = vector.broadcast %827 : vector<8x1xf32> to vector<8x8xf32>
    %829 = arith.subf %825, %828 : vector<8x8xf32>
    %830 = math.exp %829 : vector<8x8xf32>
    %cst_368 = arith.constant dense<0.000000e+00> : vector<8xf32>
    %831 = vector.multi_reduction <add>, %830, %cst_368 [1] : vector<8x8xf32> to vector<8xf32>
    %832 = vector.shape_cast %831 : vector<8xf32> to vector<8x1xf32>
    %833 = tpu.reciprocal %832 {approx = true} : vector<8x1xf32> -> vector<8x1xf32>
    %834 = vector.broadcast %833 : vector<8x1xf32> to vector<8x8xf32>
    %835 = arith.mulf %830, %834 : vector<8x8xf32>
    %cst_369 = arith.constant dense<0.000000e+00> : vector<8x8xf32>
    %836 = tpu.matmul %835, %818, %cst_369 {dimension_numbers = #tpu.dot_dimension_numbers<[1], [0], [0], [1], [0, 0, 1, 1], [], []>} : vector<8x8xf32>, vector<8x8xf32>, vector<8x8xf32> -> vector<8x8xf32>
    %837 = vector.extract_strided_slice %776 {offsets = [8, 0], sizes = [8, 32], strides = [1, 1]} : vector<32x32xf32> to vector<8x32xf32>
    %cst_370 = arith.constant dense<0.000000e+00> : vector<8x32xf32>
    %838 = tpu.matmul %836, %837, %cst_370 {dimension_numbers = #tpu.dot_dimension_numbers<[1], [0], [0], [1], [0, 0, 1, 1], [], []>} : vector<8x8xf32>, vector<8x32xf32>, vector<8x32xf32> -> vector<8x32xf32>
    %839 = arith.addf %815, %838 : vector<8x32xf32>
    %840 = vector.extract_strided_slice %783 {offsets = [0, 16], sizes = [8, 8], strides = [1, 1]} : vector<8x32xf32> to vector<8x8xf32>
    %841 = vector.extract_strided_slice %789 {offsets = [0, 16], sizes = [8, 8], strides = [1, 1]} : vector<8x32xf32> to vector<8x8xf32>
    %842 = vector.extract_strided_slice %790 {offsets = [0, 16], sizes = [8, 8], strides = [1, 1]} : vector<8x32xf32> to vector<8x8xf32>
    %cst_371 = arith.constant dense<0.000000e+00> : vector<8x8xf32>
    %843 = tpu.matmul %840, %841, %cst_371 {dimension_numbers = #tpu.dot_dimension_numbers<[1], [1], [0], [0], [0, 0, 1, 0], [], []>} : vector<8x8xf32>, vector<8x8xf32>, vector<8x8xf32> -> vector<8x8xf32>
    %cst_372 = arith.constant 0.353553385 : f32
    %844 = vector.broadcast %cst_372 : f32 to vector<8x8xf32>
    %845 = arith.mulf %843, %844 : vector<8x8xf32>
    %cst_373 = arith.constant 0.000000e+00 : f32
    %846 = vector.broadcast %cst_373 : f32 to vector<8x8xf32>
    %847 = arith.cmpf oeq, %407, %846 : vector<8x8xf32>
    %cst_374 = arith.constant -1.000000e+09 : f32
    %848 = vector.broadcast %cst_374 : f32 to vector<8x8xf32>
    %849 = arith.select %847, %848, %845 : vector<8x8xi1>, vector<8x8xf32>
    %cst_375 = arith.constant dense<0xFF800000> : vector<8xf32>
    %850 = vector.multi_reduction <maximumf>, %849, %cst_375 [1] : vector<8x8xf32> to vector<8xf32>
    %851 = vector.shape_cast %850 : vector<8xf32> to vector<8x1xf32>
    %852 = vector.broadcast %851 : vector<8x1xf32> to vector<8x8xf32>
    %853 = arith.subf %849, %852 : vector<8x8xf32>
    %854 = math.exp %853 : vector<8x8xf32>
    %cst_376 = arith.constant dense<0.000000e+00> : vector<8xf32>
    %855 = vector.multi_reduction <add>, %854, %cst_376 [1] : vector<8x8xf32> to vector<8xf32>
    %856 = vector.shape_cast %855 : vector<8xf32> to vector<8x1xf32>
    %857 = tpu.reciprocal %856 {approx = true} : vector<8x1xf32> -> vector<8x1xf32>
    %858 = vector.broadcast %857 : vector<8x1xf32> to vector<8x8xf32>
    %859 = arith.mulf %854, %858 : vector<8x8xf32>
    %cst_377 = arith.constant dense<0.000000e+00> : vector<8x8xf32>
    %860 = tpu.matmul %859, %842, %cst_377 {dimension_numbers = #tpu.dot_dimension_numbers<[1], [0], [0], [1], [0, 0, 1, 1], [], []>} : vector<8x8xf32>, vector<8x8xf32>, vector<8x8xf32> -> vector<8x8xf32>
    %861 = vector.extract_strided_slice %776 {offsets = [16, 0], sizes = [8, 32], strides = [1, 1]} : vector<32x32xf32> to vector<8x32xf32>
    %cst_378 = arith.constant dense<0.000000e+00> : vector<8x32xf32>
    %862 = tpu.matmul %860, %861, %cst_378 {dimension_numbers = #tpu.dot_dimension_numbers<[1], [0], [0], [1], [0, 0, 1, 1], [], []>} : vector<8x8xf32>, vector<8x32xf32>, vector<8x32xf32> -> vector<8x32xf32>
    %863 = arith.addf %839, %862 : vector<8x32xf32>
    %864 = vector.extract_strided_slice %783 {offsets = [0, 24], sizes = [8, 8], strides = [1, 1]} : vector<8x32xf32> to vector<8x8xf32>
    %865 = vector.extract_strided_slice %789 {offsets = [0, 24], sizes = [8, 8], strides = [1, 1]} : vector<8x32xf32> to vector<8x8xf32>
    %866 = vector.extract_strided_slice %790 {offsets = [0, 24], sizes = [8, 8], strides = [1, 1]} : vector<8x32xf32> to vector<8x8xf32>
    %cst_379 = arith.constant dense<0.000000e+00> : vector<8x8xf32>
    %867 = tpu.matmul %864, %865, %cst_379 {dimension_numbers = #tpu.dot_dimension_numbers<[1], [1], [0], [0], [0, 0, 1, 0], [], []>} : vector<8x8xf32>, vector<8x8xf32>, vector<8x8xf32> -> vector<8x8xf32>
    %cst_380 = arith.constant 0.353553385 : f32
    %868 = vector.broadcast %cst_380 : f32 to vector<8x8xf32>
    %869 = arith.mulf %867, %868 : vector<8x8xf32>
    %cst_381 = arith.constant 0.000000e+00 : f32
    %870 = vector.broadcast %cst_381 : f32 to vector<8x8xf32>
    %871 = arith.cmpf oeq, %407, %870 : vector<8x8xf32>
    %cst_382 = arith.constant -1.000000e+09 : f32
    %872 = vector.broadcast %cst_382 : f32 to vector<8x8xf32>
    %873 = arith.select %871, %872, %869 : vector<8x8xi1>, vector<8x8xf32>
    %cst_383 = arith.constant dense<0xFF800000> : vector<8xf32>
    %874 = vector.multi_reduction <maximumf>, %873, %cst_383 [1] : vector<8x8xf32> to vector<8xf32>
    %875 = vector.shape_cast %874 : vector<8xf32> to vector<8x1xf32>
    %876 = vector.broadcast %875 : vector<8x1xf32> to vector<8x8xf32>
    %877 = arith.subf %873, %876 : vector<8x8xf32>
    %878 = math.exp %877 : vector<8x8xf32>
    %cst_384 = arith.constant dense<0.000000e+00> : vector<8xf32>
    %879 = vector.multi_reduction <add>, %878, %cst_384 [1] : vector<8x8xf32> to vector<8xf32>
    %880 = vector.shape_cast %879 : vector<8xf32> to vector<8x1xf32>
    %881 = tpu.reciprocal %880 {approx = true} : vector<8x1xf32> -> vector<8x1xf32>
    %882 = vector.broadcast %881 : vector<8x1xf32> to vector<8x8xf32>
    %883 = arith.mulf %878, %882 : vector<8x8xf32>
    %cst_385 = arith.constant dense<0.000000e+00> : vector<8x8xf32>
    %884 = tpu.matmul %883, %866, %cst_385 {dimension_numbers = #tpu.dot_dimension_numbers<[1], [0], [0], [1], [0, 0, 1, 1], [], []>} : vector<8x8xf32>, vector<8x8xf32>, vector<8x8xf32> -> vector<8x8xf32>
    %885 = vector.extract_strided_slice %776 {offsets = [24, 0], sizes = [8, 32], strides = [1, 1]} : vector<32x32xf32> to vector<8x32xf32>
    %cst_386 = arith.constant dense<0.000000e+00> : vector<8x32xf32>
    %886 = tpu.matmul %884, %885, %cst_386 {dimension_numbers = #tpu.dot_dimension_numbers<[1], [0], [0], [1], [0, 0, 1, 1], [], []>} : vector<8x8xf32>, vector<8x32xf32>, vector<8x32xf32> -> vector<8x32xf32>
    %887 = arith.addf %863, %886 : vector<8x32xf32>
    %888 = vector.broadcast %778 : vector<1x32xf32> to vector<8x32xf32>
    %889 = arith.addf %887, %888 : vector<8x32xf32>
    %890 = arith.addf %744, %889 : vector<8x32xf32>
    %c1_387 = arith.constant 1 : index
    %c0_388 = arith.constant 0 : index
    %c0_389 = arith.constant 0 : index
    %891 = vector.load %arg15[%c1_387, %c0_388, %c0_389] : memref<2x1x32xf32, #tpu.memory_space<vmem>>, vector<1x1x32xf32>
    %892 = vector.shape_cast %891 : vector<1x1x32xf32> to vector<1x32xf32>
    %c1_390 = arith.constant 1 : index
    %c0_391 = arith.constant 0 : index
    %c0_392 = arith.constant 0 : index
    %893 = vector.load %arg14[%c1_390, %c0_391, %c0_392] : memref<2x1x32xf32, #tpu.memory_space<vmem>>, vector<1x1x32xf32>
    %894 = vector.shape_cast %893 : vector<1x1x32xf32> to vector<1x32xf32>
    %cst_393 = arith.constant dense<0.000000e+00> : vector<8xf32>
    %895 = vector.multi_reduction <add>, %890, %cst_393 [1] : vector<8x32xf32> to vector<8xf32>
    %896 = vector.shape_cast %895 : vector<8xf32> to vector<8x1xf32>
    %cst_394 = arith.constant 3.200000e+01 : f32
    %897 = vector.broadcast %cst_394 : f32 to vector<8x1xf32>
    %898 = arith.divf %896, %897 : vector<8x1xf32>
    %899 = vector.broadcast %898 : vector<8x1xf32> to vector<8x32xf32>
    %900 = arith.subf %890, %899 : vector<8x32xf32>
    %901 = arith.mulf %900, %900 : vector<8x32xf32>
    %cst_395 = arith.constant dense<0.000000e+00> : vector<8xf32>
    %902 = vector.multi_reduction <add>, %901, %cst_395 [1] : vector<8x32xf32> to vector<8xf32>
    %903 = vector.shape_cast %902 : vector<8xf32> to vector<8x1xf32>
    %cst_396 = arith.constant 3.200000e+01 : f32
    %904 = vector.broadcast %cst_396 : f32 to vector<8x1xf32>
    %905 = arith.divf %903, %904 : vector<8x1xf32>
    %906 = vector.broadcast %898 : vector<8x1xf32> to vector<8x32xf32>
    %907 = arith.subf %890, %906 : vector<8x32xf32>
    %cst_397 = arith.constant 9.99999997E-7 : f32
    %908 = vector.broadcast %cst_397 : f32 to vector<8x1xf32>
    %909 = arith.addf %905, %908 : vector<8x1xf32>
    %910 = math.rsqrt %909 : vector<8x1xf32>
    %911 = vector.broadcast %910 : vector<8x1xf32> to vector<8x32xf32>
    %912 = arith.mulf %907, %911 : vector<8x32xf32>
    %913 = vector.broadcast %892 : vector<1x32xf32> to vector<8x32xf32>
    %914 = arith.mulf %912, %913 : vector<8x32xf32>
    %915 = vector.broadcast %894 : vector<1x32xf32> to vector<8x32xf32>
    %916 = arith.addf %914, %915 : vector<8x32xf32>
    %c1_398 = arith.constant 1 : index
    %c0_399 = arith.constant 0 : index
    %c0_400 = arith.constant 0 : index
    %917 = vector.load %arg11[%c1_398, %c0_399, %c0_400] : memref<2x32x96xf32, #tpu.memory_space<vmem>>, vector<1x32x96xf32>
    %918 = vector.shape_cast %917 : vector<1x32x96xf32> to vector<32x96xf32>
    %c1_401 = arith.constant 1 : index
    %c0_402 = arith.constant 0 : index
    %c0_403 = arith.constant 0 : index
    %919 = vector.load %arg9[%c1_401, %c0_402, %c0_403] : memref<2x1x96xf32, #tpu.memory_space<vmem>>, vector<1x1x96xf32>
    %920 = vector.shape_cast %919 : vector<1x1x96xf32> to vector<1x96xf32>
    %c1_404 = arith.constant 1 : index
    %c0_405 = arith.constant 0 : index
    %c0_406 = arith.constant 0 : index
    %921 = vector.load %arg10[%c1_404, %c0_405, %c0_406] : memref<2x32x32xf32, #tpu.memory_space<vmem>>, vector<1x32x32xf32>
    %922 = vector.shape_cast %921 : vector<1x32x32xf32> to vector<32x32xf32>
    %c1_407 = arith.constant 1 : index
    %c0_408 = arith.constant 0 : index
    %c0_409 = arith.constant 0 : index
    %923 = vector.load %arg8[%c1_407, %c0_408, %c0_409] : memref<2x1x32xf32, #tpu.memory_space<vmem>>, vector<1x1x32xf32>
    %924 = vector.shape_cast %923 : vector<1x1x32xf32> to vector<1x32xf32>
    %925 = vector.extract_strided_slice %918 {offsets = [0, 0], sizes = [32, 32], strides = [1, 1]} : vector<32x96xf32> to vector<32x32xf32>
    %cst_410 = arith.constant dense<0.000000e+00> : vector<8x32xf32>
    %926 = tpu.matmul %916, %925, %cst_410 {dimension_numbers = #tpu.dot_dimension_numbers<[1], [0], [0], [1], [0, 0, 1, 1], [], []>} : vector<8x32xf32>, vector<32x32xf32>, vector<8x32xf32> -> vector<8x32xf32>
    %927 = vector.extract_strided_slice %920 {offsets = [0, 0], sizes = [1, 32], strides = [1, 1]} : vector<1x96xf32> to vector<1x32xf32>
    %928 = vector.broadcast %927 : vector<1x32xf32> to vector<8x32xf32>
    %929 = arith.addf %926, %928 : vector<8x32xf32>
    %930 = vector.extract_strided_slice %918 {offsets = [0, 32], sizes = [32, 64], strides = [1, 1]} : vector<32x96xf32> to vector<32x64xf32>
    %cst_411 = arith.constant dense<0.000000e+00> : vector<8x64xf32>
    %931 = tpu.matmul %404, %930, %cst_411 {dimension_numbers = #tpu.dot_dimension_numbers<[1], [0], [0], [1], [0, 0, 1, 1], [], []>} : vector<8x32xf32>, vector<32x64xf32>, vector<8x64xf32> -> vector<8x64xf32>
    %932 = vector.extract_strided_slice %920 {offsets = [0, 32], sizes = [1, 64], strides = [1, 1]} : vector<1x96xf32> to vector<1x64xf32>
    %933 = vector.broadcast %932 : vector<1x64xf32> to vector<8x64xf32>
    %934 = arith.addf %931, %933 : vector<8x64xf32>
    %935 = vector.extract_strided_slice %934 {offsets = [0, 0], sizes = [8, 32], strides = [1, 1]} : vector<8x64xf32> to vector<8x32xf32>
    %936 = vector.extract_strided_slice %934 {offsets = [0, 32], sizes = [8, 32], strides = [1, 1]} : vector<8x64xf32> to vector<8x32xf32>
    %cst_412 = arith.constant 0.000000e+00 : f32
    %937 = vector.broadcast %cst_412 : f32 to vector<8x32xf32>
    %938 = vector.extract_strided_slice %929 {offsets = [0, 0], sizes = [8, 8], strides = [1, 1]} : vector<8x32xf32> to vector<8x8xf32>
    %939 = vector.extract_strided_slice %935 {offsets = [0, 0], sizes = [8, 8], strides = [1, 1]} : vector<8x32xf32> to vector<8x8xf32>
    %940 = vector.extract_strided_slice %936 {offsets = [0, 0], sizes = [8, 8], strides = [1, 1]} : vector<8x32xf32> to vector<8x8xf32>
    %cst_413 = arith.constant dense<0.000000e+00> : vector<8x8xf32>
    %941 = tpu.matmul %938, %939, %cst_413 {dimension_numbers = #tpu.dot_dimension_numbers<[1], [1], [0], [0], [0, 0, 1, 0], [], []>} : vector<8x8xf32>, vector<8x8xf32>, vector<8x8xf32> -> vector<8x8xf32>
    %cst_414 = arith.constant 0.353553385 : f32
    %942 = vector.broadcast %cst_414 : f32 to vector<8x8xf32>
    %943 = arith.mulf %941, %942 : vector<8x8xf32>
    %cst_415 = arith.constant 0.000000e+00 : f32
    %944 = vector.broadcast %cst_415 : f32 to vector<8x8xf32>
    %945 = arith.cmpf oeq, %409, %944 : vector<8x8xf32>
    %cst_416 = arith.constant -1.000000e+09 : f32
    %946 = vector.broadcast %cst_416 : f32 to vector<8x8xf32>
    %947 = arith.select %945, %946, %943 : vector<8x8xi1>, vector<8x8xf32>
    %cst_417 = arith.constant dense<0xFF800000> : vector<8xf32>
    %948 = vector.multi_reduction <maximumf>, %947, %cst_417 [1] : vector<8x8xf32> to vector<8xf32>
    %949 = vector.shape_cast %948 : vector<8xf32> to vector<8x1xf32>
    %950 = vector.broadcast %949 : vector<8x1xf32> to vector<8x8xf32>
    %951 = arith.subf %947, %950 : vector<8x8xf32>
    %952 = math.exp %951 : vector<8x8xf32>
    %cst_418 = arith.constant dense<0.000000e+00> : vector<8xf32>
    %953 = vector.multi_reduction <add>, %952, %cst_418 [1] : vector<8x8xf32> to vector<8xf32>
    %954 = vector.shape_cast %953 : vector<8xf32> to vector<8x1xf32>
    %955 = tpu.reciprocal %954 {approx = true} : vector<8x1xf32> -> vector<8x1xf32>
    %956 = vector.broadcast %955 : vector<8x1xf32> to vector<8x8xf32>
    %957 = arith.mulf %952, %956 : vector<8x8xf32>
    %cst_419 = arith.constant dense<0.000000e+00> : vector<8x8xf32>
    %958 = tpu.matmul %957, %940, %cst_419 {dimension_numbers = #tpu.dot_dimension_numbers<[1], [0], [0], [1], [0, 0, 1, 1], [], []>} : vector<8x8xf32>, vector<8x8xf32>, vector<8x8xf32> -> vector<8x8xf32>
    %959 = vector.extract_strided_slice %922 {offsets = [0, 0], sizes = [8, 32], strides = [1, 1]} : vector<32x32xf32> to vector<8x32xf32>
    %cst_420 = arith.constant dense<0.000000e+00> : vector<8x32xf32>
    %960 = tpu.matmul %958, %959, %cst_420 {dimension_numbers = #tpu.dot_dimension_numbers<[1], [0], [0], [1], [0, 0, 1, 1], [], []>} : vector<8x8xf32>, vector<8x32xf32>, vector<8x32xf32> -> vector<8x32xf32>
    %961 = arith.addf %937, %960 : vector<8x32xf32>
    %962 = vector.extract_strided_slice %929 {offsets = [0, 8], sizes = [8, 8], strides = [1, 1]} : vector<8x32xf32> to vector<8x8xf32>
    %963 = vector.extract_strided_slice %935 {offsets = [0, 8], sizes = [8, 8], strides = [1, 1]} : vector<8x32xf32> to vector<8x8xf32>
    %964 = vector.extract_strided_slice %936 {offsets = [0, 8], sizes = [8, 8], strides = [1, 1]} : vector<8x32xf32> to vector<8x8xf32>
    %cst_421 = arith.constant dense<0.000000e+00> : vector<8x8xf32>
    %965 = tpu.matmul %962, %963, %cst_421 {dimension_numbers = #tpu.dot_dimension_numbers<[1], [1], [0], [0], [0, 0, 1, 0], [], []>} : vector<8x8xf32>, vector<8x8xf32>, vector<8x8xf32> -> vector<8x8xf32>
    %cst_422 = arith.constant 0.353553385 : f32
    %966 = vector.broadcast %cst_422 : f32 to vector<8x8xf32>
    %967 = arith.mulf %965, %966 : vector<8x8xf32>
    %cst_423 = arith.constant 0.000000e+00 : f32
    %968 = vector.broadcast %cst_423 : f32 to vector<8x8xf32>
    %969 = arith.cmpf oeq, %409, %968 : vector<8x8xf32>
    %cst_424 = arith.constant -1.000000e+09 : f32
    %970 = vector.broadcast %cst_424 : f32 to vector<8x8xf32>
    %971 = arith.select %969, %970, %967 : vector<8x8xi1>, vector<8x8xf32>
    %cst_425 = arith.constant dense<0xFF800000> : vector<8xf32>
    %972 = vector.multi_reduction <maximumf>, %971, %cst_425 [1] : vector<8x8xf32> to vector<8xf32>
    %973 = vector.shape_cast %972 : vector<8xf32> to vector<8x1xf32>
    %974 = vector.broadcast %973 : vector<8x1xf32> to vector<8x8xf32>
    %975 = arith.subf %971, %974 : vector<8x8xf32>
    %976 = math.exp %975 : vector<8x8xf32>
    %cst_426 = arith.constant dense<0.000000e+00> : vector<8xf32>
    %977 = vector.multi_reduction <add>, %976, %cst_426 [1] : vector<8x8xf32> to vector<8xf32>
    %978 = vector.shape_cast %977 : vector<8xf32> to vector<8x1xf32>
    %979 = tpu.reciprocal %978 {approx = true} : vector<8x1xf32> -> vector<8x1xf32>
    %980 = vector.broadcast %979 : vector<8x1xf32> to vector<8x8xf32>
    %981 = arith.mulf %976, %980 : vector<8x8xf32>
    %cst_427 = arith.constant dense<0.000000e+00> : vector<8x8xf32>
    %982 = tpu.matmul %981, %964, %cst_427 {dimension_numbers = #tpu.dot_dimension_numbers<[1], [0], [0], [1], [0, 0, 1, 1], [], []>} : vector<8x8xf32>, vector<8x8xf32>, vector<8x8xf32> -> vector<8x8xf32>
    %983 = vector.extract_strided_slice %922 {offsets = [8, 0], sizes = [8, 32], strides = [1, 1]} : vector<32x32xf32> to vector<8x32xf32>
    %cst_428 = arith.constant dense<0.000000e+00> : vector<8x32xf32>
    %984 = tpu.matmul %982, %983, %cst_428 {dimension_numbers = #tpu.dot_dimension_numbers<[1], [0], [0], [1], [0, 0, 1, 1], [], []>} : vector<8x8xf32>, vector<8x32xf32>, vector<8x32xf32> -> vector<8x32xf32>
    %985 = arith.addf %961, %984 : vector<8x32xf32>
    %986 = vector.extract_strided_slice %929 {offsets = [0, 16], sizes = [8, 8], strides = [1, 1]} : vector<8x32xf32> to vector<8x8xf32>
    %987 = vector.extract_strided_slice %935 {offsets = [0, 16], sizes = [8, 8], strides = [1, 1]} : vector<8x32xf32> to vector<8x8xf32>
    %988 = vector.extract_strided_slice %936 {offsets = [0, 16], sizes = [8, 8], strides = [1, 1]} : vector<8x32xf32> to vector<8x8xf32>
    %cst_429 = arith.constant dense<0.000000e+00> : vector<8x8xf32>
    %989 = tpu.matmul %986, %987, %cst_429 {dimension_numbers = #tpu.dot_dimension_numbers<[1], [1], [0], [0], [0, 0, 1, 0], [], []>} : vector<8x8xf32>, vector<8x8xf32>, vector<8x8xf32> -> vector<8x8xf32>
    %cst_430 = arith.constant 0.353553385 : f32
    %990 = vector.broadcast %cst_430 : f32 to vector<8x8xf32>
    %991 = arith.mulf %989, %990 : vector<8x8xf32>
    %cst_431 = arith.constant 0.000000e+00 : f32
    %992 = vector.broadcast %cst_431 : f32 to vector<8x8xf32>
    %993 = arith.cmpf oeq, %409, %992 : vector<8x8xf32>
    %cst_432 = arith.constant -1.000000e+09 : f32
    %994 = vector.broadcast %cst_432 : f32 to vector<8x8xf32>
    %995 = arith.select %993, %994, %991 : vector<8x8xi1>, vector<8x8xf32>
    %cst_433 = arith.constant dense<0xFF800000> : vector<8xf32>
    %996 = vector.multi_reduction <maximumf>, %995, %cst_433 [1] : vector<8x8xf32> to vector<8xf32>
    %997 = vector.shape_cast %996 : vector<8xf32> to vector<8x1xf32>
    %998 = vector.broadcast %997 : vector<8x1xf32> to vector<8x8xf32>
    %999 = arith.subf %995, %998 : vector<8x8xf32>
    %1000 = math.exp %999 : vector<8x8xf32>
    %cst_434 = arith.constant dense<0.000000e+00> : vector<8xf32>
    %1001 = vector.multi_reduction <add>, %1000, %cst_434 [1] : vector<8x8xf32> to vector<8xf32>
    %1002 = vector.shape_cast %1001 : vector<8xf32> to vector<8x1xf32>
    %1003 = tpu.reciprocal %1002 {approx = true} : vector<8x1xf32> -> vector<8x1xf32>
    %1004 = vector.broadcast %1003 : vector<8x1xf32> to vector<8x8xf32>
    %1005 = arith.mulf %1000, %1004 : vector<8x8xf32>
    %cst_435 = arith.constant dense<0.000000e+00> : vector<8x8xf32>
    %1006 = tpu.matmul %1005, %988, %cst_435 {dimension_numbers = #tpu.dot_dimension_numbers<[1], [0], [0], [1], [0, 0, 1, 1], [], []>} : vector<8x8xf32>, vector<8x8xf32>, vector<8x8xf32> -> vector<8x8xf32>
    %1007 = vector.extract_strided_slice %922 {offsets = [16, 0], sizes = [8, 32], strides = [1, 1]} : vector<32x32xf32> to vector<8x32xf32>
    %cst_436 = arith.constant dense<0.000000e+00> : vector<8x32xf32>
    %1008 = tpu.matmul %1006, %1007, %cst_436 {dimension_numbers = #tpu.dot_dimension_numbers<[1], [0], [0], [1], [0, 0, 1, 1], [], []>} : vector<8x8xf32>, vector<8x32xf32>, vector<8x32xf32> -> vector<8x32xf32>
    %1009 = arith.addf %985, %1008 : vector<8x32xf32>
    %1010 = vector.extract_strided_slice %929 {offsets = [0, 24], sizes = [8, 8], strides = [1, 1]} : vector<8x32xf32> to vector<8x8xf32>
    %1011 = vector.extract_strided_slice %935 {offsets = [0, 24], sizes = [8, 8], strides = [1, 1]} : vector<8x32xf32> to vector<8x8xf32>
    %1012 = vector.extract_strided_slice %936 {offsets = [0, 24], sizes = [8, 8], strides = [1, 1]} : vector<8x32xf32> to vector<8x8xf32>
    %cst_437 = arith.constant dense<0.000000e+00> : vector<8x8xf32>
    %1013 = tpu.matmul %1010, %1011, %cst_437 {dimension_numbers = #tpu.dot_dimension_numbers<[1], [1], [0], [0], [0, 0, 1, 0], [], []>} : vector<8x8xf32>, vector<8x8xf32>, vector<8x8xf32> -> vector<8x8xf32>
    %cst_438 = arith.constant 0.353553385 : f32
    %1014 = vector.broadcast %cst_438 : f32 to vector<8x8xf32>
    %1015 = arith.mulf %1013, %1014 : vector<8x8xf32>
    %cst_439 = arith.constant 0.000000e+00 : f32
    %1016 = vector.broadcast %cst_439 : f32 to vector<8x8xf32>
    %1017 = arith.cmpf oeq, %409, %1016 : vector<8x8xf32>
    %cst_440 = arith.constant -1.000000e+09 : f32
    %1018 = vector.broadcast %cst_440 : f32 to vector<8x8xf32>
    %1019 = arith.select %1017, %1018, %1015 : vector<8x8xi1>, vector<8x8xf32>
    %cst_441 = arith.constant dense<0xFF800000> : vector<8xf32>
    %1020 = vector.multi_reduction <maximumf>, %1019, %cst_441 [1] : vector<8x8xf32> to vector<8xf32>
    %1021 = vector.shape_cast %1020 : vector<8xf32> to vector<8x1xf32>
    %1022 = vector.broadcast %1021 : vector<8x1xf32> to vector<8x8xf32>
    %1023 = arith.subf %1019, %1022 : vector<8x8xf32>
    %1024 = math.exp %1023 : vector<8x8xf32>
    %cst_442 = arith.constant dense<0.000000e+00> : vector<8xf32>
    %1025 = vector.multi_reduction <add>, %1024, %cst_442 [1] : vector<8x8xf32> to vector<8xf32>
    %1026 = vector.shape_cast %1025 : vector<8xf32> to vector<8x1xf32>
    %1027 = tpu.reciprocal %1026 {approx = true} : vector<8x1xf32> -> vector<8x1xf32>
    %1028 = vector.broadcast %1027 : vector<8x1xf32> to vector<8x8xf32>
    %1029 = arith.mulf %1024, %1028 : vector<8x8xf32>
    %cst_443 = arith.constant dense<0.000000e+00> : vector<8x8xf32>
    %1030 = tpu.matmul %1029, %1012, %cst_443 {dimension_numbers = #tpu.dot_dimension_numbers<[1], [0], [0], [1], [0, 0, 1, 1], [], []>} : vector<8x8xf32>, vector<8x8xf32>, vector<8x8xf32> -> vector<8x8xf32>
    %1031 = vector.extract_strided_slice %922 {offsets = [24, 0], sizes = [8, 32], strides = [1, 1]} : vector<32x32xf32> to vector<8x32xf32>
    %cst_444 = arith.constant dense<0.000000e+00> : vector<8x32xf32>
    %1032 = tpu.matmul %1030, %1031, %cst_444 {dimension_numbers = #tpu.dot_dimension_numbers<[1], [0], [0], [1], [0, 0, 1, 1], [], []>} : vector<8x8xf32>, vector<8x32xf32>, vector<8x32xf32> -> vector<8x32xf32>
    %1033 = arith.addf %1009, %1032 : vector<8x32xf32>
    %1034 = vector.broadcast %924 : vector<1x32xf32> to vector<8x32xf32>
    %1035 = arith.addf %1033, %1034 : vector<8x32xf32>
    %1036 = arith.addf %890, %1035 : vector<8x32xf32>
    %c1_445 = arith.constant 1 : index
    %c0_446 = arith.constant 0 : index
    %c0_447 = arith.constant 0 : index
    %1037 = vector.load %arg17[%c1_445, %c0_446, %c0_447] : memref<2x1x32xf32, #tpu.memory_space<vmem>>, vector<1x1x32xf32>
    %1038 = vector.shape_cast %1037 : vector<1x1x32xf32> to vector<1x32xf32>
    %c1_448 = arith.constant 1 : index
    %c0_449 = arith.constant 0 : index
    %c0_450 = arith.constant 0 : index
    %1039 = vector.load %arg16[%c1_448, %c0_449, %c0_450] : memref<2x1x32xf32, #tpu.memory_space<vmem>>, vector<1x1x32xf32>
    %1040 = vector.shape_cast %1039 : vector<1x1x32xf32> to vector<1x32xf32>
    %cst_451 = arith.constant dense<0.000000e+00> : vector<8xf32>
    %1041 = vector.multi_reduction <add>, %1036, %cst_451 [1] : vector<8x32xf32> to vector<8xf32>
    %1042 = vector.shape_cast %1041 : vector<8xf32> to vector<8x1xf32>
    %cst_452 = arith.constant 3.200000e+01 : f32
    %1043 = vector.broadcast %cst_452 : f32 to vector<8x1xf32>
    %1044 = arith.divf %1042, %1043 : vector<8x1xf32>
    %1045 = vector.broadcast %1044 : vector<8x1xf32> to vector<8x32xf32>
    %1046 = arith.subf %1036, %1045 : vector<8x32xf32>
    %1047 = arith.mulf %1046, %1046 : vector<8x32xf32>
    %cst_453 = arith.constant dense<0.000000e+00> : vector<8xf32>
    %1048 = vector.multi_reduction <add>, %1047, %cst_453 [1] : vector<8x32xf32> to vector<8xf32>
    %1049 = vector.shape_cast %1048 : vector<8xf32> to vector<8x1xf32>
    %cst_454 = arith.constant 3.200000e+01 : f32
    %1050 = vector.broadcast %cst_454 : f32 to vector<8x1xf32>
    %1051 = arith.divf %1049, %1050 : vector<8x1xf32>
    %1052 = vector.broadcast %1044 : vector<8x1xf32> to vector<8x32xf32>
    %1053 = arith.subf %1036, %1052 : vector<8x32xf32>
    %cst_455 = arith.constant 9.99999997E-7 : f32
    %1054 = vector.broadcast %cst_455 : f32 to vector<8x1xf32>
    %1055 = arith.addf %1051, %1054 : vector<8x1xf32>
    %1056 = math.rsqrt %1055 : vector<8x1xf32>
    %1057 = vector.broadcast %1056 : vector<8x1xf32> to vector<8x32xf32>
    %1058 = arith.mulf %1053, %1057 : vector<8x32xf32>
    %1059 = vector.broadcast %1038 : vector<1x32xf32> to vector<8x32xf32>
    %1060 = arith.mulf %1058, %1059 : vector<8x32xf32>
    %1061 = vector.broadcast %1040 : vector<1x32xf32> to vector<8x32xf32>
    %1062 = arith.addf %1060, %1061 : vector<8x32xf32>
    %c1_456 = arith.constant 1 : index
    %c0_457 = arith.constant 0 : index
    %c0_458 = arith.constant 0 : index
    %1063 = vector.load %arg24[%c1_456, %c0_457, %c0_458] : memref<2x32x64xf32, #tpu.memory_space<vmem>>, vector<1x32x64xf32>
    %1064 = vector.shape_cast %1063 : vector<1x32x64xf32> to vector<32x64xf32>
    %c1_459 = arith.constant 1 : index
    %c0_460 = arith.constant 0 : index
    %c0_461 = arith.constant 0 : index
    %1065 = vector.load %arg6[%c1_459, %c0_460, %c0_461] : memref<2x1x64xf32, #tpu.memory_space<vmem>>, vector<1x1x64xf32>
    %1066 = vector.shape_cast %1065 : vector<1x1x64xf32> to vector<1x64xf32>
    %c1_462 = arith.constant 1 : index
    %c0_463 = arith.constant 0 : index
    %c0_464 = arith.constant 0 : index
    %1067 = vector.load %arg25[%c1_462, %c0_463, %c0_464] : memref<2x64x32xf32, #tpu.memory_space<vmem>>, vector<1x64x32xf32>
    %1068 = vector.shape_cast %1067 : vector<1x64x32xf32> to vector<64x32xf32>
    %c1_465 = arith.constant 1 : index
    %c0_466 = arith.constant 0 : index
    %c0_467 = arith.constant 0 : index
    %1069 = vector.load %arg7[%c1_465, %c0_466, %c0_467] : memref<2x1x32xf32, #tpu.memory_space<vmem>>, vector<1x1x32xf32>
    %1070 = vector.shape_cast %1069 : vector<1x1x32xf32> to vector<1x32xf32>
    %cst_468 = arith.constant dense<0.000000e+00> : vector<8x64xf32>
    %1071 = tpu.matmul %1062, %1064, %cst_468 {dimension_numbers = #tpu.dot_dimension_numbers<[1], [0], [0], [1], [0, 0, 1, 1], [], []>} : vector<8x32xf32>, vector<32x64xf32>, vector<8x64xf32> -> vector<8x64xf32>
    %1072 = vector.broadcast %1066 : vector<1x64xf32> to vector<8x64xf32>
    %1073 = arith.addf %1071, %1072 : vector<8x64xf32>
    %cst_469 = arith.constant 0.000000e+00 : f32
    %1074 = vector.broadcast %cst_469 : f32 to vector<8x64xf32>
    %1075 = arith.maximumf %1073, %1074 : vector<8x64xf32>
    %cst_470 = arith.constant dense<0.000000e+00> : vector<8x32xf32>
    %1076 = tpu.matmul %1075, %1068, %cst_470 {dimension_numbers = #tpu.dot_dimension_numbers<[1], [0], [0], [1], [0, 0, 1, 1], [], []>} : vector<8x64xf32>, vector<64x32xf32>, vector<8x32xf32> -> vector<8x32xf32>
    %1077 = vector.broadcast %1070 : vector<1x32xf32> to vector<8x32xf32>
    %1078 = arith.addf %1076, %1077 : vector<8x32xf32>
    %1079 = arith.addf %1036, %1078 : vector<8x32xf32>
    %c0_471 = arith.constant 0 : index
    %c0_472 = arith.constant 0 : index
    %1080 = vector.load %arg19[%c0_471, %c0_472] : memref<1x32xf32, #tpu.memory_space<vmem>>, vector<1x32xf32>
    %c0_473 = arith.constant 0 : index
    %c0_474 = arith.constant 0 : index
    %1081 = vector.load %arg18[%c0_473, %c0_474] : memref<1x32xf32, #tpu.memory_space<vmem>>, vector<1x32xf32>
    %cst_475 = arith.constant dense<0.000000e+00> : vector<8xf32>
    %1082 = vector.multi_reduction <add>, %1079, %cst_475 [1] : vector<8x32xf32> to vector<8xf32>
    %1083 = vector.shape_cast %1082 : vector<8xf32> to vector<8x1xf32>
    %cst_476 = arith.constant 3.200000e+01 : f32
    %1084 = vector.broadcast %cst_476 : f32 to vector<8x1xf32>
    %1085 = arith.divf %1083, %1084 : vector<8x1xf32>
    %1086 = vector.broadcast %1085 : vector<8x1xf32> to vector<8x32xf32>
    %1087 = arith.subf %1079, %1086 : vector<8x32xf32>
    %1088 = arith.mulf %1087, %1087 : vector<8x32xf32>
    %cst_477 = arith.constant dense<0.000000e+00> : vector<8xf32>
    %1089 = vector.multi_reduction <add>, %1088, %cst_477 [1] : vector<8x32xf32> to vector<8xf32>
    %1090 = vector.shape_cast %1089 : vector<8xf32> to vector<8x1xf32>
    %cst_478 = arith.constant 3.200000e+01 : f32
    %1091 = vector.broadcast %cst_478 : f32 to vector<8x1xf32>
    %1092 = arith.divf %1090, %1091 : vector<8x1xf32>
    %1093 = vector.broadcast %1085 : vector<8x1xf32> to vector<8x32xf32>
    %1094 = arith.subf %1079, %1093 : vector<8x32xf32>
    %cst_479 = arith.constant 9.99999997E-7 : f32
    %1095 = vector.broadcast %cst_479 : f32 to vector<8x1xf32>
    %1096 = arith.addf %1092, %1095 : vector<8x1xf32>
    %1097 = math.rsqrt %1096 : vector<8x1xf32>
    %1098 = vector.broadcast %1097 : vector<8x1xf32> to vector<8x32xf32>
    %1099 = arith.mulf %1094, %1098 : vector<8x32xf32>
    %1100 = vector.broadcast %1080 : vector<1x32xf32> to vector<8x32xf32>
    %1101 = arith.mulf %1099, %1100 : vector<8x32xf32>
    %1102 = vector.broadcast %1081 : vector<1x32xf32> to vector<8x32xf32>
    %1103 = arith.addf %1101, %1102 : vector<8x32xf32>
    %c0_480 = arith.constant 0 : index
    %c0_481 = arith.constant 0 : index
    %1104 = vector.load %arg40[%c0_480, %c0_481] : memref<8x32xf32, #tpu.memory_space<vmem>>, vector<8x32xf32>
    tpu.vector_store %arg40[%c0_480, %c0_481], %1103 {strides = array<i32>} : memref<8x32xf32, #tpu.memory_space<vmem>>, vector<8x32xf32>,
    return
  }
  func.func @transform_0(%arg0: i32) -> (i32, i32) {
    %c0_i32 = arith.constant 0 : i32
    %c0_i32_0 = arith.constant 0 : i32
    return %arg0, %c0_i32 : i32, i32
  }
  func.func @transform_1(%arg0: i32) -> (i32, i32) {
    %c0_i32 = arith.constant 0 : i32
    %c0_i32_0 = arith.constant 0 : i32
    return %arg0, %c0_i32 : i32, i32
  }
  func.func @transform_2(%arg0: i32) -> (i32, i32, i32) {
    %c0_i32 = arith.constant 0 : i32
    %c0_i32_0 = arith.constant 0 : i32
    %c0_i32_1 = arith.constant 0 : i32
    return %arg0, %c0_i32, %c0_i32_0 : i32, i32, i32
  }
  func.func @transform_3(%arg0: i32) -> (i32, i32, i32) {
    %c0_i32 = arith.constant 0 : i32
    %c0_i32_0 = arith.constant 0 : i32
    %c0_i32_1 = arith.constant 0 : i32
    return %arg0, %c0_i32, %c0_i32_0 : i32, i32, i32
  }
  func.func @transform_4(%arg0: i32) -> (i32, i32, i32) {
    %c0_i32 = arith.constant 0 : i32
    %c0_i32_0 = arith.constant 0 : i32
    %c0_i32_1 = arith.constant 0 : i32
    return %arg0, %c0_i32, %c0_i32_0 : i32, i32, i32
  }
  func.func @transform_5(%arg0: i32) -> (i32, i32, i32) {
    %c0_i32 = arith.constant 0 : i32
    %c0_i32_0 = arith.constant 0 : i32
    %c0_i32_1 = arith.constant 0 : i32
    %c0_i32_2 = arith.constant 0 : i32
    return %c0_i32, %c0_i32_0, %c0_i32_1 : i32, i32, i32
  }
  func.func @transform_6(%arg0: i32) -> (i32, i32, i32) {
    %c0_i32 = arith.constant 0 : i32
    %c0_i32_0 = arith.constant 0 : i32
    %c0_i32_1 = arith.constant 0 : i32
    %c0_i32_2 = arith.constant 0 : i32
    return %c0_i32, %c0_i32_0, %c0_i32_1 : i32, i32, i32
  }
  func.func @transform_7(%arg0: i32) -> (i32, i32, i32) {
    %c0_i32 = arith.constant 0 : i32
    %c0_i32_0 = arith.constant 0 : i32
    %c0_i32_1 = arith.constant 0 : i32
    %c0_i32_2 = arith.constant 0 : i32
    return %c0_i32, %c0_i32_0, %c0_i32_1 : i32, i32, i32
  }
  func.func @transform_8(%arg0: i32) -> (i32, i32, i32) {
    %c0_i32 = arith.constant 0 : i32
    %c0_i32_0 = arith.constant 0 : i32
    %c0_i32_1 = arith.constant 0 : i32
    %c0_i32_2 = arith.constant 0 : i32
    return %c0_i32, %c0_i32_0, %c0_i32_1 : i32, i32, i32
  }
  func.func @transform_9(%arg0: i32) -> (i32, i32, i32) {
    %c0_i32 = arith.constant 0 : i32
    %c0_i32_0 = arith.constant 0 : i32
    %c0_i32_1 = arith.constant 0 : i32
    %c0_i32_2 = arith.constant 0 : i32
    return %c0_i32, %c0_i32_0, %c0_i32_1 : i32, i32, i32
  }
  func.func @transform_10(%arg0: i32) -> (i32, i32, i32) {
    %c0_i32 = arith.constant 0 : i32
    %c0_i32_0 = arith.constant 0 : i32
    %c0_i32_1 = arith.constant 0 : i32
    %c0_i32_2 = arith.constant 0 : i32
    return %c0_i32, %c0_i32_0, %c0_i32_1 : i32, i32, i32
  }
  func.func @transform_11(%arg0: i32) -> (i32, i32, i32) {
    %c0_i32 = arith.constant 0 : i32
    %c0_i32_0 = arith.constant 0 : i32
    %c0_i32_1 = arith.constant 0 : i32
    %c0_i32_2 = arith.constant 0 : i32
    return %c0_i32, %c0_i32_0, %c0_i32_1 : i32, i32, i32
  }
  func.func @transform_12(%arg0: i32) -> (i32, i32, i32) {
    %c0_i32 = arith.constant 0 : i32
    %c0_i32_0 = arith.constant 0 : i32
    %c0_i32_1 = arith.constant 0 : i32
    %c0_i32_2 = arith.constant 0 : i32
    return %c0_i32, %c0_i32_0, %c0_i32_1 : i32, i32, i32
  }
  func.func @transform_13(%arg0: i32) -> (i32, i32, i32) {
    %c0_i32 = arith.constant 0 : i32
    %c0_i32_0 = arith.constant 0 : i32
    %c0_i32_1 = arith.constant 0 : i32
    %c0_i32_2 = arith.constant 0 : i32
    return %c0_i32, %c0_i32_0, %c0_i32_1 : i32, i32, i32
  }
  func.func @transform_14(%arg0: i32) -> (i32, i32, i32) {
    %c0_i32 = arith.constant 0 : i32
    %c0_i32_0 = arith.constant 0 : i32
    %c0_i32_1 = arith.constant 0 : i32
    %c0_i32_2 = arith.constant 0 : i32
    return %c0_i32, %c0_i32_0, %c0_i32_1 : i32, i32, i32
  }
  func.func @transform_15(%arg0: i32) -> (i32, i32, i32) {
    %c0_i32 = arith.constant 0 : i32
    %c0_i32_0 = arith.constant 0 : i32
    %c0_i32_1 = arith.constant 0 : i32
    %c0_i32_2 = arith.constant 0 : i32
    return %c0_i32, %c0_i32_0, %c0_i32_1 : i32, i32, i32
  }
  func.func @transform_16(%arg0: i32) -> (i32, i32, i32) {
    %c0_i32 = arith.constant 0 : i32
    %c0_i32_0 = arith.constant 0 : i32
    %c0_i32_1 = arith.constant 0 : i32
    %c0_i32_2 = arith.constant 0 : i32
    return %c0_i32, %c0_i32_0, %c0_i32_1 : i32, i32, i32
  }
  func.func @transform_17(%arg0: i32) -> (i32, i32) {
    %c0_i32 = arith.constant 0 : i32
    %c0_i32_0 = arith.constant 0 : i32
    %c0_i32_1 = arith.constant 0 : i32
    return %c0_i32, %c0_i32_0 : i32, i32
  }
  func.func @transform_18(%arg0: i32) -> (i32, i32) {
    %c0_i32 = arith.constant 0 : i32
    %c0_i32_0 = arith.constant 0 : i32
    %c0_i32_1 = arith.constant 0 : i32
    return %c0_i32, %c0_i32_0 : i32, i32
  }
  func.func @transform_19(%arg0: i32) -> (i32, i32, i32) {
    %c0_i32 = arith.constant 0 : i32
    %c0_i32_0 = arith.constant 0 : i32
    %c0_i32_1 = arith.constant 0 : i32
    %c0_i32_2 = arith.constant 0 : i32
    return %c0_i32, %c0_i32_0, %c0_i32_1 : i32, i32, i32
  }
  func.func @transform_20(%arg0: i32) -> (i32, i32, i32) {
    %c0_i32 = arith.constant 0 : i32
    %c0_i32_0 = arith.constant 0 : i32
    %c0_i32_1 = arith.constant 0 : i32
    %c0_i32_2 = arith.constant 0 : i32
    return %c0_i32, %c0_i32_0, %c0_i32_1 : i32, i32, i32
  }
  func.func @transform_21(%arg0: i32) -> (i32, i32, i32) {
    %c0_i32 = arith.constant 0 : i32
    %c0_i32_0 = arith.constant 0 : i32
    %c0_i32_1 = arith.constant 0 : i32
    %c0_i32_2 = arith.constant 0 : i32
    return %c0_i32, %c0_i32_0, %c0_i32_1 : i32, i32, i32
  }
  func.func @transform_22(%arg0: i32) -> (i32, i32, i32) {
    %c0_i32 = arith.constant 0 : i32
    %c0_i32_0 = arith.constant 0 : i32
    %c0_i32_1 = arith.constant 0 : i32
    %c0_i32_2 = arith.constant 0 : i32
    return %c0_i32, %c0_i32_0, %c0_i32_1 : i32, i32, i32
  }
  func.func @transform_23(%arg0: i32) -> (i32, i32, i32) {
    %c0_i32 = arith.constant 0 : i32
    %c0_i32_0 = arith.constant 0 : i32
    %c0_i32_1 = arith.constant 0 : i32
    %c0_i32_2 = arith.constant 0 : i32
    return %c0_i32, %c0_i32_0, %c0_i32_1 : i32, i32, i32
  }
  func.func @transform_24(%arg0: i32) -> (i32, i32, i32) {
    %c0_i32 = arith.constant 0 : i32
    %c0_i32_0 = arith.constant 0 : i32
    %c0_i32_1 = arith.constant 0 : i32
    %c0_i32_2 = arith.constant 0 : i32
    return %c0_i32, %c0_i32_0, %c0_i32_1 : i32, i32, i32
  }
  func.func @transform_25(%arg0: i32) -> (i32, i32, i32) {
    %c0_i32 = arith.constant 0 : i32
    %c0_i32_0 = arith.constant 0 : i32
    %c0_i32_1 = arith.constant 0 : i32
    %c0_i32_2 = arith.constant 0 : i32
    return %c0_i32, %c0_i32_0, %c0_i32_1 : i32, i32, i32
  }
  func.func @transform_26(%arg0: i32) -> (i32, i32, i32) {
    %c0_i32 = arith.constant 0 : i32
    %c0_i32_0 = arith.constant 0 : i32
    %c0_i32_1 = arith.constant 0 : i32
    %c0_i32_2 = arith.constant 0 : i32
    return %c0_i32, %c0_i32_0, %c0_i32_1 : i32, i32, i32
  }
  func.func @transform_27(%arg0: i32) -> (i32, i32, i32) {
    %c0_i32 = arith.constant 0 : i32
    %c0_i32_0 = arith.constant 0 : i32
    %c0_i32_1 = arith.constant 0 : i32
    %c0_i32_2 = arith.constant 0 : i32
    return %c0_i32, %c0_i32_0, %c0_i32_1 : i32, i32, i32
  }
  func.func @transform_28(%arg0: i32) -> (i32, i32, i32) {
    %c0_i32 = arith.constant 0 : i32
    %c0_i32_0 = arith.constant 0 : i32
    %c0_i32_1 = arith.constant 0 : i32
    %c0_i32_2 = arith.constant 0 : i32
    return %c0_i32, %c0_i32_0, %c0_i32_1 : i32, i32, i32
  }
  func.func @transform_29(%arg0: i32) -> (i32, i32, i32) {
    %c0_i32 = arith.constant 0 : i32
    %c0_i32_0 = arith.constant 0 : i32
    %c0_i32_1 = arith.constant 0 : i32
    %c0_i32_2 = arith.constant 0 : i32
    return %c0_i32, %c0_i32_0, %c0_i32_1 : i32, i32, i32
  }
  func.func @transform_30(%arg0: i32) -> (i32, i32, i32) {
    %c0_i32 = arith.constant 0 : i32
    %c0_i32_0 = arith.constant 0 : i32
    %c0_i32_1 = arith.constant 0 : i32
    %c0_i32_2 = arith.constant 0 : i32
    return %c0_i32, %c0_i32_0, %c0_i32_1 : i32, i32, i32
  }
  func.func @transform_31(%arg0: i32) -> (i32, i32, i32) {
    %c0_i32 = arith.constant 0 : i32
    %c0_i32_0 = arith.constant 0 : i32
    %c0_i32_1 = arith.constant 0 : i32
    %c0_i32_2 = arith.constant 0 : i32
    return %c0_i32, %c0_i32_0, %c0_i32_1 : i32, i32, i32
  }
  func.func @transform_32(%arg0: i32) -> (i32, i32, i32) {
    %c0_i32 = arith.constant 0 : i32
    %c0_i32_0 = arith.constant 0 : i32
    %c0_i32_1 = arith.constant 0 : i32
    %c0_i32_2 = arith.constant 0 : i32
    return %c0_i32, %c0_i32_0, %c0_i32_1 : i32, i32, i32
  }
  func.func @transform_33(%arg0: i32) -> (i32, i32) {
    %c0_i32 = arith.constant 0 : i32
    %c0_i32_0 = arith.constant 0 : i32
    %c0_i32_1 = arith.constant 0 : i32
    return %c0_i32, %c0_i32_0 : i32, i32
  }
  func.func @transform_34(%arg0: i32) -> (i32, i32) {
    %c0_i32 = arith.constant 0 : i32
    %c0_i32_0 = arith.constant 0 : i32
    %c0_i32_1 = arith.constant 0 : i32
    return %c0_i32, %c0_i32_0 : i32, i32
  }
  func.func @transform_35(%arg0: i32) -> (i32, i32, i32) {
    %c0_i32 = arith.constant 0 : i32
    %c0_i32_0 = arith.constant 0 : i32
    %c0_i32_1 = arith.constant 0 : i32
    %c0_i32_2 = arith.constant 0 : i32
    return %c0_i32, %c0_i32_0, %c0_i32_1 : i32, i32, i32
  }
  func.func @transform_36(%arg0: i32) -> (i32, i32, i32) {
    %c0_i32 = arith.constant 0 : i32
    %c0_i32_0 = arith.constant 0 : i32
    %c0_i32_1 = arith.constant 0 : i32
    %c0_i32_2 = arith.constant 0 : i32
    return %c0_i32, %c0_i32_0, %c0_i32_1 : i32, i32, i32
  }
  func.func @transform_37(%arg0: i32) -> (i32, i32, i32) {
    %c0_i32 = arith.constant 0 : i32
    %c0_i32_0 = arith.constant 0 : i32
    %c0_i32_1 = arith.constant 0 : i32
    %c0_i32_2 = arith.constant 0 : i32
    return %c0_i32, %c0_i32_0, %c0_i32_1 : i32, i32, i32
  }
  func.func @transform_38(%arg0: i32) -> (i32, i32, i32) {
    %c0_i32 = arith.constant 0 : i32
    %c0_i32_0 = arith.constant 0 : i32
    %c0_i32_1 = arith.constant 0 : i32
    %c0_i32_2 = arith.constant 0 : i32
    return %c0_i32, %c0_i32_0, %c0_i32_1 : i32, i32, i32
  }
  func.func @transform_39(%arg0: i32) -> (i32, i32) {
    %c0_i32 = arith.constant 0 : i32
    %c0_i32_0 = arith.constant 0 : i32
    return %arg0, %c0_i32 : i32, i32
  }
}

</mosaic_0001>

<bundles_post_ra>
// kernel: transformer_forward.1
= control target key start
LH: loop header
LB: loop body
LE: loop exit
PB: predicated region body
PF: predicated region fallthrough
CT: control target
= control target key end

     0   :  { %s10962_s6 = smov 1   ;;  %s10963_s10 = smov 2   ;;  %s12263_s0 = inlined_call_operand.smem [shape: u32[40], index: -1, kind: input, shape index: {}] }
   0x1   :  { %s11020_s5 = sld [smem:[%s12263_s0]]   ;;  %s10964_s14 = smov 3  }
   0x2   :  { %s11025_s9 = sld [smem:[%s12263_s0 + %s10962_s6]]   ;;  %s10965_s18 = smov 4  }
   0x3   :  { %s11030_s13 = sld [smem:[%s12263_s0 + %s10963_s10]]   ;;  %s10966_s22 = smov 5  }
   0x4   :  { %s11035_s17 = sld [smem:[%s12263_s0 + %s10964_s14]]   ;;  %s10967_s26 = smov 6  }
   0x5   :  { %s11040_s21 = sld [smem:[%s12263_s0 + %s10965_s18]]   ;;  %s10968_s30 = smov 7  }
   0x6   :  { %s11045_s25 = sld [smem:[%s12263_s0 + %s10966_s22]]   ;;  %s10969_s4 = smov 8  }
   0x7   :  { %12315 = sst [smem:[#allocation5_spill]] %s11020_s5  ;;  %s10970_s10 = smov 9  }
   0x8   :  { %12316 = sst [smem:[#allocation6_spill]] %s11025_s9  ;;  %s10971_s15 = smov 10  }
   0x9   :  { %12317 = sst [smem:[#allocation7_spill]] %s11030_s13  ;;  %s10972_s20 = smov 11  }
   0xa   :  { %12318 = sst [smem:[#allocation8_spill]] %s11035_s17  ;;  %s10974_s1 = smov 13  }
   0xb   :  { %12319 = sst [smem:[#allocation9_spill]] %s11040_s21  ;;  %s10975_s7 = smov 14  }
   0xc   :  { %12320 = sst [smem:[#allocation10_spill]] %s11045_s25  ;;  %s10977_s22 = smov 16  }
   0xd   :  { %s11050_s29 = sld [smem:[%s12263_s0 + %s10967_s26]]   ;;  %s10973_s26 = smov 12  }
   0xe   :  { %s11055_s3 = sld [smem:[%s12263_s0 + %s10968_s30]]   ;;  %s10978_s28 = smov 17  }
   0xf   :  { %s11060_s8 = sld [smem:[%s12263_s0 + %s10969_s4]]  }
  0x10   :  { %s11065_s14 = sld [smem:[%s12263_s0 + %s10970_s10]]  }
  0x11   :  { %s11070_s19 = sld [smem:[%s12263_s0 + %s10971_s15]]   ;;  %s10976_s15 = smov 15  }
  0x12   :  { %s11075_s24 = sld [smem:[%s12263_s0 + %s10972_s20]]  }
  0x13   :  { %12321 = sst [smem:[#allocation11_spill]] %s11050_s29 }
  0x14   :  { %12322 = sst [smem:[#allocation12_spill]] %s11055_s3 }
  0x15   :  { %12323 = sst [smem:[#allocation13_spill]] %s11060_s8 }
  0x16   :  { %12324 = sst [smem:[#allocation14_spill]] %s11065_s14 }
  0x17   :  { %12325 = sst [smem:[#allocation15_spill]] %s11070_s19 }
  0x18   :  { %12326 = sst [smem:[#allocation16_spill]] %s11075_s24 }
  0x19   :  { %s11080_s30 = sld [smem:[%s12263_s0 + %s10973_s26]]  }
  0x1a   :  { %s11085_s6 = sld [smem:[%s12263_s0 + %s10974_s1]]  }
  0x1b   :  { %s11090_s12 = sld [smem:[%s12263_s0 + %s10975_s7]]   ;;  %s10979_s7 = smov 18  }
  0x1c   :  { %s11095_s20 = sld [smem:[%s12263_s0 + %s10976_s15]]   ;;  %s10980_s15 = smov 19  }
  0x1d   :  { %s11100_s27 = sld [smem:[%s12263_s0 + %s10977_s22]]   ;;  %s10981_s22 = smov 20  }
  0x1e   :  { %s11105_s4 = sld [smem:[%s12263_s0 + %s10978_s28]]   ;;  %s10982_s28 = smov 21  }
  0x1f   :  { %12327 = sst [smem:[#allocation17_spill]] %s11080_s30 }
  0x20   :  { %12328 = sst [smem:[#allocation18_spill]] %s11085_s6 }
  0x21   :  { %12329 = sst [smem:[#allocation19_spill]] %s11090_s12 }
  0x22   :  { %12330 = sst [smem:[#allocation20_spill]] %s11095_s20 }
  0x23   :  { %12331 = sst [smem:[#allocation21_spill]] %s11100_s27 }
  0x24   :  { %12332 = sst [smem:[#allocation22_spill]] %s11105_s4 }
  0x25   :  { %s11110_s29 = sld [smem:[%s12263_s0 + %s10979_s7]]   ;;  %s10983_s7 = smov 22  }
  0x26   :  { %s11115_s25 = sld [smem:[%s12263_s0 + %s10980_s15]]   ;;  %s10984_s15 = smov 23  }
  0x27   :  { %s11120_s20 = sld [smem:[%s12263_s0 + %s10981_s22]]   ;;  %s10985_s22 = smov 24  }
  0x28   :  { %s11125_s4 = sld [smem:[%s12263_s0 + %s10982_s28]]   ;;  %s10986_s28 = smov 25  }
  0x29   :  { %s11135_s27 = sld [smem:[%s12263_s0 + %s10984_s15]]   ;;  %s10988_s15 = smov 27  }
  0x2a   :  { %s11140_s3 = sld [smem:[%s12263_s0 + %s10985_s22]]   ;;  %s10989_s22 = smov 28  }
  0x2b   :  { %12333 = sst [smem:[#allocation23_spill]] %s11110_s29 }
  0x2c   :  { %12334 = sst [smem:[#allocation24_spill]] %s11115_s25 }
  0x2d   :  { %s11130_s29 = sld [smem:[%s12263_s0 + %s10983_s7]]   ;;  %s10987_s7 = smov 26  }
  0x2e   :  { %12335 = sst [smem:[#allocation25_spill]] %s11125_s4 }
  0x2f   :  { %12336 = sst [smem:[#allocation26_spill]] %s11135_s27 }
  0x30   :  { %12337 = sst [smem:[#allocation27_spill]] %s11140_s3 }
  0x31   :  { %s11145_s14 = sld [smem:[%s12263_s0 + %s10986_s28]]   ;;  %s10990_s28 = smov 29  }
  0x32   :  { %s11150_s21 = sld [smem:[%s12263_s0 + %s10987_s7]]   ;;  %s10991_s7 = smov 30  }
  0x33   :  { %s11155_s27 = sld [smem:[%s12263_s0 + %s10988_s15]]   ;;  %s10992_s15 = smov 31  }
  0x34   :  { %s11160_s3 = sld [smem:[%s12263_s0 + %s10989_s22]]   ;;  %s10993_s22 = smov 32  }
  0x35   :  { %s11165_s6 = sld [smem:[%s12263_s0 + %s10990_s28]]   ;;  %s10994_s28 = smov 33  }
  0x36   :  { %s11170_s12 = sld [smem:[%s12263_s0 + %s10991_s7]]   ;;  %s10995_s7 = smov 34  }
  0x37   :  { %12338 = sst [smem:[#allocation28_spill]] %s11145_s14 }
  0x38   :  { %12339 = sst [smem:[#allocation29_spill]] %s11150_s21 }
  0x39   :  { %12340 = sst [smem:[#allocation30_spill]] %s11155_s27 }
  0x3a   :  { %12341 = sst [smem:[#allocation31_spill]] %s11160_s3 }
  0x3b   :  { %12342 = sst [smem:[#allocation32_spill]] %s11165_s6 }
  0x3c   :  { %12343 = sst [smem:[#allocation33_spill]] %s11170_s12 }
  0x3d   :  { %s11175_s8 = sld [smem:[%s12263_s0 + %s10992_s15]]   ;;  %s10996_s15 = smov 35  }
  0x3e   :  { %s11180_s19 = sld [smem:[%s12263_s0 + %s10993_s22]]   ;;  %s10997_s22 = smov 36  }
  0x3f   :  { %s11185_s25 = sld [smem:[%s12263_s0 + %s10994_s28]]   ;;  %s10998_s28 = smov 37  }
  0x40   :  { %s11190_s4 = sld [smem:[%s12263_s0 + %s10995_s7]]   ;;  %s10999_s7 = smov 38  }
  0x41   :  { %s11195_s17 = sld [smem:[%s12263_s0 + %s10996_s15]]   ;;  %s11000_s15 = smov 39  }
  0x42   :  { %s11200_s24 = sld [smem:[%s12263_s0 + %s10997_s22]]  }
  0x43   :  { %12344 = sst [smem:[#allocation34_spill]] %s11175_s8 }
  0x44   :  { %12345 = sst [smem:[#allocation35_spill]] %s11180_s19 }
  0x45   :  { %12346 = sst [smem:[#allocation36_spill]] %s11185_s25 }
  0x46   :  { %12347 = sst [smem:[#allocation37_spill]] %s11190_s4 }
  0x47   :  { %12348 = sst [smem:[#allocation38_spill]] %s11195_s17 }
  0x48   :  { %12349 = sst [smem:[#allocation39_spill]] %s11200_s24 }
  0x49   :  { %s11205_s25 = sld [smem:[%s12263_s0 + %s10998_s28]]  }
  0x4a   :  { %s11210_s4 = sld [smem:[%s12263_s0 + %s10999_s7]]  }
  0x4b   :  { %s11215_s30 = sld [smem:[%s12263_s0 + %s11000_s15]]  }
  0x4f   :  { %12350 = sst [smem:[#allocation40_spill]] %s11205_s25 }
  0x50   :  { %12351 = sst [smem:[#allocation41_spill]] %s11210_s4 }
  0x51   :  { %84 = vsyncpa [#allocation3], 0 }
  0x52   :  { %86 = vsyncpa [#allocation3 + $0x1], 0  ;;  %s11217_s22 = smov 0   ;;  %s11219_s23 = smov 0  }
  0x53   :  { %s11221_s26 = smov 0   ;;  %s11223_s28 = smov 0  }
  0x54 LB: > { %s12352_s27 = sld [smem:[#allocation30_spill]]  ;;  %s12353_s25 = sld [smem:[#allocation40_spill]]  ;;  %s10960_s28 = sphi %s11223_s28, %s12409_s28   ;;  %s10956_s26 = sphi %s11221_s26, %s12411_s26   ;;  %s10952_s23 = sphi %s11219_s23, %s12413_s23   ;;  %s10948_s22 = sphi %s11217_s22, %s12412_s22  }
  0x55   : > { %s12354_s24 = sld [smem:[#allocation39_spill]]  ;;  %s12355_s21 = sld [smem:[#allocation29_spill]] }
  0x56   : > { %s12356_s19 = sld [smem:[#allocation35_spill]]  ;;  %s12357_s17 = sld [smem:[#allocation38_spill]] }
  0x57   : > { %s12358_s14 = sld [smem:[#allocation28_spill]]  ;;  %s12359_s8 = sld [smem:[#allocation34_spill]] }
  0x58   : > { %s12360_s12 = sld [smem:[#allocation33_spill]]  ;;  %s12361_s6 = sld [smem:[#allocation32_spill]] }
  0x59   : > { %s12362_s4 = sld [smem:[#allocation41_spill]]  ;;  %s12363_s3 = sld [smem:[#allocation31_spill]] }
  0x5a   : > { %12364 = sst [smem:[#allocation42_spill]] %s10948_s22  ;;  %s11238_s0 = sadd.s32 4294967295, %s10960_s28  }
  0x5b   : > { %12365 = sst [smem:[#allocation43_spill]] %s10956_s26  ;;  %s9372_s1 = sadd.s32 4294967294, %s10960_s28  }
  0x5c   : > { %s11242_s2 = sadd.s32 1, %s10960_s28   ;;  %s943_s7 = sadd.s32 1, %s10956_s26 }
  0x5d   : > { %12366 = sst [smem:[#allocation44_spill]] %s11242_s2  ;;  %s940_s10 = ssub.s32 %s10960_s28, %s11242_s2 }
  0x5e   : > { %p953_p0 = scmp.ne.s32.totalorder %s10956_s26, %s10952_s23  ;;  %p941_p1 = scmp.eq.s32.totalorder %s940_s10, 0 }
  0x5f   : > { %p954_p2 = scmp.eq.s32.totalorder %s11238_s0, 1  ;;  %p959_p3 = scmp.ne.s32.totalorder %s10952_s23, %s10948_s22 }
  0x60   : > { %p960_p4 = scmp.eq.s32.totalorder %s9372_s1, 1  ;;  %p9375_p7 = scmp.ge.s32.totalorder %s10960_s28, 1 }
  0x61   : > { %s11253_s11 = scalar_select %p941_p1, %s10956_s26, %s943_s7  }
  0x62   : > { %p11255_p5 = por %p954_p2, %p953_p0  ;;  %p11259_p6 = por %p960_p4, %p959_p3 }
  0x63   : > { %12367 = sst [smem:[#allocation45_spill]] %s11253_s11  ;;  %p1115_p8 = scmp.lt.s32.totalorder %s10960_s28, 3 }
  0x64   : > { %s12368_s15 = scalar_select %p11255_p5, 1, 0 }
  0x65   : > { %s12370_s16 = scalar_select %p11259_p6, 1, 0 }
  0x66   : > { %12369 = sst [smem:[#allocation46_spill]] %s12368_s15  ;;  %p1116_p9 = pnand %p9375_p7, %p1115_p8 }
  0x67   : > { %12371 = sst [smem:[#allocation47_spill]] %s12370_s16  ;;  %s12372_s5 = sld [smem:[#allocation5_spill]] (!%p1116_p9)  ;;  %vm1250_vm0 = vcmask (!%p1116_p9), 261120   ;;  %v1279_v2 = vld [vmem:[%s12362_s4] sm:$0xff] (!%p1116_p9)  ;;  %v1280_v3 = vld [vmem:[%s12362_s4 + $0x8] sm:$0xff] (!%p1116_p9)  ;;  %v1281_v4 = vld [vmem:[%s12362_s4 + $0x10] sm:$0xff] (!%p1116_p9) }
  0x68   : > { %1119 = sbr.rel (%p1116_p9) target bundleno = 20417 (0x4fc1), region = 176  ;;  %p1226_p10 = scmp.lt.s32.totalorder (!%p1116_p9), %s11238_s0, 1  ;;  %v10718_v5 = vpack.i.bf16 (!%p1116_p9), %v1280_v3, %v1279_v2  ;;  %v1282_v6 = vld [vmem:[%s12362_s4 + $0x18] sm:$0xff] (!%p1116_p9)  ;;  %v10487_v14 = vpack.c.bf16 (!%p1116_p9), %v1280_v3, %v1279_v2  ;;  %v11002_v15 = vmov (!%p1116_p9), 0.0|0.0   ;;  %vm11003_vm1 = vmmov (!%p1116_p9), 0  }
  0x69   : > { %s12292_s10 = smov (!%p1116_p9), 96   ;;  %v10723_v7 = vpack.i.bf16 (!%p1116_p9), %v1282_v6, %v1281_v4  ;;  %10486 = vmatprep.subr.bf16.mxu0 (!%p1116_p9), %v11002_v15  ;;  %10492 = vmatprep.subr.bf16.mxu1 (!%p1116_p9), %v11002_v15  ;;  %v10490_v18 = vpack.c.bf16 (!%p1116_p9), %v1282_v6, %v1281_v4  ;;  %v11004_v19 = vmov (!%p1116_p9), 0.0   ;;  %v9384_v25 = vld [vmem:[%s12363_s3] ss:$0 sm:$0xff] (!%p1116_p9)  ;;  %s12373_s13 = sld [smem:[#allocation7_spill]] (!%p1116_p9)  ;;  %vm1457_vm2 = vcmask (!%p1116_p9), 64512  }
  0x6a   : > { %10719 = vrot.lane.b32.xlu1 (!%p1116_p9), %v10718_v5, %s12292_s10  ;;  %10488 = vmatpush3.bf16.msra.mxu0 (!%p1116_p9), %v10487_v14  ;;  %v9382_v30 = vld [vmem:[%s12360_s12] ss:$0 sm:$0xff] (!%p1116_p9)  ;;  %vm2556_vm4 = vcmask (!%p1116_p9), 523264   ;;  %s12380_s9 = sld [smem:[#allocation6_spill]] (!%p1116_p9)  ;;  %s12398_s11 = sld [smem:[#allocation21_spill]] (!%p1116_p9) }
  0x6b   : > { %9882 = vmatprep.mubr.msk.f32.mxu0 (!%p1116_p9), %vm11003_vm1, %v11004_v19  ;;  %10489 = vmatprep.subr.bf16.mxu0 (!%p1116_p9), %v11002_v15  ;;  %v9383_v32 = vld [vmem:[%s12361_s6] ss:$0 sm:$0xff] (!%p1116_p9)  ;;  %s12399_s26 = sld [smem:[#allocation20_spill]] (!%p1116_p9)  ;;  %s12401_s16 = sld [smem:[#allocation10_spill]] (!%p1116_p9) }
  0x6c   : > { %9893 = vmatprep.mubr.msk.f32.mxu1 (!%p1116_p9), %vm11003_vm1, %v11004_v19  ;;  %s12402_s22 = sld [smem:[#allocation11_spill]] (!%p1116_p9) }
  0x6e   : > { %10724 = vrot.lane.b32.xlu1 (!%p1116_p9), %v10723_v7, %s12292_s10  ;;  %10491 = vmatpush3.bf16.msra.mxu0 (!%p1116_p9), %v10490_v18 }
  0x6f   : > { %s1227_s18 = scalar_select %p1226_p10, %s11238_s0, 1  ;;  %9896 = vmatprep.subr.mxu0 %v11004_v19 }
  0x71   : > { %s11267_s1 = sshll.u32 %s1227_s18, 3  ;;  %s12400_s2 = smov %s12399_s26 }
  0x72   : > { %s1229_s7 = scalar_lea.vmem %s12372_s5, %s11267_s1  ;;  %s1237_s18 = scalar_lea.vmem %s12373_s13, %s11267_s1 }
  0x73   : > { %v11271_v0 = vld [vmem:[%s1229_s7] sm:$0xff]  ;;  %s12280_s7 = smov 120   ;;  %s12379_s5 = smov 72  }
  0x74   : > { %v1251_v1 = vsel %vm1250_vm0, %v11271_v0, 0.0  ;;  %v11316_v42 = vld [vmem:[%s1237_s18] sm:$0xff]  ;;  %s12282_s18 = smov 88   ;;  %s12403_s15 = smov %s12402_s22 }
  0x75   : > { %1252 = vadd.xlane.f32.xlu0 %v1251_v1  ;;  %vm1535_vm3 = vcmp.eq.f32.partialorder %v11316_v42, 0.0  ;;  %v9422_v42 = vld [vmem:[%s12353_s25 + $0x38] sm:$0xff] }
  0xdc   : > { %v10720_v13 = vpop.permute.xlu1 %10719 }
  0xdd   : > { %v10722_v16 = vunpack.i.h.bf16 %v10720_v13  ;;  %v10721_v17 = vunpack.i.l.bf16 %v10720_v13  ;;  %v1284_v13 = vld [vmem:[%s12353_s25] sm:$0xff] }
  0xdf   : > { %v10493_v20 = vpack.c.bf16 %v10722_v16, %v10721_v17 }
  0xe0   : > { %v10725_v21 = vpop.permute.xlu1 %10724 }
  0xe1   : > { %v10727_v22 = vunpack.i.h.bf16 %v10725_v21  ;;  %v10726_v23 = vunpack.i.l.bf16 %v10725_v21  ;;  %10494 = vmatpush3.bf16.msra.mxu1 %v10493_v20 }
  0xe2   : > { %10495 = vmatprep.subr.bf16.mxu1 %v11002_v15 }
  0xe3   : > { %v10496_v24 = vpack.c.bf16 %v10727_v22, %v10726_v23 }
  0xe5   : > { %10497 = vmatpush3.bf16.msra.mxu1 %v10496_v24 }
  0xe6   : > { %9911 = vmatprep.subr.mxu1 %v11004_v19 }
 0x102   : > { %v1253_v8 = vpop.xlane.xlu0 %1252 }
 0x103   : > { %v1255_v9 = vmul.f32 0.03125, %v1253_v8 }
 0x105   : > { %v1256_v10 = vsub.f32 %v11271_v0, %v1255_v9  ;;  %v1285_v9 = vld [vmem:[%s12353_s25 + $0x8] sm:$0xff] }
 0x107   : > { %v1257_v11 = vmul.f32 %v1256_v10, %v1256_v10 }
 0x109   : > { %v1258_v12 = vsel %vm1250_vm0, %v1257_v11, 0.0 }
 0x10a   : > { %1259 = vadd.xlane.f32.xlu0 %v1258_v12 }
 0x120   : > { %1384 = vrot.lane.b32.xlu0 %v9384_v25, %s12292_s10 }
 0x197   : > { %v1260_v26 = vpop.xlane.xlu0 %1259 }
 0x198   : > { %v1261_v27 = vmul.f32 0.03125, %v1260_v26 }
 0x19a   : > { %v1262_v28 = vadd.f32 1e-06, %v1261_v27 }
 0x19b   : > { %v1385_v35 = vpop.permute.xlu0 %1384 }
 0x19c   : > { %10778 = vrsqrt.f32 %v1262_v28 }
 0x1a6   : > { %v10779_v29 = vpop.eup %10778 }
 0x1a7   : > { %v1264_v31 = vmul.f32 %v10779_v29, %v1256_v10 }
 0x1a9   : > { %v1271_v33 = vmul.f32 %v9382_v30, %v1264_v31 }
 0x1ab   : > { %v1278_v34 = vadd.f32 %v9383_v32, %v1271_v33 }
 0x1ad   : > { %9883 = vmatmul.mubr.msk.f32.vlgmr.msra.gmra.mrb[0].mxu0 %vm1250_vm0, %v1278_v34  ;;  %9894 = vmatmul.mubr.msk.f32.vlgmr.msra.gmra.mrb[0].mxu1 %vm1250_vm0, %v1278_v34 }
 0x1ae   : > { %9898 = vmatprep.mubr.msk.f32.mxu0 %vm11003_vm1, %v11004_v19  ;;  %9913 = vmatprep.mubr.msk.f32.mxu1 %vm11003_vm1, %v11004_v19 }
 0x280   : > { %v1364_v36 = vpop.f32.mrb[0].mxu0  ;;  %v1453_v37 = vpop.f32.mrb[0].mxu1 }
 0x281   : > { %v11303_v38 = vadd.f32 %v1453_v37, %v1385_v35  ;;  %v9884_v39 = vpop.f32.mrb[1].mxu0  ;;  %v9895_v40 = vpop.f32.mrb[1].mxu1  ;;  %v11307_v41 = vadd.f32 %v9384_v25, %v1364_v36 }
 0x283   : > { %9897 = vmatpush3.xpose.msk.msra.mxu0 %vm1457_vm2, %v11303_v38 }
 0x284   : > { %9901 = vmatprep.subr.mxu0 %v11004_v19 }
 0x286   : > { %9899 = vmatmul.mubr.msk.f32.vlgmr.msra.gmra.mrb[2].mxu0 %vm1457_vm2, %v11307_v41 }
 0x287   : > { %9903 = vmatprep.mubr.msk.f32.mxu0 %vm11003_vm1, %v11004_v19 }
 0x359   : > { %v1530_v43 = vpop.f32.mrb[2].mxu0 }
 0x35a   : > { %v1534_v44 = vmul.f32 0.35355338, %v1530_v43  ;;  %v9900_v45 = vpop.f32.mrb[3].mxu0  ;;  %v1286_v43 = vld [vmem:[%s12353_s25 + $0x10] sm:$0xff] }
 0x35c   : > { %v1536_v46 = vsel %vm1535_vm3, -1e+09, %v1534_v44 }
 0x35d   : > { %v1537_v47 = vsel %vm1457_vm2, %v1536_v46, -inf }
 0x35e   : > { %1538 = vmax.xlane.f32.xlu1 %v1537_v47 }
 0x36f   : > { %1548 = vrot.lane.b32.xlu1 %v11303_v38, %s12292_s10 }
 0x373   : > { %1624 = vrot.lane.b32.xlu1 %v11307_v41, %s12280_s7 }
 0x3eb   : > { %v1539_v48 = vpop.xlane.xlu1 %1538 }
 0x3ec   : > { %v1540_v49 = vsub.f32 %v1536_v46, %v1539_v48 }
 0x3ee   : > { %v1541_v50 = vmul.f32 1.442695, %v1540_v49 }
 0x3ef   : > { %v1549_v51 = vpop.permute.xlu1 %1548 }
 0x3f0   : > { %10780 = vpow2.f32 %v1541_v50  ;;  %9902 = vmatpush3.msra.mxu0 %v1549_v51 }
 0x3f1   : > { %9906 = vmatprep.subr.mxu0 %v11004_v19 }
 0x3f3   : > { %v1625_v58 = vpop.permute.xlu1 %1624 }
 0x3fa   : > { %v10781_v52 = vpop.eup %10780 }
 0x3fb   : > { %v1543_v53 = vsel %vm1457_vm2, %v10781_v52, 0.0 }
 0x3fc   : > { %1544 = vadd.xlane.f32.xlu0 %v1543_v53 }
 0x412   : > { %1626 = vrot.lane.b32.xlu0 %v11303_v38, %s12280_s7  ;;  %s12284_s7 = smov 112  }
 0x489   : > { %v1545_v54 = vpop.xlane.xlu0 %1544 }
 0x48a   : > { %10782 = vrcp.f32 %v1545_v54 }
 0x48d   : > { %v1627_v57 = vpop.permute.xlu0 %1626 }
 0x494   : > { %v10783_v55 = vpop.eup %10782 }
 0x495   : > { %v1547_v56 = vmul.f32 %v10783_v55, %v10781_v52 }
 0x497   : > { %9904 = vmatmul.mubr.msk.f32.vlgmr.msra.gmra.mrb[4].mxu0 %vm1457_vm2, %v1547_v56 }
 0x498   : > { %9907 = vmatpush3.xpose.msk.msra.mxu0 %vm1457_vm2, %v1627_v57  ;;  %9908 = vmatprep.mubr.msk.f32.mxu0 %vm11003_vm1, %v11004_v19  ;;  %v1287_v57 = vld [vmem:[%s12353_s25 + $0x18] sm:$0xff] }
 0x499   : > { %9916 = vmatprep.subr.mxu0 %v11004_v19 }
 0x49b   : > { %9909 = vmatmul.mubr.msk.f32.vlgmr.msra.gmra.mrb[6].mxu0 %vm1457_vm2, %v1625_v58 }
 0x49c   : > { %9918 = vmatprep.mubr.msk.f32.mxu0 %vm11003_vm1, %v11004_v19  ;;  %9917 = vmatpush3.msra.mxu0 %v1285_v9 }
 0x49d   : > { %9926 = vmatprep.subr.mxu0 %v11004_v19 }
 0x56a   : > { %v1620_v59 = vpop.f32.mrb[4].mxu0 }
 0x56b   : > { %v9905_v60 = vpop.f32.mrb[5].mxu0 }
 0x56e   : > { %v1698_v61 = vpop.f32.mrb[6].mxu0 }
 0x56f   : > { %v1702_v62 = vmul.f32 0.35355338, %v1698_v61  ;;  %v9910_v63 = vpop.f32.mrb[7].mxu0 }
 0x571   : > { %v1703_v1 = vsel %vm1535_vm3, -1e+09, %v1702_v62 }
 0x572   : > { %v1704_v2 = vsel %vm1457_vm2, %v1703_v1, -inf }
 0x573   : > { %1705 = vmax.xlane.f32.xlu1 %v1704_v2  ;;  %v9403_v2 = vld [vmem:[%s12352_s27] ss:$0 sm:$0xff] }
 0x584   : > { %1715 = vrot.lane.b32.xlu1 %v11303_v38, %s12282_s18  ;;  %s12286_s18 = smov 80  }
 0x588   : > { %1937 = vrot.lane.b32.xlu1 %v11307_v41, %s12284_s7 }
 0x600   : > { %v1706_v3 = vpop.xlane.xlu1 %1705 }
 0x601   : > { %v1707_v4 = vsub.f32 %v1703_v1, %v1706_v3 }
 0x603   : > { %v1708_v5 = vmul.f32 1.442695, %v1707_v4 }
 0x604   : > { %v1716_v6 = vpop.permute.xlu1 %1715 }
 0x605   : > { %10784 = vpow2.f32 %v1708_v5  ;;  %9912 = vmatpush3.msra.mxu1 %v1716_v6 }
 0x606   : > { %9921 = vmatprep.subr.mxu1 %v11004_v19 }
 0x608   : > { %v1938_v18 = vpop.permute.xlu1 %1937 }
 0x60f   : > { %v10785_v7 = vpop.eup %10784 }
 0x610   : > { %v1710_v8 = vsel %vm1457_vm2, %v10785_v7, 0.0 }
 0x611   : > { %1711 = vadd.xlane.f32.xlu0 %v1710_v8 }
 0x627   : > { %1939 = vrot.lane.b32.xlu0 %v11303_v38, %s12284_s7  ;;  %s12290_s7 = smov 104  }
 0x69e   : > { %v1712_v10 = vpop.xlane.xlu0 %1711 }
 0x69f   : > { %10786 = vrcp.f32 %v1712_v10 }
 0x6a2   : > { %v1940_v16 = vpop.permute.xlu0 %1939 }
 0x6a9   : > { %v10787_v11 = vpop.eup %10786 }
 0x6aa   : > { %v1714_v12 = vmul.f32 %v10787_v11, %v10785_v7 }
 0x6ac   : > { %9914 = vmatmul.mubr.msk.f32.vlgmr.msra.gmra.mrb[2].mxu1 %vm1457_vm2, %v1714_v12 }
 0x6ad   : > { %9922 = vmatpush3.msra.mxu1 %v1284_v13  ;;  %9923 = vmatprep.mubr.msk.f32.mxu1 %vm11003_vm1, %v11004_v19 }
 0x6ae   : > { %9931 = vmatprep.subr.mxu1 %v11004_v19 }
 0x6b0   : > { %9924 = vmatmul.mubr.msk.f32.vlgmr.msra.gmra.mrb[4].mxu1 %vm1457_vm2, %v1620_v59 }
 0x6b1   : > { %9933 = vmatprep.mubr.msk.f32.mxu1 %vm11003_vm1, %v11004_v19 }
 0x77f   : > { %v1787_v14 = vpop.f32.mrb[2].mxu1 }
 0x780   : > { %v9915_v17 = vpop.f32.mrb[3].mxu1  ;;  %9919 = vmatmul.mubr.msk.f32.vlgmr.msra.gmra.mrb[8].mxu0 %vm1457_vm2, %v1787_v14  ;;  %v2456_v14 = vld [vmem:[%s12357_s17] sm:$0xff] }
 0x781   : > { %9927 = vmatpush3.xpose.msk.msra.mxu0 %vm1457_vm2, %v1940_v16  ;;  %9928 = vmatprep.mubr.msk.f32.mxu0 %vm11003_vm1, %v11004_v19  ;;  %v2457_v16 = vld [vmem:[%s12357_s17 + $0x8] sm:$0xff]  ;;  %v2458_v17 = vld [vmem:[%s12357_s17 + $0x10] sm:$0xff] }
 0x782   : > { %9936 = vmatprep.subr.mxu0 %v11004_v19 }
 0x783   : > { %v1933_v20 = vpop.f32.mrb[4].mxu1 }
 0x784   : > { %v9925_v21 = vpop.f32.mrb[5].mxu1  ;;  %9929 = vmatmul.mubr.msk.f32.vlgmr.msra.gmra.mrb[10].mxu0 %vm1457_vm2, %v1938_v18  ;;  %v2459_v18 = vld [vmem:[%s12357_s17 + $0x18] sm:$0xff] }
 0x785   : > { %9938 = vmatprep.mubr.msk.f32.mxu0 %vm11003_vm1, %v11004_v19  ;;  %9937 = vmatpush3.msra.mxu0 %v1286_v43  ;;  %v2461_v21 = vld [vmem:[%s12354_s24] sm:$0xff] }
 0x786   : > { %9946 = vmatprep.subr.mxu0 %v11004_v19 }
 0x853   : > { %v1860_v22 = vpop.f32.mrb[8].mxu0 }
 0x854   : > { %v11367_v23 = vadd.f32 %v1933_v20, %v1860_v22  ;;  %v9920_v24 = vpop.f32.mrb[9].mxu0  ;;  %v10502_v20 = vpack.c.bf16 %v2459_v18, %v2458_v17  ;;  %v2462_v22 = vld [vmem:[%s12354_s24 + $0x8] sm:$0xff] }
 0x855   : > { %v10505_v24 = vpack.c.bf16 %v2462_v22, %v2461_v21 }
 0x857   : > { %v2011_v25 = vpop.f32.mrb[10].mxu0 }
 0x858   : > { %v2015_v26 = vmul.f32 0.35355338, %v2011_v25  ;;  %v9930_v27 = vpop.f32.mrb[11].mxu0  ;;  %v2464_v25 = vld [vmem:[%s12354_s24 + $0x18] sm:$0xff] }
 0x859   : > { %v2465_v27 = vld [vmem:[%s12354_s24 + $0x20] sm:$0xff] }
 0x85a   : > { %v2016_v28 = vsel %vm1535_vm3, -1e+09, %v2015_v26 }
 0x85b   : > { %v2017_v29 = vsel %vm1457_vm2, %v2016_v28, -inf }
 0x85c   : > { %2018 = vmax.xlane.f32.xlu1 %v2017_v29 }
 0x86d   : > { %2028 = vrot.lane.b32.xlu1 %v11303_v38, %s12286_s18  ;;  %s12288_s18 = smov 72  }
 0x871   : > { %2178 = vrot.lane.b32.xlu1 %v11307_v41, %s12290_s7 }
 0x8e9   : > { %v2019_v30 = vpop.xlane.xlu1 %2018 }
 0x8ea   : > { %v2020_v31 = vsub.f32 %v2016_v28, %v2019_v30  ;;  %v2466_v28 = vld [vmem:[%s12354_s24 + $0x28] sm:$0xff] }
 0x8eb   : > { %v10511_v29 = vpack.c.bf16 %v2466_v28, %v2465_v27 }
 0x8ec   : > { %v2021_v32 = vmul.f32 1.442695, %v2020_v31 }
 0x8ed   : > { %v2029_v33 = vpop.permute.xlu1 %2028 }
 0x8ee   : > { %10788 = vpow2.f32 %v2021_v32  ;;  %9932 = vmatpush3.msra.mxu1 %v2029_v33 }
 0x8ef   : > { %9941 = vmatprep.subr.mxu1 %v11004_v19 }
 0x8f1   : > { %v2179_v41 = vpop.permute.xlu1 %2178 }
 0x8f8   : > { %v10789_v34 = vpop.eup %10788 }
 0x8f9   : > { %v2023_v35 = vsel %vm1457_vm2, %v10789_v34, 0.0 }
 0x8fa   : > { %2024 = vadd.xlane.f32.xlu0 %v2023_v35 }
 0x910   : > { %2180 = vrot.lane.b32.xlu0 %v11303_v38, %s12290_s7  ;;  %s12375_s7 = smov 112  }
 0x987   : > { %v2025_v36 = vpop.xlane.xlu0 %2024 }
 0x988   : > { %10790 = vrcp.f32 %v2025_v36  ;;  %v9405_v36 = vld [vmem:[%s12359_s8] ss:$0 sm:$0xff] }
 0x98b   : > { %v2181_v40 = vpop.permute.xlu0 %2180 }
 0x992   : > { %v10791_v37 = vpop.eup %10790 }
 0x993   : > { %v2027_v39 = vmul.f32 %v10791_v37, %v10789_v34  ;;  %v9404_v34 = vld [vmem:[%s12356_s19] ss:$0 sm:$0xff] }
 0x995   : > { %9934 = vmatmul.mubr.msk.f32.vlgmr.msra.gmra.mrb[6].mxu1 %vm1457_vm2, %v2027_v39 }
 0x996   : > { %9942 = vmatpush3.xpose.msk.msra.mxu1 %vm1457_vm2, %v2181_v40  ;;  %9943 = vmatprep.mubr.msk.f32.mxu1 %vm11003_vm1, %v11004_v19  ;;  %v2467_v40 = vld [vmem:[%s12354_s24 + $0x30] sm:$0xff] }
 0x997   : > { %9951 = vmatprep.subr.mxu1 %v11004_v19 }
 0x999   : > { %9944 = vmatmul.mubr.msk.f32.vlgmr.msra.gmra.mrb[8].mxu1 %vm1457_vm2, %v2179_v41  ;;  %v2468_v41 = vld [vmem:[%s12354_s24 + $0x38] sm:$0xff] }
 0x99a   : > { %9953 = vmatprep.mubr.msk.f32.mxu1 %vm11003_vm1, %v11004_v19  ;;  %9952 = vmatpush3.msra.mxu1 %v1287_v57  ;;  %v10514_v43 = vpack.c.bf16 %v2468_v41, %v2467_v40  ;;  %v9416_v57 = vld [vmem:[%s12362_s4 + $0x30] sm:$0xff] }
 0x99b   : > { %10504 = vmatprep.subr.bf16.mxu1 %v11002_v15 }
 0xa68   : > { %v2100_v44 = vpop.f32.mrb[6].mxu1 }
 0xa69   : > { %v9935_v45 = vpop.f32.mrb[7].mxu1  ;;  %9939 = vmatmul.mubr.msk.f32.vlgmr.msra.gmra.mrb[12].mxu0 %vm1457_vm2, %v2100_v44  ;;  %v9406_v44 = vld [vmem:[%s12358_s14] ss:$0 sm:$0xff] }
 0xa6a   : > { %9948 = vmatprep.mubr.msk.f32.mxu0 %vm11003_vm1, %v11004_v19 }
 0xa6c   : > { %v2252_v46 = vpop.f32.mrb[8].mxu1 }
 0xa6d   : > { %v2256_v47 = vmul.f32 0.35355338, %v2252_v46  ;;  %v9945_v48 = vpop.f32.mrb[9].mxu1 }
 0xa6f   : > { %v2257_v49 = vsel %vm1535_vm3, -1e+09, %v2256_v47 }
 0xa70   : > { %v2258_v50 = vsel %vm1457_vm2, %v2257_v49, -inf }
 0xa71   : > { %2259 = vmax.xlane.f32.xlu1 %v2258_v50 }
 0xa82   : > { %2269 = vrot.lane.b32.xlu1 %v11303_v38, %s12288_s18  ;;  %s12374_s18 = smov 120  }
 0xafe   : > { %v2260_v51 = vpop.xlane.xlu1 %2259 }
 0xaff   : > { %v2261_v52 = vsub.f32 %v2257_v49, %v2260_v51  ;;  %v9408_v49 = vld [vmem:[%s12355_s21] ss:$0 sm:$0xff] }
 0xb01   : > { %v2262_v53 = vmul.f32 1.442695, %v2261_v52 }
 0xb02   : > { %v2270_v54 = vpop.permute.xlu1 %2269 }
 0xb03   : > { %10792 = vpow2.f32 %v2262_v53  ;;  %9947 = vmatpush3.msra.mxu0 %v2270_v54 }
 0xb04   : > { %10498 = vmatprep.subr.bf16.mxu0 %v11002_v15 }
 0xb0d   : > { %v10793_v55 = vpop.eup %10792 }
 0xb0e   : > { %v2264_v56 = vsel %vm1457_vm2, %v10793_v55, 0.0 }
 0xb0f   : > { %2265 = vadd.xlane.f32.xlu0 %v2264_v56  ;;  %v9415_v56 = vld [vmem:[%s12362_s4 + $0x28] sm:$0xff] }
 0xb3c   : > { %v2173_v58 = vpop.f32.mrb[12].mxu0 }
 0xb3d   : > { %v2177_v38 = vadd.f32 %v2173_v58, %v11367_v23  ;;  %v9940_v59 = vpop.f32.mrb[13].mxu0  ;;  %v2463_v23 = vld [vmem:[%s12354_s24 + $0x10] sm:$0xff] }
 0xb3e   : > { %v10508_v26 = vpack.c.bf16 %v2464_v25, %v2463_v23  ;;  %v9417_v59 = vld [vmem:[%s12362_s4 + $0x38] sm:$0xff] }
 0xb9c   : > { %v2266_v60 = vpop.xlane.xlu0 %2265 }
 0xb9d   : > { %10794 = vrcp.f32 %v2266_v60  ;;  %v10733_v60 = vpack.i.bf16 %v9417_v59, %v9416_v57 }
 0xba7   : > { %v10795_v61 = vpop.eup %10794 }
 0xba8   : > { %v2268_v62 = vmul.f32 %v10795_v61, %v10793_v55  ;;  %v9414_v55 = vld [vmem:[%s12362_s4 + $0x20] sm:$0xff]  ;;  %v10520_v61 = vpack.c.bf16 %v9417_v59, %v9416_v57  ;;  %s12378_s4 = smov 80  }
 0xba9   : > { %v10728_v58 = vpack.i.bf16 %v9415_v56, %v9414_v55 }
 0xbaa   : > { %9949 = vmatmul.mubr.msk.f32.vlgmr.msra.gmra.mrb[14].mxu0 %vm1457_vm2, %v2268_v62 }
 0xbab   : > { %9964 = vmatprep.mubr.msk.f32.mxu0 %vm11003_vm1, %v11004_v19  ;;  %10729 = vrot.lane.b32.xlu1 %v10728_v58, %s12292_s10 }
 0xc7d   : > { %v2341_v63 = vpop.f32.mrb[14].mxu0 }
 0xc7e   : > { %v9950_v1 = vpop.f32.mrb[15].mxu0  ;;  %9954 = vmatmul.mubr.msk.f32.vlgmr.msra.gmra.mrb[10].mxu1 %vm1457_vm2, %v2341_v63 }
 0xc7f   : > { %9983 = vmatprep.mubr.msk.f32.mxu1 %vm11003_vm1, %v11004_v19  ;;  %10506 = vmatpush3.bf16.msra.mxu1 %v10505_v24 }
 0xc80   : > { %10507 = vmatprep.subr.bf16.mxu1 %v11002_v15 }
 0xc83   : > { %10509 = vmatpush3.bf16.msra.mxu1 %v10508_v26 }
 0xc84   : > { %10510 = vmatprep.subr.bf16.mxu1 %v11002_v15 }
 0xc87   : > { %10512 = vmatpush3.bf16.msra.mxu1 %v10511_v29 }
 0xc88   : > { %10513 = vmatprep.subr.bf16.mxu1 %v11002_v15 }
 0xc8b   : > { %10515 = vmatpush3.bf16.msra.mxu1 %v10514_v43 }
 0xc8c   : > { %10008 = vmatprep.subr.mxu1 %v11004_v19 }
 0xd51   : > { %v2414_v3 = vpop.f32.mrb[10].mxu1 }
 0xd52   : > { %v2418_v4 = vadd.f32 %v2414_v3, %v2177_v38  ;;  %v9955_v5 = vpop.f32.mrb[11].mxu1  ;;  %v10517_v38 = vpack.c.bf16 %v9415_v56, %v9414_v55 }
 0xd54   : > { %v2425_v6 = vadd.f32 %v9403_v2, %v2418_v4  ;;  %v9424_v4 = vld [vmem:[%s12363_s3 + $0x1] ss:$0 sm:$0xff]  ;;  %s12377_s3 = smov 104  }
 0xd55   : > { %2771 = vrot.lane.b32.xlu1 %v9424_v4, %s12292_s10 }
 0xd56   : > { %v11411_v7 = vadd.f32 %v2425_v6, %v11271_v0  ;;  %v10499_v0 = vpack.c.bf16 %v2457_v16, %v2456_v14  ;;  %v9413_v16 = vld [vmem:[%s12361_s6 + $0x1] ss:$0 sm:$0xff]  ;;  %s1233_s6 = scalar_lea.vmem %s12380_s9, %s11267_s1  ;;  %s12382_s9 = sld [smem:[#allocation17_spill]] }
 0xd58   : > { %v2429_v8 = vsel %vm1250_vm0, %v11411_v7, 0.0  ;;  %10500 = vmatpush3.bf16.msra.mxu0 %v10499_v0 }
 0xd59   : > { %2430 = vadd.xlane.f32.xlu0 %v2429_v8  ;;  %10501 = vmatprep.subr.bf16.mxu0 %v11002_v15  ;;  %v10730_v8 = vpop.permute.xlu1 %10729 }
 0xd5c   : > { %10503 = vmatpush3.bf16.msra.mxu0 %v10502_v20 }
 0xd5d   : > { %10516 = vmatprep.subr.bf16.mxu0 %v11002_v15 }
 0xdc7   : > { %v2772_v25 = vpop.permute.xlu1 %2771 }
 0xde6   : > { %v2431_v9 = vpop.xlane.xlu0 %2430 }
 0xde7   : > { %v2432_v10 = vmul.f32 0.03125, %v2431_v9 }
 0xde9   : > { %v2433_v11 = vsub.f32 %v11411_v7, %v2432_v10  ;;  %v10732_v10 = vunpack.i.h.bf16 %v10730_v8 }
 0xdeb   : > { %v2434_v12 = vmul.f32 %v2433_v11, %v2433_v11 }
 0xded   : > { %v2435_v13 = vsel %vm1250_vm0, %v2434_v12, 0.0  ;;  %v9412_v12 = vld [vmem:[%s12360_s12 + $0x1] ss:$0 sm:$0xff]  ;;  %s12383_s12 = sld [smem:[#allocation16_spill]] }
 0xdee   : > { %2436 = vadd.xlane.f32.xlu0 %v2435_v13 }
 0xe7b   : > { %v2437_v30 = vpop.xlane.xlu0 %2436 }
 0xe7c   : > { %v2438_v31 = vmul.f32 0.03125, %v2437_v30 }
 0xe7e   : > { %v2439_v32 = vadd.f32 1e-06, %v2438_v31 }
 0xe80   : > { %10796 = vrsqrt.f32 %v2439_v32 }
 0xe8a   : > { %v10797_v33 = vpop.eup %10796 }
 0xe8b   : > { %v2441_v35 = vmul.f32 %v10797_v33, %v2433_v11  ;;  %v10731_v11 = vunpack.i.l.bf16 %v10730_v8 }
 0xe8d   : > { %v2448_v37 = vmul.f32 %v9404_v34, %v2441_v35  ;;  %v10523_v17 = vpack.c.bf16 %v10732_v10, %v10731_v11 }
 0xe8f   : > { %v2455_v39 = vadd.f32 %v9405_v36, %v2448_v37 }
 0xe91   : > { %9965 = vmatmul.mubr.msk.f32.vlgmr.msra.gmra.mrb[16].mxu0 %vm1250_vm0, %v2455_v39 }
 0xe92   : > { %9994 = vmatprep.mubr.msk.f32.mxu0 %vm11003_vm1, %v11004_v19  ;;  %10518 = vmatpush3.bf16.msra.mxu0 %v10517_v38  ;;  %v9420_v38 = vld [vmem:[%s12353_s25 + $0x28] sm:$0xff] }
 0xe93   : > { %10519 = vmatprep.subr.bf16.mxu0 %v11002_v15 }
 0xe96   : > { %10521 = vmatpush3.bf16.msra.mxu0 %v10520_v61 }
 0xe97   : > { %10522 = vmatprep.subr.bf16.mxu0 %v11002_v15 }
 0xf64   : > { %v2545_v45 = vpop.f32.mrb[16].mxu0 }
 0xf65   : > { %v2546_v46 = vadd.f32 %v9406_v44, %v2545_v45  ;;  %v9966_v47 = vpop.f32.mrb[17].mxu0 }
 0xf67   : > { %v2549_v48 = vmax.f32 %v2546_v46, 0.0 }
 0xf69   : > { %9984 = vmatmul.mubr.msk.f32.vlgmr.msra.gmra.mrb[12].mxu1 %vm2556_vm4, %v2549_v48 }
 0xf6a   : > { %10010 = vmatprep.mubr.msk.f32.mxu1 %vm11003_vm1, %v11004_v19 }
0x103c   : > { %v2626_v50 = vpop.f32.mrb[12].mxu1 }
0x103d   : > { %v2627_v51 = vadd.f32 %v9408_v49, %v2626_v50  ;;  %v9985_v52 = vpop.f32.mrb[13].mxu1 }
0x103f   : > { %v11446_v53 = vadd.f32 %v2627_v51, %v11411_v7 }
0x1041   : > { %v2635_v54 = vsel %vm1250_vm0, %v11446_v53, 0.0 }
0x1042   : > { %2636 = vadd.xlane.f32.xlu0 %v2635_v54 }
0x10cf   : > { %v2637_v62 = vpop.xlane.xlu0 %2636 }
0x10d0   : > { %v2638_v63 = vmul.f32 0.03125, %v2637_v62 }
0x10d2   : > { %v2639_v1 = vsub.f32 %v11446_v53, %v2638_v63  ;;  %v9419_v63 = vld [vmem:[%s12353_s25 + $0x20] sm:$0xff] }
0x10d4   : > { %v2640_v2 = vmul.f32 %v2639_v1, %v2639_v1 }
0x10d6   : > { %v2641_v3 = vsel %vm1250_vm0, %v2640_v2, 0.0 }
0x10d7   : > { %2642 = vadd.xlane.f32.xlu0 %v2641_v3 }
0x10ed   : > { %10734 = vrot.lane.b32.xlu0 %v10733_v60, %s12292_s10 }
0x1164   : > { %v2643_v5 = vpop.xlane.xlu0 %2642 }
0x1165   : > { %v2644_v6 = vmul.f32 0.03125, %v2643_v5 }
0x1167   : > { %v2645_v7 = vadd.f32 1e-06, %v2644_v6 }
0x1168   : > { %v10735_v14 = vpop.permute.xlu0 %10734 }
0x1169   : > { %10798 = vrsqrt.f32 %v2645_v7  ;;  %v10737_v18 = vunpack.i.h.bf16 %v10735_v14  ;;  %v10736_v20 = vunpack.i.l.bf16 %v10735_v14 }
0x116b   : > { %v10526_v22 = vpack.c.bf16 %v10737_v18, %v10736_v20 }
0x1173   : > { %v10799_v9 = vpop.eup %10798 }
0x1174   : > { %v2647_v13 = vmul.f32 %v10799_v9, %v2639_v1 }
0x1176   : > { %v2654_v0 = vmul.f32 %v9412_v12, %v2647_v13 }
0x1178   : > { %v2661_v21 = vadd.f32 %v9413_v16, %v2654_v0 }
0x117a   : > { %9995 = vmatmul.mubr.msk.f32.vlgmr.msra.gmra.mrb[18].mxu0 %vm1250_vm0, %v2661_v21 }
0x117b   : > { %10524 = vmatpush3.bf16.msra.mxu0 %v10523_v17  ;;  %10005 = vmatprep.mubr.msk.f32.mxu0 %vm11003_vm1, %v11004_v19 }
0x117c   : > { %10525 = vmatprep.subr.bf16.mxu0 %v11002_v15 }
0x117f   : > { %10527 = vmatpush3.bf16.msra.mxu0 %v10526_v22 }
0x1180   : > { %10018 = vmatprep.subr.mxu0 %v11004_v19 }
0x1182   : > { %10006 = vmatmul.mubr.msk.f32.vlgmr.msra.gmra.mrb[20].mxu0 %vm1250_vm0, %v2661_v21 }
0x1183   : > { %10020 = vmatprep.mubr.msk.f32.mxu0 %vm11003_vm1, %v11004_v19 }
0x124d   : > { %v2751_v23 = vpop.f32.mrb[18].mxu0 }
0x124e   : > { %v9996_v24 = vpop.f32.mrb[19].mxu0  ;;  %v11478_v29 = vadd.f32 %v9424_v4, %v2751_v23 }
0x1255   : > { %v2840_v26 = vpop.f32.mrb[20].mxu0 }
0x1256   : > { %v11472_v27 = vadd.f32 %v2840_v26, %v2772_v25  ;;  %v10007_v28 = vpop.f32.mrb[21].mxu0 }
0x1258   : > { %3011 = vrot.lane.b32.xlu1 %v11472_v27, %s12374_s18  ;;  %10009 = vmatpush3.xpose.msk.msra.mxu1 %vm1457_vm2, %v11472_v27 }
0x1259   : > { %10013 = vmatprep.subr.mxu1 %v11004_v19 }
0x125b   : > { %10011 = vmatmul.mubr.msk.f32.vlgmr.msra.gmra.mrb[14].mxu1 %vm1457_vm2, %v11478_v29 }
0x125c   : > { %3009 = vrot.lane.b32.xlu1 %v11478_v29, %s12374_s18  ;;  %10015 = vmatprep.mubr.msk.f32.mxu1 %vm11003_vm1, %v11004_v19 }
0x12ca   : > { %v3012_v30 = vpop.permute.xlu1 %3011 }
0x12cb   : > { %10019 = vmatpush3.xpose.msk.msra.mxu0 %vm1457_vm2, %v3012_v30  ;;  %v9421_v30 = vld [vmem:[%s12353_s25 + $0x30] sm:$0xff]  ;;  %s12392_s25 = sld [smem:[#allocation18_spill]] }
0x12cc   : > { %10028 = vmatprep.subr.mxu0 %v11004_v19 }
0x12ce   : > { %v3010_v31 = vpop.permute.xlu1 %3009 }
0x12cf   : > { %10021 = vmatmul.mubr.msk.f32.vlgmr.msra.gmra.mrb[22].mxu0 %vm1457_vm2, %v3010_v31 }
0x12d0   : > { %10030 = vmatprep.mubr.msk.f32.mxu0 %vm11003_vm1, %v11004_v19  ;;  %10029 = vmatpush3.msra.mxu0 %v9420_v38 }
0x12d1   : > { %10038 = vmatprep.subr.mxu0 %v11004_v19 }
0x132e   : > { %v2916_v32 = vpop.f32.mrb[14].mxu1 }
0x132f   : > { %v2920_v33 = vmul.f32 0.35355338, %v2916_v32  ;;  %v10012_v34 = vpop.f32.mrb[15].mxu1 }
0x1331   : > { %v2921_v35 = vsel %vm1535_vm3, -1e+09, %v2920_v33 }
0x1332   : > { %v2922_v36 = vsel %vm1457_vm2, %v2921_v35, -inf }
0x1333   : > { %2923 = vmax.xlane.f32.xlu1 %v2922_v36 }
0x13a2   : > { %v3083_v37 = vpop.f32.mrb[22].mxu0 }
0x13a3   : > { %v3087_v39 = vmul.f32 0.35355338, %v3083_v37  ;;  %v10022_v40 = vpop.f32.mrb[23].mxu0 }
0x13a5   : > { %v3088_v41 = vsel %vm1535_vm3, -1e+09, %v3087_v39 }
0x13a6   : > { %v3089_v43 = vsel %vm1457_vm2, %v3088_v41, -inf }
0x13a7   : > { %3090 = vmax.xlane.f32.xlu0 %v3089_v43 }
0x13bd   : > { %2933 = vrot.lane.b32.xlu0 %v11472_v27, %s12292_s10  ;;  %s12376_s10 = smov 88  }
0x13c0   : > { %v2924_v44 = vpop.xlane.xlu1 %2923 }
0x13c1   : > { %v2925_v45 = vsub.f32 %v2921_v35, %v2924_v44  ;;  %3322 = vrot.lane.b32.xlu0 %v11478_v29, %s12375_s7 }
0x13c3   : > { %v2926_v46 = vmul.f32 1.442695, %v2925_v45 }
0x13c5   : > { %10800 = vpow2.f32 %v2926_v46 }
0x13cf   : > { %v10801_v47 = vpop.eup %10800 }
0x13d0   : > { %v2928_v48 = vsel %vm1457_vm2, %v10801_v47, 0.0 }
0x13d1   : > { %2929 = vadd.xlane.f32.xlu1 %v2928_v48 }
0x1434   : > { %v3091_v49 = vpop.xlane.xlu0 %3090 }
0x1435   : > { %v3092_v50 = vsub.f32 %v3088_v41, %v3091_v49 }
0x1437   : > { %v3093_v51 = vmul.f32 1.442695, %v3092_v50 }
0x1438   : > { %v2934_v52 = vpop.permute.xlu0 %2933 }
0x1439   : > { %10802 = vpow2.f32 %v3093_v51  ;;  %10014 = vmatpush3.msra.mxu1 %v2934_v52 }
0x143a   : > { %10023 = vmatprep.subr.mxu1 %v11004_v19 }
0x143c   : > { %v3323_v6 = vpop.permute.xlu0 %3322 }
0x1443   : > { %v10803_v54 = vpop.eup %10802 }
0x1444   : > { %v3095_v55 = vsel %vm1457_vm2, %v10803_v54, 0.0 }
0x1445   : > { %3096 = vadd.xlane.f32.xlu1 %v3095_v55 }
0x1456   : > { %3100 = vrot.lane.b32.xlu1 %v11472_v27, %s12376_s10 }
0x145a   : > { %3324 = vrot.lane.b32.xlu1 %v11472_v27, %s12375_s7 }
0x145e   : > { %v2930_v56 = vpop.xlane.xlu1 %2929 }
0x145f   : > { %10804 = vrcp.f32 %v2930_v56 }
0x1469   : > { %v10805_v57 = vpop.eup %10804 }
0x146a   : > { %v2932_v58 = vmul.f32 %v10805_v57, %v10801_v47 }
0x146c   : > { %10016 = vmatmul.mubr.msk.f32.vlgmr.msra.gmra.mrb[16].mxu1 %vm1457_vm2, %v2932_v58 }
0x146d   : > { %10025 = vmatprep.mubr.msk.f32.mxu1 %vm11003_vm1, %v11004_v19 }
0x14d2   : > { %v3097_v59 = vpop.xlane.xlu1 %3096 }
0x14d3   : > { %10806 = vrcp.f32 %v3097_v59  ;;  %v11576_v59 = vld [vmem:[%s1233_s6] sm:$0xff]  ;;  %s12381_s6 = smov 96  }
0x14d6   : > { %v3101_v60 = vpop.permute.xlu1 %3100 }
0x14d7   : > { %10024 = vmatpush3.msra.mxu1 %v3101_v60 }
0x14d8   : > { %10033 = vmatprep.subr.mxu1 %v11004_v19 }
0x14da   : > { %v3325_v4 = vpop.permute.xlu1 %3324 }
0x14dd   : > { %v10807_v61 = vpop.eup %10806 }
0x14de   : > { %v3099_v62 = vmul.f32 %v10807_v61, %v10803_v54  ;;  %v9443_v54 = vld [vmem:[%s12352_s27 + $0x1] ss:$0 sm:$0xff]  ;;  %v4055_v61 = vsel %vm1250_vm0, %v11576_v59, 0.0  ;;  %s12397_s27 = sld [smem:[#allocation27_spill]] }
0x14e0   : > { %10026 = vmatmul.mubr.msk.f32.vlgmr.msra.gmra.mrb[18].mxu1 %vm1457_vm2, %v3099_v62  ;;  %v11583_v62 = vld [vmem:[%s11130_s29] sm:$0xff] }
0x14e1   : > { %10034 = vmatpush3.msra.mxu1 %v9419_v63  ;;  %10035 = vmatprep.mubr.msk.f32.mxu1 %vm11003_vm1, %v11004_v19  ;;  %v11586_v63 = vld [vmem:[%s11130_s29 + $0x8] sm:$0xff] }
0x14e2   : > { %10043 = vmatprep.subr.mxu1 %v11004_v19 }
0x153f   : > { %v3005_v1 = vpop.f32.mrb[16].mxu1 }
0x1540   : > { %v10017_v2 = vpop.f32.mrb[17].mxu1  ;;  %10036 = vmatmul.mubr.msk.f32.vlgmr.msra.gmra.mrb[20].mxu1 %vm1457_vm2, %v3005_v1  ;;  %v10738_v1 = vpack.i.bf16 %v11586_v63, %v11583_v62 }
0x1541   : > { %10045 = vmatprep.mubr.msk.f32.mxu1 %vm11003_vm1, %v11004_v19  ;;  %v11593_v2 = vld [vmem:[%s11130_s29 + $0x10] sm:$0xff] }
0x15b3   : > { %v3172_v3 = vpop.f32.mrb[18].mxu1 }
0x15b4   : > { %v10027_v5 = vpop.f32.mrb[19].mxu1  ;;  %10031 = vmatmul.mubr.msk.f32.vlgmr.msra.gmra.mrb[24].mxu0 %vm1457_vm2, %v3172_v3  ;;  %v11596_v3 = vld [vmem:[%s11130_s29 + $0x18] sm:$0xff] }
0x15b5   : > { %10039 = vmatpush3.xpose.msk.msra.mxu0 %vm1457_vm2, %v3325_v4  ;;  %10040 = vmatprep.mubr.msk.f32.mxu0 %vm11003_vm1, %v11004_v19  ;;  %v10550_v4 = vpack.c.bf16 %v11596_v3, %v11593_v2 }
0x15b6   : > { %10048 = vmatprep.subr.mxu0 %v11004_v19 }
0x15b8   : > { %10041 = vmatmul.mubr.msk.f32.vlgmr.msra.gmra.mrb[26].mxu0 %vm1457_vm2, %v3323_v6 }
0x15b9   : > { %10050 = vmatprep.mubr.msk.f32.mxu0 %vm11003_vm1, %v11004_v19  ;;  %10049 = vmatpush3.msra.mxu0 %v9421_v30 }
0x15ba   : > { %10058 = vmatprep.subr.mxu0 %v11004_v19 }
0x1613   : > { %v3318_v7 = vpop.f32.mrb[20].mxu1 }
0x1614   : > { %v10037_v8 = vpop.f32.mrb[21].mxu1 }
0x1687   : > { %v3245_v9 = vpop.f32.mrb[24].mxu0 }
0x1688   : > { %v3319_v10 = vadd.f32 %v3318_v7, %v3245_v9  ;;  %v10032_v11 = vpop.f32.mrb[25].mxu0 }
0x168b   : > { %v3396_v12 = vpop.f32.mrb[26].mxu0 }
0x168c   : > { %v3400_v13 = vmul.f32 0.35355338, %v3396_v12  ;;  %v10042_v14 = vpop.f32.mrb[27].mxu0 }
0x168e   : > { %v3401_v16 = vsel %vm1535_vm3, -1e+09, %v3400_v13 }
0x168f   : > { %v3402_v0 = vsel %vm1457_vm2, %v3401_v16, -inf }
0x1690   : > { %3403 = vmax.xlane.f32.xlu1 %v3402_v0  ;;  %v9448_v0 = vld [vmem:[%s12357_s17 + $0x20] sm:$0xff] }
0x16a1   : > { %3565 = vrot.lane.b32.xlu1 %v11472_v27, %s12377_s3 }
0x16a5   : > { %3563 = vrot.lane.b32.xlu1 %v11478_v29, %s12377_s3 }
0x171d   : > { %v3404_v17 = vpop.xlane.xlu1 %3403 }
0x171e   : > { %v3405_v18 = vsub.f32 %v3401_v16, %v3404_v17  ;;  %v10743_v16 = vpack.i.bf16 %v11596_v3, %v11593_v2  ;;  %v9449_v17 = vld [vmem:[%s12357_s17 + $0x28] sm:$0xff] }
0x1720   : > { %v3406_v20 = vmul.f32 1.442695, %v3405_v18  ;;  %v10529_v18 = vpack.c.bf16 %v9449_v17, %v9448_v0 }
0x1721   : > { %v3566_v26 = vpop.permute.xlu1 %3565 }
0x1722   : > { %10808 = vpow2.f32 %v3406_v20  ;;  %v9450_v20 = vld [vmem:[%s12357_s17 + $0x30] sm:$0xff] }
0x1725   : > { %v3564_v29 = vpop.permute.xlu1 %3563 }
0x172c   : > { %v10809_v21 = vpop.eup %10808 }
0x172d   : > { %v3408_v22 = vsel %vm1457_vm2, %v10809_v21, 0.0 }
0x172e   : > { %3409 = vadd.xlane.f32.xlu0 %v3408_v22 }
0x1744   : > { %3413 = vrot.lane.b32.xlu0 %v11472_v27, %s12378_s4 }
0x17bb   : > { %v3410_v23 = vpop.xlane.xlu0 %3409 }
0x17bc   : > { %10810 = vrcp.f32 %v3410_v23  ;;  %v11615_v23 = vld [vmem:[%s11120_s20] ss:$0 sm:$0xff] }
0x17bf   : > { %v3414_v24 = vpop.permute.xlu0 %3413 }
0x17c0   : > { %10044 = vmatpush3.msra.mxu1 %v3414_v24  ;;  %v9453_v24 = vld [vmem:[%s12354_s24 + $0x40] sm:$0xff] }
0x17c1   : > { %10053 = vmatprep.subr.mxu1 %v11004_v19 }
0x17c6   : > { %v10811_v25 = vpop.eup %10810 }
0x17c7   : > { %v3412_v28 = vmul.f32 %v10811_v25, %v10809_v21  ;;  %v9451_v21 = vld [vmem:[%s12357_s17 + $0x38] sm:$0xff]  ;;  %v9454_v25 = vld [vmem:[%s12354_s24 + $0x48] sm:$0xff]  ;;  %s12388_s17 = sld [smem:[#allocation13_spill]] }
0x17c8   : > { %v10532_v22 = vpack.c.bf16 %v9451_v21, %v9450_v20 }
0x17c9   : > { %10046 = vmatmul.mubr.msk.f32.vlgmr.msra.gmra.mrb[22].mxu1 %vm1457_vm2, %v3412_v28  ;;  %v9455_v28 = vld [vmem:[%s12354_s24 + $0x50] sm:$0xff] }
0x17ca   : > { %10054 = vmatpush3.xpose.msk.msra.mxu1 %vm1457_vm2, %v3566_v26  ;;  %10055 = vmatprep.mubr.msk.f32.mxu1 %vm11003_vm1, %v11004_v19  ;;  %v10535_v26 = vpack.c.bf16 %v9454_v25, %v9453_v24 }
0x17cb   : > { %10063 = vmatprep.subr.mxu1 %v11004_v19 }
0x17cd   : > { %10056 = vmatmul.mubr.msk.f32.vlgmr.msra.gmra.mrb[24].mxu1 %vm1457_vm2, %v3564_v29  ;;  %v9456_v29 = vld [vmem:[%s12354_s24 + $0x58] sm:$0xff] }
0x17ce   : > { %10065 = vmatprep.mubr.msk.f32.mxu1 %vm11003_vm1, %v11004_v19  ;;  %10064 = vmatpush3.msra.mxu1 %v9422_v42  ;;  %v10538_v30 = vpack.c.bf16 %v9456_v29, %v9455_v28 }
0x17cf   : > { %10534 = vmatprep.subr.bf16.mxu1 %v11002_v15 }
0x189c   : > { %v3485_v31 = vpop.f32.mrb[22].mxu1 }
0x189d   : > { %v10047_v32 = vpop.f32.mrb[23].mxu1  ;;  %10051 = vmatmul.mubr.msk.f32.vlgmr.msra.gmra.mrb[28].mxu0 %vm1457_vm2, %v3485_v31  ;;  %v9457_v31 = vld [vmem:[%s12354_s24 + $0x60] sm:$0xff] }
0x189e   : > { %10060 = vmatprep.mubr.msk.f32.mxu0 %vm11003_vm1, %v11004_v19  ;;  %v9458_v32 = vld [vmem:[%s12354_s24 + $0x68] sm:$0xff] }
0x18a0   : > { %v3637_v33 = vpop.f32.mrb[24].mxu1 }
0x18a1   : > { %v3641_v34 = vmul.f32 0.35355338, %v3637_v33  ;;  %v10057_v35 = vpop.f32.mrb[25].mxu1  ;;  %v10541_v33 = vpack.c.bf16 %v9458_v32, %v9457_v31 }
0x18a3   : > { %v3642_v36 = vsel %vm1535_vm3, -1e+09, %v3641_v34 }
0x18a4   : > { %v3643_v37 = vsel %vm1457_vm2, %v3642_v36, -inf }
0x18a5   : > { %3644 = vmax.xlane.f32.xlu0 %v3643_v37 }
0x18bb   : > { %3654 = vrot.lane.b32.xlu0 %v11472_v27, %s12379_s5 }
0x18bf   : > { %10739 = vrot.lane.b32.xlu0 %v10738_v1, %s12381_s6 }
0x18c3   : > { %4187 = vrot.lane.b32.xlu0 %v11615_v23, %s12381_s6 }
0x1932   : > { %v3645_v39 = vpop.xlane.xlu0 %3644 }
0x1933   : > { %v3646_v40 = vsub.f32 %v3642_v36, %v3645_v39 }
0x1935   : > { %v3647_v41 = vmul.f32 1.442695, %v3646_v40 }
0x1936   : > { %v3655_v43 = vpop.permute.xlu0 %3654 }
0x1937   : > { %10812 = vpow2.f32 %v3647_v41  ;;  %10059 = vmatpush3.msra.mxu0 %v3655_v43  ;;  %v9446_v43 = vld [vmem:[%s12356_s19 + $0x1] ss:$0 sm:$0xff]  ;;  %s12389_s19 = sld [smem:[#allocation37_spill]] }
0x1938   : > { %10528 = vmatprep.subr.bf16.mxu0 %v11002_v15 }
0x1941   : > { %v10813_v44 = vpop.eup %10812 }
0x1942   : > { %v3649_v45 = vsel %vm1457_vm2, %v10813_v44, 0.0 }
0x1943   : > { %3650 = vadd.xlane.f32.xlu1 %v3649_v45  ;;  %v9447_v45 = vld [vmem:[%s12359_s8 + $0x1] ss:$0 sm:$0xff]  ;;  %s12384_s8 = sld [smem:[#allocation8_spill]] }
0x1949   : > { %s1241_s13 = scalar_lea.vmem %s12384_s8, %s11267_s1  ;;  %s12386_s8 = sld [smem:[#allocation24_spill]] }
0x194a   : > { %v11683_v17 = vld [vmem:[%s1241_s13] sm:$0xff]  ;;  %s12385_s13 = sld [smem:[#allocation25_spill]] }
0x194b   : > { %vm4337_vm5 = vcmp.eq.f32.partialorder %v11683_v17, 0.0 }
0x1970   : > { %v3558_v46 = vpop.f32.mrb[28].mxu0 }
0x1971   : > { %v3562_v47 = vadd.f32 %v3558_v46, %v3319_v10  ;;  %v10052_v27 = vpop.f32.mrb[29].mxu0 }
0x19d0   : > { %v3651_v48 = vpop.xlane.xlu1 %3650 }
0x19d1   : > { %10814 = vrcp.f32 %v3651_v48  ;;  %v10740_v48 = vpop.permute.xlu0 %10739 }
0x19db   : > { %v10815_v49 = vpop.eup %10814 }
0x19dc   : > { %v3653_v50 = vmul.f32 %v10815_v49, %v10813_v44  ;;  %v9468_v49 = vld [vmem:[%s12382_s9] ss:$0 sm:$0xff] }
0x19de   : > { %10061 = vmatmul.mubr.msk.f32.vlgmr.msra.gmra.mrb[30].mxu0 %vm1457_vm2, %v3653_v50  ;;  %v10742_v50 = vunpack.i.h.bf16 %v10740_v48 }
0x19df   : > { %10076 = vmatprep.mubr.msk.f32.mxu0 %vm11003_vm1, %v11004_v19  ;;  %10530 = vmatpush3.bf16.msra.mxu0 %v10529_v18 }
0x19e0   : > { %10531 = vmatprep.subr.bf16.mxu0 %v11002_v15 }
0x19e3   : > { %10533 = vmatpush3.bf16.msra.mxu0 %v10532_v22 }
0x19e4   : > { %10546 = vmatprep.subr.bf16.mxu0 %v11002_v15 }
0x1ab1   : > { %v3726_v51 = vpop.f32.mrb[30].mxu0 }
0x1ab2   : > { %v10062_v52 = vpop.f32.mrb[31].mxu0  ;;  %10066 = vmatmul.mubr.msk.f32.vlgmr.msra.gmra.mrb[26].mxu1 %vm1457_vm2, %v3726_v51  ;;  %v10741_v51 = vunpack.i.l.bf16 %v10740_v48 }
0x1ab3   : > { %10095 = vmatprep.mubr.msk.f32.mxu1 %vm11003_vm1, %v11004_v19  ;;  %10536 = vmatpush3.bf16.msra.mxu1 %v10535_v26 }
0x1ab4   : > { %10537 = vmatprep.subr.bf16.mxu1 %v11002_v15 }
0x1ab7   : > { %10539 = vmatpush3.bf16.msra.mxu1 %v10538_v30 }
0x1ab8   : > { %10540 = vmatprep.subr.bf16.mxu1 %v11002_v15 }
0x1abb   : > { %10542 = vmatpush3.bf16.msra.mxu1 %v10541_v33 }
0x1abc   : > { %10543 = vmatprep.subr.bf16.mxu1 %v11002_v15 }
0x1b85   : > { %v3799_v55 = vpop.f32.mrb[26].mxu1 }
0x1b86   : > { %v3803_v56 = vadd.f32 %v3799_v55, %v3562_v47  ;;  %v10067_v57 = vpop.f32.mrb[27].mxu1  ;;  %v9469_v55 = vld [vmem:[%s12383_s12] ss:$0 sm:$0xff] }
0x1b88   : > { %v3810_v58 = vadd.f32 %v9443_v54, %v3803_v56  ;;  %v10553_v56 = vpack.c.bf16 %v10742_v50, %v10741_v51 }
0x1b8a   : > { %v11574_v38 = vadd.f32 %v3810_v58, %v11446_v53  ;;  %v10547_v53 = vpack.c.bf16 %v11586_v63, %v11583_v62  ;;  %v9459_v62 = vld [vmem:[%s12354_s24 + $0x70] sm:$0xff]  ;;  %v9460_v63 = vld [vmem:[%s12354_s24 + $0x78] sm:$0xff]  ;;  %s12391_s24 = sld [smem:[#allocation19_spill]] }
0x1b8b   : > { %v10544_v1 = vpack.c.bf16 %v9460_v63, %v9459_v62 }
0x1b8c   : > { %v3816_v60 = vsel %vm1250_vm0, %v11574_v38, 0.0 }
0x1b8d   : > { %3817 = vadd.xlane.f32.xlu1 %v3816_v60  ;;  %10545 = vmatpush3.bf16.msra.mxu1 %v10544_v1 }
0x1b8e   : > { %10120 = vmatprep.subr.mxu1 %v11004_v19 }
0x1b91   : > { %4056 = vadd.xlane.f32.xlu1 %v4055_v61 }
0x1c1a   : > { %v3818_v5 = vpop.xlane.xlu1 %3817 }
0x1c1b   : > { %v3819_v6 = vmul.f32 0.03125, %v3818_v5 }
0x1c1d   : > { %v3820_v7 = vsub.f32 %v11574_v38, %v3819_v6 }
0x1c1e   : > { %v4057_v8 = vpop.xlane.xlu1 %4056 }
0x1c1f   : > { %v4058_v9 = vmul.f32 0.03125, %v4057_v8  ;;  %v3821_v10 = vmul.f32 %v3820_v7, %v3820_v7  ;;  %v4188_v8 = vpop.permute.xlu0 %4187 }
0x1c21   : > { %v4059_v11 = vsub.f32 %v11576_v59, %v4058_v9  ;;  %v3822_v12 = vsel %vm1250_vm0, %v3821_v10, 0.0 }
0x1c22   : > { %3823 = vadd.xlane.f32.xlu1 %v3822_v12 }
0x1c23   : > { %v4060_v13 = vmul.f32 %v4059_v11, %v4059_v11 }
0x1c25   : > { %v4061_v14 = vsel %vm1250_vm0, %v4060_v13, 0.0 }
0x1c26   : > { %4062 = vadd.xlane.f32.xlu1 %v4061_v14 }
0x1c37   : > { %10744 = vrot.lane.b32.xlu1 %v10743_v16, %s12381_s6 }
0x1caf   : > { %v3824_v34 = vpop.xlane.xlu1 %3823 }
0x1cb0   : > { %v3825_v35 = vmul.f32 0.03125, %v3824_v34 }
0x1cb2   : > { %v3826_v36 = vadd.f32 1e-06, %v3825_v35 }
0x1cb3   : > { %v4063_v37 = vpop.xlane.xlu1 %4062 }
0x1cb4   : > { %10816 = vrsqrt.f32 %v3826_v36  ;;  %v4064_v39 = vmul.f32 0.03125, %v4063_v37 }
0x1cb6   : > { %v4065_v40 = vadd.f32 1e-06, %v4064_v39 }
0x1cb7   : > { %v10745_v54 = vpop.permute.xlu1 %10744 }
0x1cb8   : > { %10818 = vrsqrt.f32 %v4065_v40  ;;  %v10747_v57 = vunpack.i.h.bf16 %v10745_v54  ;;  %v10746_v58 = vunpack.i.l.bf16 %v10745_v54 }
0x1cba   : > { %v10556_v61 = vpack.c.bf16 %v10747_v57, %v10746_v58 }
0x1cbe   : > { %v10817_v41 = vpop.eup %10816 }
0x1cbf   : > { %v3828_v44 = vmul.f32 %v10817_v41, %v3820_v7 }
0x1cc1   : > { %v3835_v42 = vmul.f32 %v9446_v43, %v3828_v44 }
0x1cc2   : > { %v10819_v46 = vpop.eup %10818 }
0x1cc3   : > { %v4067_v47 = vmul.f32 %v10819_v46, %v4059_v11  ;;  %v3842_v27 = vadd.f32 %v9447_v45, %v3835_v42  ;;  %v4088_v42 = vld [vmem:[%s12385_s13 + $0x8] sm:$0xff] }
0x1cc5   : > { %10077 = vmatmul.mubr.msk.f32.vlgmr.msra.gmra.mrb[32].mxu0 %vm1250_vm0, %v3842_v27  ;;  %v4074_v52 = vmul.f32 %v9468_v49, %v4067_v47  ;;  %v4087_v49 = vld [vmem:[%s12385_s13] sm:$0xff] }
0x1cc6   : > { %10548 = vmatpush3.bf16.msra.mxu0 %v10547_v53  ;;  %10106 = vmatprep.mubr.msk.f32.mxu0 %vm11003_vm1, %v11004_v19  ;;  %v9462_v53 = vld [vmem:[%s12358_s14 + $0x1] ss:$0 sm:$0xff]  ;;  %s12387_s14 = sld [smem:[#allocation15_spill]] }
0x1cc7   : > { %10549 = vmatprep.subr.bf16.mxu0 %v11002_v15  ;;  %v4081_v60 = vadd.f32 %v9469_v55, %v4074_v52 }
0x1cca   : > { %10551 = vmatpush3.bf16.msra.mxu0 %v10550_v4 }
0x1ccb   : > { %10552 = vmatprep.subr.bf16.mxu0 %v11002_v15 }
0x1ccd   : > { %10107 = vmatmul.mubr.msk.f32.vlgmr.msra.gmra.mrb[34].mxu0 %vm1250_vm0, %v4081_v60 }
0x1cce   : > { %10554 = vmatpush3.bf16.msra.mxu0 %v10553_v56  ;;  %10117 = vmatprep.mubr.msk.f32.mxu0 %vm11003_vm1, %v11004_v19 }
0x1ccf   : > { %10555 = vmatprep.subr.bf16.mxu0 %v11002_v15 }
0x1cd2   : > { %10557 = vmatpush3.bf16.msra.mxu0 %v10556_v61 }
0x1cd3   : > { %10130 = vmatprep.subr.mxu0 %v11004_v19 }
0x1cd5   : > { %10118 = vmatmul.mubr.msk.f32.vlgmr.msra.gmra.mrb[36].mxu0 %vm1250_vm0, %v4081_v60 }
0x1cd6   : > { %10132 = vmatprep.mubr.msk.f32.mxu0 %vm11003_vm1, %v11004_v19 }
0x1d98   : > { %v3936_v2 = vpop.f32.mrb[32].mxu0 }
0x1d99   : > { %v3937_v3 = vadd.f32 %v9462_v53, %v3936_v2  ;;  %v10078_v4 = vpop.f32.mrb[33].mxu0 }
0x1d9b   : > { %v3940_v5 = vmax.f32 %v3937_v3, 0.0 }
0x1d9d   : > { %10096 = vmatmul.mubr.msk.f32.vlgmr.msra.gmra.mrb[28].mxu1 %vm2556_vm4, %v3940_v5 }
0x1d9e   : > { %10122 = vmatprep.mubr.msk.f32.mxu1 %vm11003_vm1, %v11004_v19 }
0x1da0   : > { %v4167_v6 = vpop.f32.mrb[34].mxu0 }
0x1da1   : > { %v10108_v7 = vpop.f32.mrb[35].mxu0  ;;  %v11665_v12 = vadd.f32 %v11615_v23, %v4167_v6 }
0x1da8   : > { %v4256_v9 = vpop.f32.mrb[36].mxu0 }
0x1da9   : > { %v11658_v10 = vadd.f32 %v4256_v9, %v4188_v8  ;;  %v10119_v11 = vpop.f32.mrb[37].mxu0 }
0x1dab   : > { %4428 = vrot.lane.b32.xlu0 %v11658_v10, %s12374_s18  ;;  %10121 = vmatpush3.xpose.msk.msra.mxu1 %vm1457_vm2, %v11658_v10 }
0x1dac   : > { %10125 = vmatprep.subr.mxu1 %v11004_v19 }
0x1dae   : > { %10123 = vmatmul.mubr.msk.f32.vlgmr.msra.gmra.mrb[30].mxu1 %vm1457_vm2, %v11665_v12 }
0x1daf   : > { %4426 = vrot.lane.b32.xlu0 %v11665_v12, %s12374_s18  ;;  %10127 = vmatprep.mubr.msk.f32.mxu1 %vm11003_vm1, %v11004_v19 }
0x1e1d   : > { %v4429_v13 = vpop.permute.xlu0 %4428 }
0x1e1e   : > { %10131 = vmatpush3.xpose.msk.msra.mxu0 %vm1457_vm2, %v4429_v13 }
0x1e1f   : > { %10140 = vmatprep.subr.mxu0 %v11004_v19 }
0x1e21   : > { %v4427_v14 = vpop.permute.xlu0 %4426 }
0x1e22   : > { %10133 = vmatmul.mubr.msk.f32.vlgmr.msra.gmra.mrb[38].mxu0 %vm1457_vm2, %v4427_v14 }
0x1e23   : > { %10142 = vmatprep.mubr.msk.f32.mxu0 %vm11003_vm1, %v11004_v19  ;;  %10141 = vmatpush3.msra.mxu0 %v4088_v42 }
0x1e24   : > { %10150 = vmatprep.subr.mxu0 %v11004_v19 }
0x1e70   : > { %v11679_v16 = vpop.f32.mrb[28].mxu1 }
0x1e71   : > { %v10097_v0 = vpop.f32.mrb[29].mxu1 }
0x1e81   : > { %v4332_v18 = vpop.f32.mrb[30].mxu1 }
0x1e82   : > { %v4336_v20 = vmul.f32 0.35355338, %v4332_v18  ;;  %v10124_v21 = vpop.f32.mrb[31].mxu1  ;;  %v4089_v18 = vld [vmem:[%s12385_s13 + $0x10] sm:$0xff] }
0x1e83   : > { %v9464_v21 = vld [vmem:[%s12355_s21 + $0x1] ss:$0 sm:$0xff]  ;;  %s12390_s21 = sld [smem:[#allocation36_spill]] }
0x1e84   : > { %v4338_v22 = vsel %vm4337_vm5, -1e+09, %v4336_v20 }
0x1e85   : > { %v4339_v23 = vsel %vm1457_vm2, %v4338_v22, -inf }
0x1e86   : > { %4340 = vmax.xlane.f32.xlu0 %v4339_v23  ;;  %v4017_v23 = vadd.f32 %v9464_v21, %v11679_v16 }
0x1ef5   : > { %v4500_v24 = vpop.f32.mrb[38].mxu0 }
0x1ef6   : > { %v4504_v25 = vmul.f32 0.35355338, %v4500_v24  ;;  %v10134_v26 = vpop.f32.mrb[39].mxu0 }
0x1ef8   : > { %v4505_v28 = vsel %vm4337_vm5, -1e+09, %v4504_v25 }
0x1ef9   : > { %v4506_v29 = vsel %vm1457_vm2, %v4505_v28, -inf }
0x1efa   : > { %4507 = vmax.xlane.f32.xlu1 %v4506_v29 }
0x1f0b   : > { %4350 = vrot.lane.b32.xlu1 %v11658_v10, %s12381_s6 }
0x1f0f   : > { %4741 = vrot.lane.b32.xlu1 %v11658_v10, %s12375_s7 }
0x1f13   : > { %v4341_v30 = vpop.xlane.xlu0 %4340  ;;  %4739 = vrot.lane.b32.xlu1 %v11665_v12, %s12375_s7 }
0x1f14   : > { %v4342_v31 = vsub.f32 %v4338_v22, %v4341_v30  ;;  %v4020_v30 = vadd.f32 %v4017_v23, %v11574_v38 }
0x1f16   : > { %v4343_v32 = vmul.f32 1.442695, %v4342_v31  ;;  %v4023_v31 = vsel %vm1250_vm0, %v4020_v30, 0.0 }
0x1f18   : > { %10820 = vpow2.f32 %v4343_v32 }
0x1f22   : > { %v10821_v33 = vpop.eup %10820 }
0x1f23   : > { %v4345_v34 = vsel %vm1457_vm2, %v10821_v33, 0.0 }
0x1f24   : > { %4346 = vadd.xlane.f32.xlu0 %v4345_v34 }
0x1f87   : > { %v4508_v35 = vpop.xlane.xlu1 %4507 }
0x1f88   : > { %v4509_v36 = vsub.f32 %v4505_v28, %v4508_v35 }
0x1f8a   : > { %v4510_v37 = vmul.f32 1.442695, %v4509_v36  ;;  %v4090_v36 = vld [vmem:[%s12385_s13 + $0x18] sm:$0xff] }
0x1f8b   : > { %v4351_v39 = vpop.permute.xlu1 %4350 }
0x1f8c   : > { %10822 = vpow2.f32 %v4510_v37  ;;  %10126 = vmatpush3.msra.mxu1 %v4351_v39 }
0x1f8d   : > { %10135 = vmatprep.subr.mxu1 %v11004_v19 }
0x1f8f   : > { %v4742_v52 = vpop.permute.xlu1 %4741 }
0x1f93   : > { %v4740_v56 = vpop.permute.xlu1 %4739 }
0x1f96   : > { %v10823_v40 = vpop.eup %10822 }
0x1f97   : > { %v4512_v41 = vsel %vm1457_vm2, %v10823_v40, 0.0 }
0x1f98   : > { %4513 = vadd.xlane.f32.xlu0 %v4512_v41 }
0x1fae   : > { %4517 = vrot.lane.b32.xlu0 %v11658_v10, %s12376_s10 }
0x1fb1   : > { %v4347_v43 = vpop.xlane.xlu0 %4346 }
0x1fb2   : > { %10824 = vrcp.f32 %v4347_v43 }
0x1fbc   : > { %v10825_v44 = vpop.eup %10824 }
0x1fbd   : > { %v4349_v45 = vmul.f32 %v10825_v44, %v10821_v33 }
0x1fbf   : > { %10128 = vmatmul.mubr.msk.f32.vlgmr.msra.gmra.mrb[32].mxu1 %vm1457_vm2, %v4349_v45 }
0x1fc0   : > { %10137 = vmatprep.mubr.msk.f32.mxu1 %vm11003_vm1, %v11004_v19 }
0x2025   : > { %v4514_v46 = vpop.xlane.xlu0 %4513 }
0x2026   : > { %10826 = vrcp.f32 %v4514_v46 }
0x2029   : > { %v4518_v47 = vpop.permute.xlu0 %4517 }
0x202a   : > { %10136 = vmatpush3.msra.mxu1 %v4518_v47  ;;  %v9489_v47 = vld [vmem:[%s12386_s8] ss:$0 sm:$0xff] }
0x202b   : > { %10145 = vmatprep.subr.mxu1 %v11004_v19 }
0x2030   : > { %v10827_v27 = vpop.eup %10826 }
0x2031   : > { %v4516_v48 = vmul.f32 %v10827_v27, %v10823_v40 }
0x2033   : > { %10138 = vmatmul.mubr.msk.f32.vlgmr.msra.gmra.mrb[34].mxu1 %vm1457_vm2, %v4516_v48 }
0x2034   : > { %10146 = vmatpush3.msra.mxu1 %v4087_v49  ;;  %10147 = vmatprep.mubr.msk.f32.mxu1 %vm11003_vm1, %v11004_v19 }
0x2035   : > { %10155 = vmatprep.subr.mxu1 %v11004_v19 }
0x2092   : > { %v4422_v50 = vpop.f32.mrb[32].mxu1 }
0x2093   : > { %v10129_v51 = vpop.f32.mrb[33].mxu1  ;;  %10148 = vmatmul.mubr.msk.f32.vlgmr.msra.gmra.mrb[36].mxu1 %vm1457_vm2, %v4422_v50 }
0x2094   : > { %10157 = vmatprep.mubr.msk.f32.mxu1 %vm11003_vm1, %v11004_v19 }
0x2106   : > { %v4589_v54 = vpop.f32.mrb[34].mxu1 }
0x2107   : > { %v10139_v55 = vpop.f32.mrb[35].mxu1  ;;  %10143 = vmatmul.mubr.msk.f32.vlgmr.msra.gmra.mrb[40].mxu0 %vm1457_vm2, %v4589_v54 }
0x2108   : > { %10151 = vmatpush3.xpose.msk.msra.mxu0 %vm1457_vm2, %v4742_v52  ;;  %10152 = vmatprep.mubr.msk.f32.mxu0 %vm11003_vm1, %v11004_v19 }
0x2109   : > { %10160 = vmatprep.subr.mxu0 %v11004_v19 }
0x210b   : > { %10153 = vmatmul.mubr.msk.f32.vlgmr.msra.gmra.mrb[42].mxu0 %vm1457_vm2, %v4740_v56 }
0x210c   : > { %10162 = vmatprep.mubr.msk.f32.mxu0 %vm11003_vm1, %v11004_v19  ;;  %10161 = vmatpush3.msra.mxu0 %v4089_v18 }
0x210d   : > { %10170 = vmatprep.subr.mxu0 %v11004_v19 }
0x2166   : > { %v4735_v57 = vpop.f32.mrb[36].mxu1 }
0x2167   : > { %v10149_v58 = vpop.f32.mrb[37].mxu1 }
0x2168   : > { %v5259_v58 = vld [vmem:[%s12387_s14 + $0x8] sm:$0xff] }
0x21da   : > { %v4662_v60 = vpop.f32.mrb[40].mxu0 }
0x21db   : > { %v11725_v61 = vadd.f32 %v4735_v57, %v4662_v60  ;;  %v10144_v62 = vpop.f32.mrb[41].mxu0  ;;  %v5258_v57 = vld [vmem:[%s12387_s14] sm:$0xff] }
0x21dc   : > { %v10748_v60 = vpack.i.bf16 %v5259_v58, %v5258_v57  ;;  %v5260_v62 = vld [vmem:[%s12387_s14 + $0x10] sm:$0xff] }
0x21de   : > { %v4813_v63 = vpop.f32.mrb[42].mxu0 }
0x21df   : > { %v4817_v1 = vmul.f32 0.35355338, %v4813_v63  ;;  %v10154_v53 = vpop.f32.mrb[43].mxu0  ;;  %v5261_v63 = vld [vmem:[%s12387_s14 + $0x18] sm:$0xff] }
0x21e1   : > { %v4818_v2 = vsel %vm4337_vm5, -1e+09, %v4817_v1  ;;  %v10562_v1 = vpack.c.bf16 %v5261_v63, %v5260_v62 }
0x21e2   : > { %v4819_v3 = vsel %vm1457_vm2, %v4818_v2, -inf }
0x21e3   : > { %4820 = vmax.xlane.f32.xlu0 %v4819_v3 }
0x21f9   : > { %4830 = vrot.lane.b32.xlu0 %v11658_v10, %s12378_s4 }
0x21fd   : > { %4980 = vrot.lane.b32.xlu0 %v11665_v12, %s12377_s3 }
0x2270   : > { %v4821_v4 = vpop.xlane.xlu0 %4820 }
0x2271   : > { %v4822_v5 = vsub.f32 %v4818_v2, %v4821_v4 }
0x2273   : > { %v4823_v6 = vmul.f32 1.442695, %v4822_v5 }
0x2274   : > { %v4831_v7 = vpop.permute.xlu0 %4830 }
0x2275   : > { %10828 = vpow2.f32 %v4823_v6  ;;  %10156 = vmatpush3.msra.mxu1 %v4831_v7  ;;  %v9492_v6 = vld [vmem:[%s12388_s17] ss:$0 sm:$0xff] }
0x2276   : > { %10165 = vmatprep.subr.mxu1 %v11004_v19 }
0x2278   : > { %v4981_v0 = vpop.permute.xlu0 %4980 }
0x227f   : > { %v10829_v8 = vpop.eup %10828 }
0x2280   : > { %v4825_v9 = vsel %vm1457_vm2, %v10829_v8, 0.0 }
0x2281   : > { %4826 = vadd.xlane.f32.xlu1 %v4825_v9 }
0x2292   : > { %4982 = vrot.lane.b32.xlu1 %v11658_v10, %s12377_s3 }
0x230e   : > { %v4827_v11 = vpop.xlane.xlu1 %4826 }
0x230f   : > { %10830 = vrcp.f32 %v4827_v11 }
0x2312   : > { %v4983_v14 = vpop.permute.xlu1 %4982 }
0x2319   : > { %v10831_v12 = vpop.eup %10830 }
0x231a   : > { %v4829_v13 = vmul.f32 %v10831_v12, %v10829_v8 }
0x231c   : > { %10158 = vmatmul.mubr.msk.f32.vlgmr.msra.gmra.mrb[38].mxu1 %vm1457_vm2, %v4829_v13 }
0x231d   : > { %10166 = vmatpush3.xpose.msk.msra.mxu1 %vm1457_vm2, %v4983_v14  ;;  %10167 = vmatprep.mubr.msk.f32.mxu1 %vm11003_vm1, %v11004_v19 }
0x231e   : > { %10175 = vmatprep.subr.mxu1 %v11004_v19 }
0x2320   : > { %10168 = vmatmul.mubr.msk.f32.vlgmr.msra.gmra.mrb[40].mxu1 %vm1457_vm2, %v4981_v0 }
0x2321   : > { %10177 = vmatprep.mubr.msk.f32.mxu1 %vm11003_vm1, %v11004_v19  ;;  %10176 = vmatpush3.msra.mxu1 %v4090_v36 }
0x2322   : > { %10564 = vmatprep.subr.bf16.mxu1 %v11002_v15 }
0x23ef   : > { %v4902_v20 = vpop.f32.mrb[38].mxu1 }
0x23f0   : > { %v10159_v22 = vpop.f32.mrb[39].mxu1  ;;  %10163 = vmatmul.mubr.msk.f32.vlgmr.msra.gmra.mrb[44].mxu0 %vm1457_vm2, %v4902_v20 }
0x23f1   : > { %10172 = vmatprep.mubr.msk.f32.mxu0 %vm11003_vm1, %v11004_v19 }
0x23f3   : > { %v5054_v24 = vpop.f32.mrb[40].mxu1 }
0x23f4   : > { %v5058_v25 = vmul.f32 0.35355338, %v5054_v24  ;;  %v10169_v26 = vpop.f32.mrb[41].mxu1 }
0x23f5   : > { %v9466_v26 = vld [vmem:[%s12389_s19] ss:$0 sm:$0xff] }
0x23f6   : > { %v5059_v28 = vsel %vm4337_vm5, -1e+09, %v5058_v25 }
0x23f7   : > { %v5060_v29 = vsel %vm1457_vm2, %v5059_v28, -inf }
0x23f8   : > { %5061 = vmax.xlane.f32.xlu1 %v5060_v29 }
0x23fc   : > { %4024 = vadd.xlane.f32.xlu1 %v4023_v31 }
0x2485   : > { %v5062_v32 = vpop.xlane.xlu1 %5061 }
0x2486   : > { %v5063_v33 = vsub.f32 %v5059_v28, %v5062_v32 }
0x2488   : > { %v5064_v34 = vmul.f32 1.442695, %v5063_v33  ;;  %v9490_v33 = vld [vmem:[%s12391_s24] ss:$0 sm:$0xff] }
0x2489   : > { %v4025_v42 = vpop.xlane.xlu1 %4024 }
0x248a   : > { %10832 = vpow2.f32 %v5064_v34  ;;  %v4026_v46 = vmul.f32 0.03125, %v4025_v42 }
0x248c   : > { %v4027_v50 = vsub.f32 %v4020_v30, %v4026_v46  ;;  %v9467_v30 = vld [vmem:[%s12390_s21] ss:$0 sm:$0xff]  ;;  %s12393_s21 = sld [smem:[#allocation9_spill]] }
0x248e   : > { %v4028_v55 = vmul.f32 %v4027_v50, %v4027_v50 }
0x2490   : > { %v4029_v56 = vsel %vm1250_vm0, %v4028_v55, 0.0 }
0x2492   : > { %s1245_s19 = scalar_lea.vmem %s12393_s21, %s11267_s1  ;;  %s12394_s1 = sld [smem:[#allocation14_spill]] }
0x2493   : > { %v11827_v42 = vld [vmem:[%s1245_s19] sm:$0xff]  ;;  %s12395_s21 = sld [smem:[#allocation12_spill]]  ;;  %s12396_s19 = sld [smem:[#allocation26_spill]] }
0x2494   : > { %v10833_v16 = vpop.eup %10832  ;;  %vm5516_vm6 = vcmp.eq.f32.partialorder %v11827_v42, 0.0 }
0x2495   : > { %v5066_v35 = vsel %vm1457_vm2, %v10833_v16, 0.0 }
0x2496   : > { %5067 = vadd.xlane.f32.xlu0 %v5066_v35 }
0x2498   : > { %v9564_v42 = vld [vmem:[%s12394_s1 + $0x38] sm:$0xff] }
0x24ac   : > { %5071 = vrot.lane.b32.xlu0 %v11658_v10, %s12379_s5 }
0x24c3   : > { %v4975_v38 = vpop.f32.mrb[44].mxu0 }
0x24c4   : > { %v4979_v37 = vadd.f32 %v4975_v38, %v11725_v61  ;;  %v10164_v39 = vpop.f32.mrb[45].mxu0  ;;  %v10559_v61 = vpack.c.bf16 %v5259_v58, %v5258_v57 }
0x2523   : > { %v5068_v40 = vpop.xlane.xlu0 %5067 }
0x2524   : > { %10834 = vrcp.f32 %v5068_v40 }
0x2527   : > { %v5072_v41 = vpop.permute.xlu0 %5071 }
0x2528   : > { %10171 = vmatpush3.msra.mxu0 %v5072_v41 }
0x2529   : > { %10558 = vmatprep.subr.bf16.mxu0 %v11002_v15 }
0x252e   : > { %v10835_v43 = vpop.eup %10834 }
0x252f   : > { %v5070_v44 = vmul.f32 %v10835_v43, %v10833_v16  ;;  %v9491_v16 = vld [vmem:[%s12392_s25] ss:$0 sm:$0xff] }
0x2531   : > { %10173 = vmatmul.mubr.msk.f32.vlgmr.msra.gmra.mrb[46].mxu0 %vm1457_vm2, %v5070_v44 }
0x2532   : > { %10188 = vmatprep.mubr.msk.f32.mxu0 %vm11003_vm1, %v11004_v19  ;;  %10560 = vmatpush3.bf16.msra.mxu0 %v10559_v61 }
0x2533   : > { %10561 = vmatprep.subr.bf16.mxu0 %v11002_v15 }
0x2536   : > { %10563 = vmatpush3.bf16.msra.mxu0 %v10562_v1 }
0x2537   : > { %10202 = vmatprep.subr.mxu0 %v11004_v19 }
0x2604   : > { %v5143_v10 = vpop.f32.mrb[46].mxu0 }
0x2605   : > { %v10174_v45 = vpop.f32.mrb[47].mxu0  ;;  %10178 = vmatmul.mubr.msk.f32.vlgmr.msra.gmra.mrb[42].mxu1 %vm1457_vm2, %v5143_v10 }
0x2606   : > { %10199 = vmatprep.mubr.msk.f32.mxu1 %vm11003_vm1, %v11004_v19 }
0x26d8   : > { %v5216_v27 = vpop.f32.mrb[42].mxu1 }
0x26d9   : > { %v5220_v48 = vadd.f32 %v5216_v27, %v4979_v37  ;;  %v10179_v49 = vpop.f32.mrb[43].mxu1 }
0x26db   : > { %v5227_v51 = vadd.f32 %v9489_v47, %v5220_v48 }
0x26dd   : > { %v11773_v52 = vadd.f32 %v5227_v51, %v11576_v59  ;;  %v10753_v59 = vpack.i.bf16 %v5261_v63, %v5260_v62 }
0x26df   : > { %v5231_v54 = vsel %vm1250_vm0, %v11773_v52, 0.0  ;;  %10754 = vrot.lane.b32.xlu0 %v10753_v59, %s12381_s6 }
0x26e0   : > { %5232 = vadd.xlane.f32.xlu1 %v5231_v54 }
0x26e3   : > { %5363 = vrot.lane.b32.xlu0 %v9492_v6, %s12381_s6 }
0x26e4   : > { %4030 = vadd.xlane.f32.xlu1 %v4029_v56 }
0x2751   : > { %v10755_v13 = vpop.permute.xlu0 %10754 }
0x2752   : > { %v10757_v20 = vunpack.i.h.bf16 %v10755_v13  ;;  %v10756_v23 = vunpack.i.l.bf16 %v10755_v13  ;;  %v5263_v13 = vld [vmem:[%s12394_s1] sm:$0xff] }
0x2754   : > { %v10568_v28 = vpack.c.bf16 %v10757_v20, %v10756_v23 }
0x2755   : > { %v5364_v38 = vpop.permute.xlu0 %5363 }
0x276d   : > { %v5233_v53 = vpop.xlane.xlu1 %5232 }
0x276e   : > { %v5234_v2 = vmul.f32 0.03125, %v5233_v53 }
0x2770   : > { %v5235_v3 = vsub.f32 %v11773_v52, %v5234_v2 }
0x2771   : > { %v4031_v7 = vpop.xlane.xlu1 %4030 }
0x2772   : > { %v5236_v4 = vmul.f32 %v5235_v3, %v5235_v3  ;;  %v4032_v8 = vmul.f32 0.03125, %v4031_v7  ;;  %v5264_v7 = vld [vmem:[%s12394_s1 + $0x8] sm:$0xff] }
0x2774   : > { %v5237_v5 = vsel %vm1250_vm0, %v5236_v4, 0.0  ;;  %v4033_v9 = vadd.f32 1e-06, %v4032_v8 }
0x2775   : > { %5238 = vadd.xlane.f32.xlu1 %v5237_v5 }
0x2776   : > { %10836 = vrsqrt.f32 %v4033_v9 }
0x2780   : > { %v10837_v14 = vpop.eup %10836 }
0x2781   : > { %v4035_v24 = vmul.f32 %v10837_v14, %v4027_v50 }
0x2783   : > { %v4042_v29 = vmul.f32 %v9466_v26, %v4035_v24 }
0x2785   : > { %v11793_v31 = vadd.f32 %v9467_v30, %v4042_v29 }
0x2786   : > { %10749 = vrot.lane.b32.xlu1 %v10748_v60, %s12381_s6 }
0x2802   : > { %v5239_v11 = vpop.xlane.xlu1 %5238 }
0x2803   : > { %v5240_v12 = vmul.f32 0.03125, %v5239_v11 }
0x2805   : > { %v5241_v0 = vadd.f32 1e-06, %v5240_v12 }
0x2806   : > { %v10750_v18 = vpop.permute.xlu1 %10749 }
0x2807   : > { %10838 = vrsqrt.f32 %v5241_v0  ;;  %v10752_v21 = vunpack.i.h.bf16 %v10750_v18  ;;  %v10751_v22 = vunpack.i.l.bf16 %v10750_v18 }
0x2809   : > { %v10565_v25 = vpack.c.bf16 %v10752_v21, %v10751_v22 }
0x280b   : > { %10566 = vmatpush3.bf16.msra.mxu1 %v10565_v25 }
0x280c   : > { %10567 = vmatprep.subr.bf16.mxu1 %v11002_v15 }
0x280f   : > { %10569 = vmatpush3.bf16.msra.mxu1 %v10568_v28 }
0x2810   : > { %10207 = vmatprep.subr.mxu1 %v11004_v19 }
0x2811   : > { %v10839_v32 = vpop.eup %10838 }
0x2812   : > { %v5243_v34 = vmul.f32 %v10839_v32, %v5235_v3  ;;  %10200 = vmatmul.mubr.msk.f32.vlgmr.msra.gmra.mrb[44].mxu1 %vm1250_vm0, %v11793_v31 }
0x2813   : > { %10209 = vmatprep.mubr.msk.f32.mxu1 %vm11003_vm1, %v11004_v19 }
0x2814   : > { %v5250_v35 = vmul.f32 %v9490_v33, %v5243_v34 }
0x2816   : > { %v5257_v36 = vadd.f32 %v9491_v16, %v5250_v35 }
0x2818   : > { %10189 = vmatmul.mubr.msk.f32.vlgmr.msra.gmra.mrb[48].mxu0 %vm1250_vm0, %v5257_v36 }
0x2819   : > { %10204 = vmatprep.mubr.msk.f32.mxu0 %vm11003_vm1, %v11004_v19 }
0x28e5   : > { %v5435_v37 = vpop.f32.mrb[44].mxu1 }
0x28e6   : > { %v11805_v39 = vadd.f32 %v5435_v37, %v5364_v38  ;;  %v10201_v40 = vpop.f32.mrb[45].mxu1 }
0x28e8   : > { %5607 = vrot.lane.b32.xlu0 %v11805_v39, %s12374_s18  ;;  %10203 = vmatpush3.xpose.msk.msra.mxu0 %vm1457_vm2, %v11805_v39 }
0x28e9   : > { %10212 = vmatprep.subr.mxu0 %v11004_v19 }
0x28eb   : > { %v5343_v41 = vpop.f32.mrb[48].mxu0 }
0x28ec   : > { %v11812_v43 = vadd.f32 %v9492_v6, %v5343_v41  ;;  %v10190_v44 = vpop.f32.mrb[49].mxu0 }
0x28ee   : > { %5605 = vrot.lane.b32.xlu0 %v11812_v43, %s12374_s18  ;;  %10205 = vmatmul.mubr.msk.f32.vlgmr.msra.gmra.mrb[50].mxu0 %vm1457_vm2, %v11812_v43 }
0x28ef   : > { %10214 = vmatprep.mubr.msk.f32.mxu0 %vm11003_vm1, %v11004_v19 }
0x295a   : > { %v5608_v10 = vpop.permute.xlu0 %5607 }
0x295b   : > { %10213 = vmatpush3.xpose.msk.msra.mxu0 %vm1457_vm2, %v5608_v10 }
0x295c   : > { %10222 = vmatprep.subr.mxu0 %v11004_v19 }
0x2960   : > { %v5606_v45 = vpop.permute.xlu0 %5605 }
0x2961   : > { %10215 = vmatmul.mubr.msk.f32.vlgmr.msra.gmra.mrb[52].mxu0 %vm1457_vm2, %v5606_v45 }
0x2962   : > { %10224 = vmatprep.mubr.msk.f32.mxu0 %vm11003_vm1, %v11004_v19  ;;  %10223 = vmatpush3.msra.mxu0 %v5264_v7 }
0x2963   : > { %10232 = vmatprep.subr.mxu0 %v11004_v19 }
0x29c1   : > { %v5511_v46 = vpop.f32.mrb[50].mxu0 }
0x29c2   : > { %v5515_v47 = vmul.f32 0.35355338, %v5511_v46  ;;  %v10206_v27 = vpop.f32.mrb[51].mxu0  ;;  %v5265_v46 = vld [vmem:[%s12394_s1 + $0x10] sm:$0xff] }
0x29c4   : > { %v5517_v48 = vsel %vm5516_vm6, -1e+09, %v5515_v47 }
0x29c5   : > { %v5518_v49 = vsel %vm1457_vm2, %v5517_v48, -inf }
0x29c6   : > { %5519 = vmax.xlane.f32.xlu1 %v5518_v49 }
0x2a34   : > { %v5679_v50 = vpop.f32.mrb[52].mxu0 }
0x2a35   : > { %v5683_v51 = vmul.f32 0.35355338, %v5679_v50  ;;  %v10216_v54 = vpop.f32.mrb[53].mxu0 }
0x2a37   : > { %v5684_v55 = vsel %vm5516_vm6, -1e+09, %v5683_v51 }
0x2a38   : > { %v5685_v56 = vsel %vm1457_vm2, %v5684_v55, -inf }
0x2a39   : > { %5686 = vmax.xlane.f32.xlu0 %v5685_v56 }
0x2a53   : > { %v5520_v57 = vpop.xlane.xlu1 %5519 }
0x2a54   : > { %v5521_v58 = vsub.f32 %v5517_v48, %v5520_v57 }
0x2a56   : > { %v5522_v60 = vmul.f32 1.442695, %v5521_v58 }
0x2a58   : > { %10840 = vpow2.f32 %v5522_v60 }
0x2a62   : > { %v10841_v61 = vpop.eup %10840 }
0x2a63   : > { %v5524_v62 = vsel %vm1457_vm2, %v10841_v61, 0.0 }
0x2a64   : > { %5525 = vadd.xlane.f32.xlu0 %v5524_v62  ;;  %v5266_v62 = vld [vmem:[%s12394_s1 + $0x18] sm:$0xff] }
0x2a7a   : > { %5529 = vrot.lane.b32.xlu0 %v11805_v39, %s12381_s6 }
0x2a7e   : > { %5918 = vrot.lane.b32.xlu0 %v11812_v43, %s12375_s7 }
0x2ac6   : > { %v5687_v63 = vpop.xlane.xlu0 %5686 }
0x2ac7   : > { %v5688_v59 = vsub.f32 %v5684_v55, %v5687_v63 }
0x2ac9   : > { %v5689_v1 = vmul.f32 1.442695, %v5688_v59 }
0x2acb   : > { %10842 = vpow2.f32 %v5689_v1 }
0x2ad5   : > { %v10843_v53 = vpop.eup %10842 }
0x2ad6   : > { %v5691_v2 = vsel %vm1457_vm2, %v10843_v53, 0.0 }
0x2ad7   : > { %5692 = vadd.xlane.f32.xlu1 %v5691_v2 }
0x2ae8   : > { %5696 = vrot.lane.b32.xlu1 %v11805_v39, %s12376_s10 }
0x2aec   : > { %5920 = vrot.lane.b32.xlu1 %v11805_v39, %s12375_s7 }
0x2af1   : > { %v5526_v3 = vpop.xlane.xlu0 %5525 }
0x2af2   : > { %10844 = vrcp.f32 %v5526_v3 }
0x2af5   : > { %v5530_v4 = vpop.permute.xlu0 %5529 }
0x2af6   : > { %10208 = vmatpush3.msra.mxu1 %v5530_v4 }
0x2af7   : > { %10217 = vmatprep.subr.mxu1 %v11004_v19 }
0x2af9   : > { %v5919_v22 = vpop.permute.xlu0 %5918 }
0x2afc   : > { %v10845_v5 = vpop.eup %10844 }
0x2afd   : > { %v5528_v6 = vmul.f32 %v10845_v5, %v10841_v61  ;;  %v9511_v5 = vld [vmem:[%s12395_s21] ss:$0 sm:$0xff] }
0x2aff   : > { %10210 = vmatmul.mubr.msk.f32.vlgmr.msra.gmra.mrb[46].mxu1 %vm1457_vm2, %v5528_v6 }
0x2b00   : > { %10219 = vmatprep.mubr.msk.f32.mxu1 %vm11003_vm1, %v11004_v19 }
0x2b64   : > { %v5693_v8 = vpop.xlane.xlu1 %5692 }
0x2b65   : > { %10846 = vrcp.f32 %v5693_v8 }
0x2b68   : > { %v5697_v9 = vpop.permute.xlu1 %5696 }
0x2b69   : > { %10218 = vmatpush3.msra.mxu1 %v5697_v9 }
0x2b6a   : > { %10227 = vmatprep.subr.mxu1 %v11004_v19 }
0x2b6c   : > { %v5921_v20 = vpop.permute.xlu1 %5920 }
0x2b6f   : > { %v10847_v11 = vpop.eup %10846 }
0x2b70   : > { %v5695_v12 = vmul.f32 %v10847_v11, %v10843_v53 }
0x2b72   : > { %10220 = vmatmul.mubr.msk.f32.vlgmr.msra.gmra.mrb[48].mxu1 %vm1457_vm2, %v5695_v12 }
0x2b73   : > { %10228 = vmatpush3.msra.mxu1 %v5263_v13  ;;  %10229 = vmatprep.mubr.msk.f32.mxu1 %vm11003_vm1, %v11004_v19 }
0x2b74   : > { %10237 = vmatprep.subr.mxu1 %v11004_v19 }
0x2bd2   : > { %v5601_v14 = vpop.f32.mrb[46].mxu1 }
0x2bd3   : > { %v10211_v0 = vpop.f32.mrb[47].mxu1  ;;  %10230 = vmatmul.mubr.msk.f32.vlgmr.msra.gmra.mrb[50].mxu1 %vm1457_vm2, %v5601_v14 }
0x2bd4   : > { %10239 = vmatprep.mubr.msk.f32.mxu1 %vm11003_vm1, %v11004_v19 }
0x2c45   : > { %v5768_v18 = vpop.f32.mrb[48].mxu1 }
0x2c46   : > { %v10221_v21 = vpop.f32.mrb[49].mxu1  ;;  %10225 = vmatmul.mubr.msk.f32.vlgmr.msra.gmra.mrb[54].mxu0 %vm1457_vm2, %v5768_v18 }
0x2c47   : > { %10233 = vmatpush3.xpose.msk.msra.mxu0 %vm1457_vm2, %v5921_v20  ;;  %10234 = vmatprep.mubr.msk.f32.mxu0 %vm11003_vm1, %v11004_v19  ;;  %v6437_v21 = vld [vmem:[%s12396_s19] sm:$0xff] }
0x2c48   : > { %10242 = vmatprep.subr.mxu0 %v11004_v19 }
0x2c4a   : > { %10235 = vmatmul.mubr.msk.f32.vlgmr.msra.gmra.mrb[56].mxu0 %vm1457_vm2, %v5919_v22  ;;  %v6438_v22 = vld [vmem:[%s12396_s19 + $0x8] sm:$0xff] }
0x2c4b   : > { %10244 = vmatprep.mubr.msk.f32.mxu0 %vm11003_vm1, %v11004_v19  ;;  %10243 = vmatpush3.msra.mxu0 %v5265_v46  ;;  %v6448_v46 = vld [vmem:[%s12397_s27 + $0x30] sm:$0xff] }
0x2c4c   : > { %10252 = vmatprep.subr.mxu0 %v11004_v19 }
0x2ca6   : > { %v5914_v23 = vpop.f32.mrb[50].mxu1 }
0x2ca7   : > { %v10231_v24 = vpop.f32.mrb[51].mxu1 }
0x2ca8   : > { %v6440_v24 = vld [vmem:[%s12396_s19 + $0x18] sm:$0xff] }
0x2d19   : > { %v5841_v25 = vpop.f32.mrb[54].mxu0 }
0x2d1a   : > { %v5915_v26 = vadd.f32 %v5914_v23, %v5841_v25  ;;  %v10226_v28 = vpop.f32.mrb[55].mxu0  ;;  %v10571_v23 = vpack.c.bf16 %v6438_v22, %v6437_v21  ;;  %v9520_v21 = vld [vmem:[%s12382_s9 + $0x1] ss:$0 sm:$0xff] }
0x2d1b   : > { %v6443_v28 = vld [vmem:[%s12397_s27 + $0x8] sm:$0xff] }
0x2d1d   : > { %v5992_v29 = vpop.f32.mrb[56].mxu0 }
0x2d1e   : > { %v5996_v30 = vmul.f32 0.35355338, %v5992_v29  ;;  %v10236_v32 = vpop.f32.mrb[57].mxu0  ;;  %v6444_v29 = vld [vmem:[%s12397_s27 + $0x10] sm:$0xff] }
0x2d1f   : > { %v6445_v32 = vld [vmem:[%s12397_s27 + $0x18] sm:$0xff] }
0x2d20   : > { %v5997_v33 = vsel %vm5516_vm6, -1e+09, %v5996_v30 }
0x2d21   : > { %v5998_v34 = vsel %vm1457_vm2, %v5997_v33, -inf }
0x2d22   : > { %5999 = vmax.xlane.f32.xlu1 %v5998_v34  ;;  %v6446_v34 = vld [vmem:[%s12397_s27 + $0x20] sm:$0xff] }
0x2d33   : > { %6161 = vrot.lane.b32.xlu1 %v11805_v39, %s12377_s3 }
0x2d37   : > { %6159 = vrot.lane.b32.xlu1 %v11812_v43, %s12377_s3 }
0x2daf   : > { %v6000_v16 = vpop.xlane.xlu1 %5999 }
0x2db0   : > { %v6001_v35 = vsub.f32 %v5997_v33, %v6000_v16  ;;  %v10580_v33 = vpack.c.bf16 %v6445_v32, %v6444_v29  ;;  %v6447_v16 = vld [vmem:[%s12397_s27 + $0x28] sm:$0xff] }
0x2db2   : > { %v6002_v36 = vmul.f32 1.442695, %v6001_v35  ;;  %v10583_v35 = vpack.c.bf16 %v6447_v16, %v6446_v34 }
0x2db3   : > { %v6162_v43 = vpop.permute.xlu1 %6161 }
0x2db4   : > { %10848 = vpow2.f32 %v6002_v36 }
0x2db7   : > { %v6160_v45 = vpop.permute.xlu1 %6159 }
0x2dbe   : > { %v10849_v38 = vpop.eup %10848 }
0x2dbf   : > { %v6004_v37 = vsel %vm1457_vm2, %v10849_v38, 0.0 }
0x2dc0   : > { %6005 = vadd.xlane.f32.xlu0 %v6004_v37 }
0x2dd6   : > { %6009 = vrot.lane.b32.xlu0 %v11805_v39, %s12378_s4 }
0x2e4d   : > { %v6006_v40 = vpop.xlane.xlu0 %6005 }
0x2e4e   : > { %10850 = vrcp.f32 %v6006_v40 }
0x2e51   : > { %v6010_v41 = vpop.permute.xlu0 %6009 }
0x2e52   : > { %10238 = vmatpush3.msra.mxu1 %v6010_v41  ;;  %v9512_v41 = vld [vmem:[%s12398_s11] ss:$0 sm:$0xff] }
0x2e53   : > { %10247 = vmatprep.subr.mxu1 %v11004_v19 }
0x2e58   : > { %v10851_v44 = vpop.eup %10850 }
0x2e59   : > { %v6008_v10 = vmul.f32 %v10851_v44, %v10849_v38 }
0x2e5b   : > { %10240 = vmatmul.mubr.msk.f32.vlgmr.msra.gmra.mrb[52].mxu1 %vm1457_vm2, %v6008_v10 }
0x2e5c   : > { %10248 = vmatpush3.xpose.msk.msra.mxu1 %vm1457_vm2, %v6162_v43  ;;  %10249 = vmatprep.mubr.msk.f32.mxu1 %vm11003_vm1, %v11004_v19  ;;  %v9513_v43 = vld [vmem:[%s12399_s26] ss:$0 sm:$0xff] }
0x2e5d   : > { %10257 = vmatprep.subr.mxu1 %v11004_v19 }
0x2e5f   : > { %10250 = vmatmul.mubr.msk.f32.vlgmr.msra.gmra.mrb[54].mxu1 %vm1457_vm2, %v6160_v45 }
0x2e60   : > { %10259 = vmatprep.mubr.msk.f32.mxu1 %vm11003_vm1, %v11004_v19  ;;  %10258 = vmatpush3.msra.mxu1 %v5266_v62  ;;  %v9522_v62 = vld [vmem:[%s11130_s29 + $0x20] sm:$0xff] }
0x2e61   : > { %10576 = vmatprep.subr.bf16.mxu1 %v11002_v15 }
0x2f2e   : > { %v6081_v47 = vpop.f32.mrb[52].mxu1 }
0x2f2f   : > { %v10241_v27 = vpop.f32.mrb[53].mxu1  ;;  %10245 = vmatmul.mubr.msk.f32.vlgmr.msra.gmra.mrb[58].mxu0 %vm1457_vm2, %v6081_v47  ;;  %v6449_v47 = vld [vmem:[%s12397_s27 + $0x38] sm:$0xff] }
0x2f30   : > { %10254 = vmatprep.mubr.msk.f32.mxu0 %vm11003_vm1, %v11004_v19  ;;  %v10586_v27 = vpack.c.bf16 %v6449_v47, %v6448_v46 }
0x2f32   : > { %v6233_v48 = vpop.f32.mrb[54].mxu1 }
0x2f33   : > { %v6237_v49 = vmul.f32 0.35355338, %v6233_v48  ;;  %v10251_v50 = vpop.f32.mrb[55].mxu1  ;;  %v9514_v48 = vld [vmem:[%s12401_s16] ss:$0 sm:$0xff] }
0x2f35   : > { %v6238_v51 = vsel %vm5516_vm6, -1e+09, %v6237_v49 }
0x2f36   : > { %v6239_v54 = vsel %vm1457_vm2, %v6238_v51, -inf }
0x2f37   : > { %6240 = vmax.xlane.f32.xlu0 %v6239_v54 }
0x2f4d   : > { %6250 = vrot.lane.b32.xlu0 %v11805_v39, %s12379_s5 }
0x2fc4   : > { %v6241_v55 = vpop.xlane.xlu0 %6240 }
0x2fc5   : > { %v6242_v56 = vsub.f32 %v6238_v51, %v6241_v55  ;;  %v9516_v55 = vld [vmem:[%s12402_s22] ss:$0 sm:$0xff] }
0x2fc7   : > { %v6243_v57 = vmul.f32 1.442695, %v6242_v56 }
0x2fc8   : > { %v6251_v58 = vpop.permute.xlu0 %6250 }
0x2fc9   : > { %10852 = vpow2.f32 %v6243_v57  ;;  %10253 = vmatpush3.msra.mxu0 %v6251_v58 }
0x2fca   : > { %10570 = vmatprep.subr.bf16.mxu0 %v11002_v15 }
0x2fd3   : > { %v10853_v60 = vpop.eup %10852 }
0x2fd4   : > { %v6245_v61 = vsel %vm1457_vm2, %v10853_v60, 0.0 }
0x2fd5   : > { %6246 = vadd.xlane.f32.xlu1 %v6245_v61 }
0x3002   : > { %v6154_v63 = vpop.f32.mrb[58].mxu0 }
0x3003   : > { %v6158_v59 = vadd.f32 %v6154_v63, %v5915_v26  ;;  %v10246_v39 = vpop.f32.mrb[59].mxu0  ;;  %v6442_v26 = vld [vmem:[%s12397_s27] sm:$0xff]  ;;  %v9523_v63 = vld [vmem:[%s11130_s29 + $0x28] sm:$0xff] }
0x3004   : > { %v10577_v30 = vpack.c.bf16 %v6443_v28, %v6442_v26  ;;  %v10589_v39 = vpack.c.bf16 %v9523_v63, %v9522_v62 }
0x3062   : > { %v6247_v1 = vpop.xlane.xlu1 %6246 }
0x3063   : > { %10854 = vrcp.f32 %v6247_v1 }
0x306d   : > { %v10855_v53 = vpop.eup %10854 }
0x306e   : > { %v6249_v2 = vmul.f32 %v10855_v53, %v10853_v60 }
0x3070   : > { %10255 = vmatmul.mubr.msk.f32.vlgmr.msra.gmra.mrb[60].mxu0 %vm1457_vm2, %v6249_v2 }
0x3071   : > { %10270 = vmatprep.mubr.msk.f32.mxu0 %vm11003_vm1, %v11004_v19  ;;  %10572 = vmatpush3.bf16.msra.mxu0 %v10571_v23 }
0x3072   : > { %10573 = vmatprep.subr.bf16.mxu0 %v11002_v15 }
0x3143   : > { %v6322_v3 = vpop.f32.mrb[60].mxu0 }
0x3144   : > { %v10256_v4 = vpop.f32.mrb[61].mxu0  ;;  %10260 = vmatmul.mubr.msk.f32.vlgmr.msra.gmra.mrb[56].mxu1 %vm1457_vm2, %v6322_v3 }
0x3145   : > { %10289 = vmatprep.mubr.msk.f32.mxu1 %vm11003_vm1, %v11004_v19  ;;  %10578 = vmatpush3.bf16.msra.mxu1 %v10577_v30 }
0x3146   : > { %10579 = vmatprep.subr.bf16.mxu1 %v11002_v15 }
0x3149   : > { %10581 = vmatpush3.bf16.msra.mxu1 %v10580_v33 }
0x314a   : > { %10582 = vmatprep.subr.bf16.mxu1 %v11002_v15 }
0x314d   : > { %10584 = vmatpush3.bf16.msra.mxu1 %v10583_v35 }
0x314e   : > { %10585 = vmatprep.subr.bf16.mxu1 %v11002_v15 }
0x3151   : > { %10587 = vmatpush3.bf16.msra.mxu1 %v10586_v27 }
0x3152   : > { %10314 = vmatprep.subr.mxu1 %v11004_v19 }
0x3217   : > { %v6395_v6 = vpop.f32.mrb[56].mxu1 }
0x3218   : > { %v6399_v7 = vadd.f32 %v6395_v6, %v6158_v59  ;;  %v10261_v8 = vpop.f32.mrb[57].mxu1  ;;  %v10758_v59 = vpack.i.bf16 %v9523_v63, %v9522_v62  ;;  %v9525_v6 = vld [vmem:[%s11130_s29 + $0x38] sm:$0xff] }
0x321a   : > { %v6406_v9 = vadd.f32 %v9511_v5, %v6399_v7  ;;  %10759 = vrot.lane.b32.xlu0 %v10758_v59, %s12381_s6  ;;  %v9524_v5 = vld [vmem:[%s11130_s29 + $0x30] sm:$0xff] }
0x321b   : > { %v10763_v7 = vpack.i.bf16 %v9525_v6, %v9524_v5  ;;  %v10592_v8 = vpack.c.bf16 %v9525_v6, %v9524_v5 }
0x321c   : > { %v6407_v11 = vadd.f32 %v6406_v9, %v11773_v52  ;;  %v6439_v52 = vld [vmem:[%s12396_s19 + $0x10] sm:$0xff]  ;;  %v9532_v9 = vld [vmem:[%s11120_s20 + $0x1] ss:$0 sm:$0xff] }
0x321d   : > { %v10574_v25 = vpack.c.bf16 %v6440_v24, %v6439_v52  ;;  %v9521_v52 = vld [vmem:[%s12383_s12 + $0x1] ss:$0 sm:$0xff] }
0x321e   : > { %v6410_v12 = vsel %vm1250_vm0, %v6407_v11, 0.0  ;;  %6751 = vrot.lane.b32.xlu0 %v9532_v9, %s12381_s6 }
0x321f   : > { %6411 = vadd.xlane.f32.xlu1 %v6410_v12  ;;  %10575 = vmatpush3.bf16.msra.mxu0 %v10574_v25 }
0x3220   : > { %10588 = vmatprep.subr.bf16.mxu0 %v11002_v15 }
0x32ac   : > { %v6412_v13 = vpop.xlane.xlu1 %6411 }
0x32ad   : > { %v6413_v14 = vmul.f32 0.03125, %v6412_v13 }
0x32af   : > { %v6414_v0 = vsub.f32 %v6407_v11, %v6413_v14  ;;  %v10760_v14 = vpop.permute.xlu0 %10759 }
0x32b1   : > { %v6415_v18 = vmul.f32 %v6414_v0, %v6414_v0 }
0x32b3   : > { %v6416_v20 = vsel %vm1250_vm0, %v6415_v18, 0.0  ;;  %v10762_v18 = vunpack.i.h.bf16 %v10760_v14  ;;  %v6752_v34 = vpop.permute.xlu0 %6751 }
0x32b4   : > { %6417 = vadd.xlane.f32.xlu1 %v6416_v20  ;;  %v10761_v20 = vunpack.i.l.bf16 %v10760_v14 }
0x32b6   : > { %v10595_v25 = vpack.c.bf16 %v10762_v18, %v10761_v20 }
0x3341   : > { %v6418_v36 = vpop.xlane.xlu1 %6417 }
0x3342   : > { %v6419_v38 = vmul.f32 0.03125, %v6418_v36 }
0x3344   : > { %v6420_v37 = vadd.f32 1e-06, %v6419_v38 }
0x3346   : > { %10856 = vrsqrt.f32 %v6420_v37 }
0x3350   : > { %v10857_v40 = vpop.eup %10856 }
0x3351   : > { %v6422_v44 = vmul.f32 %v10857_v40, %v6414_v0 }
0x3353   : > { %v6429_v10 = vmul.f32 %v9512_v41, %v6422_v44 }
0x3355   : > { %v6436_v45 = vadd.f32 %v9513_v43, %v6429_v10 }
0x3357   : > { %10271 = vmatmul.mubr.msk.f32.vlgmr.msra.gmra.mrb[62].mxu0 %vm1250_vm0, %v6436_v45 }
0x3358   : > { %10300 = vmatprep.mubr.msk.f32.mxu0 %vm11003_vm1, %v11004_v19  ;;  %10590 = vmatpush3.bf16.msra.mxu0 %v10589_v39 }
0x3359   : > { %10591 = vmatprep.subr.bf16.mxu0 %v11002_v15 }
0x335c   : > { %10593 = vmatpush3.bf16.msra.mxu0 %v10592_v8 }
0x335d   : > { %10594 = vmatprep.subr.bf16.mxu0 %v11002_v15 }
0x342a   : > { %v6526_v49 = vpop.f32.mrb[62].mxu0 }
0x342b   : > { %v6527_v50 = vadd.f32 %v9514_v48, %v6526_v49  ;;  %v10272_v51 = vpop.f32.mrb[63].mxu0 }
0x342d   : > { %v6530_v54 = vmax.f32 %v6527_v50, 0.0 }
0x342f   : > { %10290 = vmatmul.mubr.msk.f32.vlgmr.msra.gmra.mrb[58].mxu1 %vm2556_vm4, %v6530_v54 }
0x3430   : > { %10316 = vmatprep.mubr.msk.f32.mxu1 %vm11003_vm1, %v11004_v19 }
0x3502   : > { %v6606_v56 = vpop.f32.mrb[58].mxu1 }
0x3503   : > { %v6607_v57 = vadd.f32 %v9516_v55, %v6606_v56  ;;  %v10291_v58 = vpop.f32.mrb[59].mxu1 }
0x3505   : > { %v11940_v60 = vadd.f32 %v6607_v57, %v6407_v11 }
0x3507   : > { %v6615_v61 = vsel %vm1250_vm0, %v11940_v60, 0.0 }
0x3508   : > { %6616 = vadd.xlane.f32.xlu1 %v6615_v61 }
0x3595   : > { %v6617_v1 = vpop.xlane.xlu1 %6616 }
0x3596   : > { %v6618_v53 = vmul.f32 0.03125, %v6617_v1 }
0x3598   : > { %v6619_v2 = vsub.f32 %v11940_v60, %v6618_v53 }
0x359a   : > { %v6620_v3 = vmul.f32 %v6619_v2, %v6619_v2 }
0x359c   : > { %v6621_v4 = vsel %vm1250_vm0, %v6620_v3, 0.0 }
0x359d   : > { %6622 = vadd.xlane.f32.xlu1 %v6621_v4 }
0x35ae   : > { %10764 = vrot.lane.b32.xlu1 %v10763_v7, %s12381_s6  ;;  %v9527_v7 = vld [vmem:[%s12385_s13 + $0x20] sm:$0xff] }
0x362a   : > { %v6623_v11 = vpop.xlane.xlu1 %6622 }
0x362b   : > { %v6624_v12 = vmul.f32 0.03125, %v6623_v11 }
0x362d   : > { %v6625_v13 = vadd.f32 1e-06, %v6624_v12 }
0x362e   : > { %v10765_v23 = vpop.permute.xlu1 %10764 }
0x362f   : > { %10858 = vrsqrt.f32 %v6625_v13  ;;  %v10767_v26 = vunpack.i.h.bf16 %v10765_v23  ;;  %v10766_v28 = vunpack.i.l.bf16 %v10765_v23 }
0x3631   : > { %v10598_v30 = vpack.c.bf16 %v10767_v26, %v10766_v28 }
0x3639   : > { %v10859_v0 = vpop.eup %10858 }
0x363a   : > { %v6627_v22 = vmul.f32 %v10859_v0, %v6619_v2  ;;  %v9528_v2 = vld [vmem:[%s12385_s13 + $0x28] sm:$0xff] }
0x363c   : > { %v6634_v24 = vmul.f32 %v9520_v21, %v6627_v22 }
0x363e   : > { %v6641_v29 = vadd.f32 %v9521_v52, %v6634_v24 }
0x3640   : > { %10301 = vmatmul.mubr.msk.f32.vlgmr.msra.gmra.mrb[64].mxu0 %vm1250_vm0, %v6641_v29 }
0x3641   : > { %10596 = vmatpush3.bf16.msra.mxu0 %v10595_v25  ;;  %10311 = vmatprep.mubr.msk.f32.mxu0 %vm11003_vm1, %v11004_v19 }
0x3642   : > { %10597 = vmatprep.subr.bf16.mxu0 %v11002_v15 }
0x3645   : > { %10599 = vmatpush3.bf16.msra.mxu0 %v10598_v30 }
0x3646   : > { %10324 = vmatprep.subr.mxu0 %v11004_v19 }
0x3648   : > { %10312 = vmatmul.mubr.msk.f32.vlgmr.msra.gmra.mrb[66].mxu0 %vm1250_vm0, %v6641_v29 }
0x3649   : > { %10326 = vmatprep.mubr.msk.f32.mxu0 %vm11003_vm1, %v11004_v19 }
0x3713   : > { %v6731_v32 = vpop.f32.mrb[64].mxu0 }
0x3714   : > { %v10302_v33 = vpop.f32.mrb[65].mxu0  ;;  %v11972_v38 = vadd.f32 %v9532_v9, %v6731_v32 }
0x371b   : > { %v6820_v16 = vpop.f32.mrb[66].mxu0 }
0x371c   : > { %v11966_v35 = vadd.f32 %v6820_v16, %v6752_v34  ;;  %v10313_v36 = vpop.f32.mrb[67].mxu0 }
0x371e   : > { %6991 = vrot.lane.b32.xlu0 %v11966_v35, %s12374_s18  ;;  %10315 = vmatpush3.xpose.msk.msra.mxu1 %vm1457_vm2, %v11966_v35 }
0x371f   : > { %10319 = vmatprep.subr.mxu1 %v11004_v19 }
0x3721   : > { %10317 = vmatmul.mubr.msk.f32.vlgmr.msra.gmra.mrb[60].mxu1 %vm1457_vm2, %v11972_v38 }
0x3722   : > { %6989 = vrot.lane.b32.xlu0 %v11972_v38, %s12374_s18  ;;  %10321 = vmatprep.mubr.msk.f32.mxu1 %vm11003_vm1, %v11004_v19 }
0x3790   : > { %v6992_v37 = vpop.permute.xlu0 %6991 }
0x3791   : > { %10325 = vmatpush3.xpose.msk.msra.mxu0 %vm1457_vm2, %v6992_v37 }
0x3792   : > { %10334 = vmatprep.subr.mxu0 %v11004_v19 }
0x3794   : > { %v6990_v40 = vpop.permute.xlu0 %6989 }
0x3795   : > { %10327 = vmatmul.mubr.msk.f32.vlgmr.msra.gmra.mrb[68].mxu0 %vm1457_vm2, %v6990_v40 }
0x3796   : > { %10336 = vmatprep.mubr.msk.f32.mxu0 %vm11003_vm1, %v11004_v19  ;;  %10335 = vmatpush3.msra.mxu0 %v9528_v2 }
0x3797   : > { %10344 = vmatprep.subr.mxu0 %v11004_v19 }
0x37f4   : > { %v6896_v41 = vpop.f32.mrb[60].mxu1 }
0x37f5   : > { %v6900_v44 = vmul.f32 0.35355338, %v6896_v41  ;;  %v10318_v43 = vpop.f32.mrb[61].mxu1  ;;  %v9529_v41 = vld [vmem:[%s12385_s13 + $0x30] sm:$0xff] }
0x37f7   : > { %v6901_v10 = vsel %vm4337_vm5, -1e+09, %v6900_v44 }
0x37f8   : > { %v6902_v45 = vsel %vm1457_vm2, %v6901_v10, -inf }
0x37f9   : > { %6903 = vmax.xlane.f32.xlu0 %v6902_v45 }
0x3868   : > { %v7063_v46 = vpop.f32.mrb[68].mxu0 }
0x3869   : > { %v7067_v47 = vmul.f32 0.35355338, %v7063_v46  ;;  %v10328_v27 = vpop.f32.mrb[69].mxu0 }
0x386b   : > { %v7068_v48 = vsel %vm4337_vm5, -1e+09, %v7067_v47 }
0x386c   : > { %v7069_v49 = vsel %vm1457_vm2, %v7068_v48, -inf }
0x386d   : > { %7070 = vmax.xlane.f32.xlu1 %v7069_v49 }
0x387e   : > { %6913 = vrot.lane.b32.xlu1 %v11966_v35, %s12381_s6 }
0x3882   : > { %7304 = vrot.lane.b32.xlu1 %v11966_v35, %s12375_s7 }
0x3886   : > { %v6904_v50 = vpop.xlane.xlu0 %6903  ;;  %7302 = vrot.lane.b32.xlu1 %v11972_v38, %s12375_s7 }
0x3887   : > { %v6905_v51 = vsub.f32 %v6901_v10, %v6904_v50 }
0x3889   : > { %v6906_v54 = vmul.f32 1.442695, %v6905_v51 }
0x388b   : > { %10860 = vpow2.f32 %v6906_v54 }
0x3895   : > { %v10861_v55 = vpop.eup %10860 }
0x3896   : > { %v6908_v56 = vsel %vm1457_vm2, %v10861_v55, 0.0 }
0x3897   : > { %6909 = vadd.xlane.f32.xlu0 %v6908_v56 }
0x38fa   : > { %v7071_v57 = vpop.xlane.xlu1 %7070 }
0x38fb   : > { %v7072_v58 = vsub.f32 %v7068_v48, %v7071_v57 }
0x38fd   : > { %v7073_v61 = vmul.f32 1.442695, %v7072_v58 }
0x38fe   : > { %v6914_v62 = vpop.permute.xlu1 %6913 }
0x38ff   : > { %10862 = vpow2.f32 %v7073_v61  ;;  %10320 = vmatpush3.msra.mxu1 %v6914_v62 }
0x3900   : > { %10329 = vmatprep.subr.mxu1 %v11004_v19 }
0x3902   : > { %v7305_v11 = vpop.permute.xlu1 %7304 }
0x3906   : > { %v7303_v14 = vpop.permute.xlu1 %7302 }
0x3909   : > { %v10863_v63 = vpop.eup %10862 }
0x390a   : > { %v7075_v59 = vsel %vm1457_vm2, %v10863_v63, 0.0 }
0x390b   : > { %7076 = vadd.xlane.f32.xlu0 %v7075_v59 }
0x3921   : > { %7080 = vrot.lane.b32.xlu0 %v11966_v35, %s12376_s10 }
0x3924   : > { %v6910_v39 = vpop.xlane.xlu0 %6909 }
0x3925   : > { %10864 = vrcp.f32 %v6910_v39  ;;  %v9551_v39 = vld [vmem:[%s12386_s8 + $0x1] ss:$0 sm:$0xff] }
0x392f   : > { %v10865_v1 = vpop.eup %10864 }
0x3930   : > { %v6912_v53 = vmul.f32 %v10865_v1, %v10861_v55  ;;  %v9530_v55 = vld [vmem:[%s12385_s13 + $0x38] sm:$0xff] }
0x3932   : > { %10322 = vmatmul.mubr.msk.f32.vlgmr.msra.gmra.mrb[62].mxu1 %vm1457_vm2, %v6912_v53 }
0x3933   : > { %10331 = vmatprep.mubr.msk.f32.mxu1 %vm11003_vm1, %v11004_v19 }
0x3998   : > { %v7077_v3 = vpop.xlane.xlu0 %7076 }
0x3999   : > { %10866 = vrcp.f32 %v7077_v3 }
0x399c   : > { %v7081_v4 = vpop.permute.xlu0 %7080 }
0x399d   : > { %10330 = vmatpush3.msra.mxu1 %v7081_v4 }
0x399e   : > { %10339 = vmatprep.subr.mxu1 %v11004_v19 }
0x39a3   : > { %v10867_v5 = vpop.eup %10866 }
0x39a4   : > { %v7079_v6 = vmul.f32 %v10867_v5, %v10863_v63 }
0x39a6   : > { %10332 = vmatmul.mubr.msk.f32.vlgmr.msra.gmra.mrb[64].mxu1 %vm1457_vm2, %v7079_v6  ;;  %v9558_v6 = vld [vmem:[%s12387_s14 + $0x30] sm:$0xff] }
0x39a7   : > { %10340 = vmatpush3.msra.mxu1 %v9527_v7  ;;  %10341 = vmatprep.mubr.msk.f32.mxu1 %vm11003_vm1, %v11004_v19  ;;  %v9559_v7 = vld [vmem:[%s12387_s14 + $0x38] sm:$0xff] }
0x39a8   : > { %10349 = vmatprep.subr.mxu1 %v11004_v19 }
0x3a05   : > { %v6985_v8 = vpop.f32.mrb[62].mxu1 }
0x3a06   : > { %v10323_v9 = vpop.f32.mrb[63].mxu1  ;;  %10342 = vmatmul.mubr.msk.f32.vlgmr.msra.gmra.mrb[66].mxu1 %vm1457_vm2, %v6985_v8  ;;  %v10773_v8 = vpack.i.bf16 %v9559_v7, %v9558_v6 }
0x3a07   : > { %10351 = vmatprep.mubr.msk.f32.mxu1 %vm11003_vm1, %v11004_v19 }
0x3a79   : > { %v7152_v12 = vpop.f32.mrb[64].mxu1 }
0x3a7a   : > { %v10333_v13 = vpop.f32.mrb[65].mxu1  ;;  %10337 = vmatmul.mubr.msk.f32.vlgmr.msra.gmra.mrb[70].mxu0 %vm1457_vm2, %v7152_v12 }
0x3a7b   : > { %10345 = vmatpush3.xpose.msk.msra.mxu0 %vm1457_vm2, %v7305_v11  ;;  %10346 = vmatprep.mubr.msk.f32.mxu0 %vm11003_vm1, %v11004_v19 }
0x3a7c   : > { %10354 = vmatprep.subr.mxu0 %v11004_v19 }
0x3a7e   : > { %10347 = vmatmul.mubr.msk.f32.vlgmr.msra.gmra.mrb[72].mxu0 %vm1457_vm2, %v7303_v14 }
0x3a7f   : > { %10356 = vmatprep.mubr.msk.f32.mxu0 %vm11003_vm1, %v11004_v19  ;;  %10355 = vmatpush3.msra.mxu0 %v9529_v41 }
0x3a80   : > { %10364 = vmatprep.subr.mxu0 %v11004_v19 }
0x3ad9   : > { %v7298_v0 = vpop.f32.mrb[66].mxu1 }
0x3ada   : > { %v10343_v18 = vpop.f32.mrb[67].mxu1 }
0x3b4d   : > { %v7225_v20 = vpop.f32.mrb[70].mxu0 }
0x3b4e   : > { %v7299_v21 = vadd.f32 %v7298_v0, %v7225_v20  ;;  %v10338_v22 = vpop.f32.mrb[71].mxu0  ;;  %v9557_v0 = vld [vmem:[%s12387_s14 + $0x28] sm:$0xff] }
0x3b4f   : > { %v9566_v22 = vld [vmem:[%s12388_s17 + $0x1] ss:$0 sm:$0xff] }
0x3b51   : > { %v7376_v23 = vpop.f32.mrb[72].mxu0 }
0x3b52   : > { %v7380_v52 = vmul.f32 0.35355338, %v7376_v23  ;;  %v10348_v24 = vpop.f32.mrb[73].mxu0 }
0x3b54   : > { %v7381_v25 = vsel %vm4337_vm5, -1e+09, %v7380_v52 }
0x3b55   : > { %v7382_v26 = vsel %vm1457_vm2, %v7381_v25, -inf }
0x3b56   : > { %7383 = vmax.xlane.f32.xlu0 %v7382_v26 }
0x3b6c   : > { %7393 = vrot.lane.b32.xlu0 %v11966_v35, %s12378_s4 }
0x3b70   : > { %7543 = vrot.lane.b32.xlu0 %v11972_v38, %s12377_s3 }
0x3be3   : > { %v7384_v28 = vpop.xlane.xlu0 %7383 }
0x3be4   : > { %v7385_v29 = vsub.f32 %v7381_v25, %v7384_v28 }
0x3be6   : > { %v7386_v30 = vmul.f32 1.442695, %v7385_v29 }
0x3be7   : > { %v7394_v32 = vpop.permute.xlu0 %7393 }
0x3be8   : > { %10868 = vpow2.f32 %v7386_v30  ;;  %10350 = vmatpush3.msra.mxu1 %v7394_v32 }
0x3be9   : > { %10359 = vmatprep.subr.mxu1 %v11004_v19 }
0x3beb   : > { %v7544_v40 = vpop.permute.xlu0 %7543 }
0x3bf2   : > { %v10869_v33 = vpop.eup %10868 }
0x3bf3   : > { %v7388_v34 = vsel %vm1457_vm2, %v10869_v33, 0.0 }
0x3bf4   : > { %7389 = vadd.xlane.f32.xlu1 %v7388_v34 }
0x3c05   : > { %7545 = vrot.lane.b32.xlu1 %v11966_v35, %s12377_s3 }
0x3c81   : > { %v7390_v16 = vpop.xlane.xlu1 %7389 }
0x3c82   : > { %10870 = vrcp.f32 %v7390_v16 }
0x3c85   : > { %v7546_v37 = vpop.permute.xlu1 %7545 }
0x3c8c   : > { %v10871_v36 = vpop.eup %10870 }
0x3c8d   : > { %v7392_v38 = vmul.f32 %v10871_v36, %v10869_v33  ;;  %v9554_v36 = vld [vmem:[%s12391_s24 + $0x1] ss:$0 sm:$0xff] }
0x3c8f   : > { %10352 = vmatmul.mubr.msk.f32.vlgmr.msra.gmra.mrb[68].mxu1 %vm1457_vm2, %v7392_v38 }
0x3c90   : > { %10360 = vmatpush3.xpose.msk.msra.mxu1 %vm1457_vm2, %v7546_v37  ;;  %10361 = vmatprep.mubr.msk.f32.mxu1 %vm11003_vm1, %v11004_v19  ;;  %v9555_v37 = vld [vmem:[%s12392_s25 + $0x1] ss:$0 sm:$0xff] }
0x3c91   : > { %10369 = vmatprep.subr.mxu1 %v11004_v19 }
0x3c93   : > { %10362 = vmatmul.mubr.msk.f32.vlgmr.msra.gmra.mrb[70].mxu1 %vm1457_vm2, %v7544_v40 }
0x3c94   : > { %10371 = vmatprep.mubr.msk.f32.mxu1 %vm11003_vm1, %v11004_v19  ;;  %10370 = vmatpush3.msra.mxu1 %v9530_v55 }
0x3c95   : > { %10606 = vmatprep.subr.bf16.mxu1 %v11002_v15 }
0x3d62   : > { %v7465_v44 = vpop.f32.mrb[68].mxu1 }
0x3d63   : > { %v10353_v43 = vpop.f32.mrb[69].mxu1  ;;  %10357 = vmatmul.mubr.msk.f32.vlgmr.msra.gmra.mrb[74].mxu0 %vm1457_vm2, %v7465_v44 }
0x3d64   : > { %10366 = vmatprep.mubr.msk.f32.mxu0 %vm11003_vm1, %v11004_v19 }
0x3d66   : > { %v7617_v10 = vpop.f32.mrb[70].mxu1 }
0x3d67   : > { %v7621_v45 = vmul.f32 0.35355338, %v7617_v10  ;;  %v10363_v46 = vpop.f32.mrb[71].mxu1 }
0x3d69   : > { %v7622_v47 = vsel %vm4337_vm5, -1e+09, %v7621_v45 }
0x3d6a   : > { %v7623_v27 = vsel %vm1457_vm2, %v7622_v47, -inf }
0x3d6b   : > { %7624 = vmax.xlane.f32.xlu1 %v7623_v27 }
0x3df8   : > { %v7625_v48 = vpop.xlane.xlu1 %7624 }
0x3df9   : > { %v7626_v49 = vsub.f32 %v7622_v47, %v7625_v48 }
0x3dfb   : > { %v7627_v50 = vmul.f32 1.442695, %v7626_v49 }
0x3dfd   : > { %10872 = vpow2.f32 %v7627_v50 }
0x3e07   : > { %v10873_v51 = vpop.eup %10872 }
0x3e08   : > { %v7629_v54 = vsel %vm1457_vm2, %v10873_v51, 0.0 }
0x3e09   : > { %7630 = vadd.xlane.f32.xlu0 %v7629_v54 }
0x3e1f   : > { %7634 = vrot.lane.b32.xlu0 %v11966_v35, %s12379_s5 }
0x3e23   : > { %10774 = vrot.lane.b32.xlu0 %v10773_v8, %s12381_s6 }
0x3e27   : > { %7932 = vrot.lane.b32.xlu0 %v9566_v22, %s12381_s6 }
0x3e36   : > { %v7538_v17 = vpop.f32.mrb[74].mxu0 }
0x3e37   : > { %v7542_v56 = vadd.f32 %v7538_v17, %v7299_v21  ;;  %v10358_v57 = vpop.f32.mrb[75].mxu0  ;;  %v10604_v21 = vpack.c.bf16 %v9559_v7, %v9558_v6 }
0x3e96   : > { %v7631_v58 = vpop.xlane.xlu0 %7630 }
0x3e97   : > { %10874 = vrcp.f32 %v7631_v58 }
0x3e9a   : > { %v7635_v61 = vpop.permute.xlu0 %7634 }
0x3e9b   : > { %10365 = vmatpush3.msra.mxu0 %v7635_v61 }
0x3e9c   : > { %10600 = vmatprep.subr.bf16.mxu0 %v11002_v15 }
0x3e9e   : > { %v10775_v24 = vpop.permute.xlu0 %10774 }
0x3e9f   : > { %v10777_v28 = vunpack.i.h.bf16 %v10775_v24  ;;  %v10776_v32 = vunpack.i.l.bf16 %v10775_v24 }
0x3ea1   : > { %v10875_v62 = vpop.eup %10874  ;;  %v10610_v34 = vpack.c.bf16 %v10777_v28, %v10776_v32 }
0x3ea2   : > { %v7633_v63 = vmul.f32 %v10875_v62, %v10873_v51  ;;  %v7933_v44 = vpop.permute.xlu0 %7932 }
0x3ea4   : > { %10367 = vmatmul.mubr.msk.f32.vlgmr.msra.gmra.mrb[76].mxu0 %vm1457_vm2, %v7633_v63 }
0x3ea5   : > { %10382 = vmatprep.mubr.msk.f32.mxu0 %vm11003_vm1, %v11004_v19 }
0x3f77   : > { %v7706_v35 = vpop.f32.mrb[76].mxu0 }
0x3f78   : > { %v10368_v59 = vpop.f32.mrb[77].mxu0  ;;  %10372 = vmatmul.mubr.msk.f32.vlgmr.msra.gmra.mrb[72].mxu1 %vm1457_vm2, %v7706_v35 }
0x3f79   : > { %10393 = vmatprep.mubr.msk.f32.mxu1 %vm11003_vm1, %v11004_v19 }
0x404b   : > { %v7779_v1 = vpop.f32.mrb[72].mxu1 }
0x404c   : > { %v7783_v53 = vadd.f32 %v7779_v1, %v7542_v56  ;;  %v10373_v2 = vpop.f32.mrb[73].mxu1 }
0x404e   : > { %v7790_v3 = vadd.f32 %v9551_v39, %v7783_v53 }
0x4050   : > { %v12066_v4 = vadd.f32 %v7790_v3, %v11940_v60  ;;  %v9556_v60 = vld [vmem:[%s12387_s14 + $0x20] sm:$0xff] }
0x4051   : > { %v10768_v18 = vpack.i.bf16 %v9557_v0, %v9556_v60  ;;  %v10601_v20 = vpack.c.bf16 %v9557_v0, %v9556_v60  ;;  %v9561_v0 = vld [vmem:[%s12394_s1 + $0x20] sm:$0xff] }
0x4052   : > { %v7796_v5 = vsel %vm1250_vm0, %v12066_v4, 0.0 }
0x4053   : > { %7797 = vadd.xlane.f32.xlu1 %v7796_v5  ;;  %10602 = vmatpush3.bf16.msra.mxu0 %v10601_v20 }
0x4054   : > { %10603 = vmatprep.subr.bf16.mxu0 %v11002_v15 }
0x4057   : > { %10605 = vmatpush3.bf16.msra.mxu0 %v10604_v21 }
0x4058   : > { %10396 = vmatprep.subr.mxu0 %v11004_v19 }
0x40e0   : > { %v7798_v9 = vpop.xlane.xlu1 %7797 }
0x40e1   : > { %v7799_v11 = vmul.f32 0.03125, %v7798_v9 }
0x40e3   : > { %v7800_v12 = vsub.f32 %v12066_v4, %v7799_v11  ;;  %v9562_v11 = vld [vmem:[%s12394_s1 + $0x28] sm:$0xff] }
0x40e5   : > { %v7801_v13 = vmul.f32 %v7800_v12, %v7800_v12 }
0x40e7   : > { %v7802_v14 = vsel %vm1250_vm0, %v7801_v13, 0.0 }
0x40e8   : > { %7803 = vadd.xlane.f32.xlu1 %v7802_v14 }
0x40f9   : > { %10769 = vrot.lane.b32.xlu1 %v10768_v18, %s12381_s6 }
0x4175   : > { %v7804_v23 = vpop.xlane.xlu1 %7803 }
0x4176   : > { %v7805_v52 = vmul.f32 0.03125, %v7804_v23 }
0x4178   : > { %v7806_v25 = vadd.f32 1e-06, %v7805_v52 }
0x4179   : > { %v10770_v26 = vpop.permute.xlu1 %10769 }
0x417a   : > { %10876 = vrsqrt.f32 %v7806_v25  ;;  %v10772_v29 = vunpack.i.h.bf16 %v10770_v26  ;;  %v10771_v30 = vunpack.i.l.bf16 %v10770_v26 }
0x417c   : > { %v10607_v33 = vpack.c.bf16 %v10772_v29, %v10771_v30 }
0x417e   : > { %10608 = vmatpush3.bf16.msra.mxu1 %v10607_v33 }
0x417f   : > { %10609 = vmatprep.subr.bf16.mxu1 %v11002_v15 }
0x4182   : > { %10611 = vmatpush3.bf16.msra.mxu1 %v10610_v34 }
0x4183   : > { %10401 = vmatprep.subr.mxu1 %v11004_v19 }
0x4184   : > { %v10877_v16 = vpop.eup %10876 }
0x4185   : > { %v7808_v38 = vmul.f32 %v10877_v16, %v7800_v12  ;;  %10394 = vmatmul.mubr.msk.f32.vlgmr.msra.gmra.mrb[74].mxu1 %vm1250_vm0, %v11793_v31 }
0x4186   : > { %10403 = vmatprep.mubr.msk.f32.mxu1 %vm11003_vm1, %v11004_v19 }
0x4187   : > { %v7815_v40 = vmul.f32 %v9554_v36, %v7808_v38 }
0x4189   : > { %v7822_v41 = vadd.f32 %v9555_v37, %v7815_v40 }
0x418b   : > { %10383 = vmatmul.mubr.msk.f32.vlgmr.msra.gmra.mrb[78].mxu0 %vm1250_vm0, %v7822_v41 }
0x418c   : > { %10398 = vmatprep.mubr.msk.f32.mxu0 %vm11003_vm1, %v11004_v19 }
0x4258   : > { %v8001_v43 = vpop.f32.mrb[74].mxu1 }
0x4259   : > { %v12093_v10 = vadd.f32 %v8001_v43, %v7933_v44  ;;  %v10395_v45 = vpop.f32.mrb[75].mxu1 }
0x425b   : > { %8172 = vrot.lane.b32.xlu1 %v12093_v10, %s12374_s18  ;;  %10397 = vmatpush3.xpose.msk.msra.mxu0 %vm1457_vm2, %v12093_v10 }
0x425c   : > { %10406 = vmatprep.subr.mxu0 %v11004_v19 }
0x425e   : > { %v7912_v31 = vpop.f32.mrb[78].mxu0 }
0x425f   : > { %v12100_v46 = vadd.f32 %v9566_v22, %v7912_v31  ;;  %v10384_v47 = vpop.f32.mrb[79].mxu0 }
0x4261   : > { %8170 = vrot.lane.b32.xlu0 %v12100_v46, %s12374_s18  ;;  %10399 = vmatmul.mubr.msk.f32.vlgmr.msra.gmra.mrb[80].mxu0 %vm1457_vm2, %v12100_v46 }
0x4262   : > { %10408 = vmatprep.mubr.msk.f32.mxu0 %vm11003_vm1, %v11004_v19 }
0x42cd   : > { %v8173_v27 = vpop.permute.xlu1 %8172 }
0x42ce   : > { %10407 = vmatpush3.xpose.msk.msra.mxu0 %vm1457_vm2, %v8173_v27  ;;  %v9563_v27 = vld [vmem:[%s12394_s1 + $0x30] sm:$0xff] }
0x42cf   : > { %10416 = vmatprep.subr.mxu0 %v11004_v19 }
0x42d3   : > { %v8171_v48 = vpop.permute.xlu0 %8170 }
0x42d4   : > { %10409 = vmatmul.mubr.msk.f32.vlgmr.msra.gmra.mrb[82].mxu0 %vm1457_vm2, %v8171_v48 }
0x42d5   : > { %10418 = vmatprep.mubr.msk.f32.mxu0 %vm11003_vm1, %v11004_v19  ;;  %10417 = vmatpush3.msra.mxu0 %v9562_v11 }
0x42d6   : > { %10426 = vmatprep.subr.mxu0 %v11004_v19 }
0x4334   : > { %v8077_v49 = vpop.f32.mrb[80].mxu0 }
0x4335   : > { %v8081_v50 = vmul.f32 0.35355338, %v8077_v49  ;;  %v10400_v51 = vpop.f32.mrb[81].mxu0 }
0x4337   : > { %v8082_v54 = vsel %vm5516_vm6, -1e+09, %v8081_v50 }
0x4338   : > { %v8083_v55 = vsel %vm1457_vm2, %v8082_v54, -inf }
0x4339   : > { %8084 = vmax.xlane.f32.xlu1 %v8083_v55 }
0x43a7   : > { %v8244_v17 = vpop.f32.mrb[82].mxu0 }
0x43a8   : > { %v8248_v56 = vmul.f32 0.35355338, %v8244_v17  ;;  %v10410_v57 = vpop.f32.mrb[83].mxu0 }
0x43aa   : > { %v8249_v58 = vsel %vm5516_vm6, -1e+09, %v8248_v56 }
0x43ab   : > { %v8250_v61 = vsel %vm1457_vm2, %v8249_v58, -inf }
0x43ac   : > { %8251 = vmax.xlane.f32.xlu0 %v8250_v61 }
0x43c6   : > { %v8085_v62 = vpop.xlane.xlu1 %8084 }
0x43c7   : > { %v8086_v63 = vsub.f32 %v8082_v54, %v8085_v62 }
0x43c9   : > { %v8087_v35 = vmul.f32 1.442695, %v8086_v63 }
0x43cb   : > { %10878 = vpow2.f32 %v8087_v35 }
0x43d5   : > { %v10879_v59 = vpop.eup %10878 }
0x43d6   : > { %v8089_v39 = vsel %vm1457_vm2, %v10879_v59, 0.0 }
0x43d7   : > { %8090 = vadd.xlane.f32.xlu0 %v8089_v39 }
0x43ed   : > { %8094 = vrot.lane.b32.xlu0 %v12093_v10, %s12381_s6 }
0x43f1   : > { %8483 = vrot.lane.b32.xlu0 %v12100_v46, %s12375_s7 }
0x4439   : > { %v8252_v1 = vpop.xlane.xlu0 %8251 }
0x443a   : > { %v8253_v53 = vsub.f32 %v8249_v58, %v8252_v1 }
0x443c   : > { %v8254_v2 = vmul.f32 1.442695, %v8253_v53 }
0x443e   : > { %10880 = vpow2.f32 %v8254_v2 }
0x4448   : > { %v10881_v3 = vpop.eup %10880 }
0x4449   : > { %v8256_v5 = vsel %vm1457_vm2, %v10881_v3, 0.0 }
0x444a   : > { %8257 = vadd.xlane.f32.xlu1 %v8256_v5  ;;  %v9585_v5 = vld [vmem:[%s12395_s21 + $0x1] ss:$0 sm:$0xff] }
0x445b   : > { %8261 = vrot.lane.b32.xlu1 %v12093_v10, %s12376_s10  ;;  %s9611_s10 = sshll.u32 %s11238_s0, 7  ;;  %s11011_s0 = smov [#allocation2]  }
0x445c   : > { %s12224_s6 = scalar_lea.hbm %s11215_s30, %s9611_s10 }
0x445f   : > { %8485 = vrot.lane.b32.xlu1 %v12093_v10, %s12375_s7 }
0x4464   : > { %v8091_v6 = vpop.xlane.xlu0 %8090 }
0x4465   : > { %10882 = vrcp.f32 %v8091_v6 }
0x4468   : > { %v8095_v7 = vpop.permute.xlu0 %8094 }
0x4469   : > { %10402 = vmatpush3.msra.mxu1 %v8095_v7 }
0x446a   : > { %10411 = vmatprep.subr.mxu1 %v11004_v19 }
0x446c   : > { %v8484_v52 = vpop.permute.xlu0 %8483 }
0x446f   : > { %v10883_v8 = vpop.eup %10882 }
0x4470   : > { %v8093_v9 = vmul.f32 %v10883_v8, %v10879_v59 }
0x4472   : > { %10404 = vmatmul.mubr.msk.f32.vlgmr.msra.gmra.mrb[76].mxu1 %vm1457_vm2, %v8093_v9 }
0x4473   : > { %10413 = vmatprep.mubr.msk.f32.mxu1 %vm11003_vm1, %v11004_v19 }
0x44d7   : > { %v8258_v12 = vpop.xlane.xlu1 %8257 }
0x44d8   : > { %10884 = vrcp.f32 %v8258_v12 }
0x44db   : > { %v8262_v13 = vpop.permute.xlu1 %8261 }
0x44dc   : > { %10412 = vmatpush3.msra.mxu1 %v8262_v13 }
0x44dd   : > { %10421 = vmatprep.subr.mxu1 %v11004_v19 }
0x44df   : > { %v8486_v22 = vpop.permute.xlu1 %8485 }
0x44e2   : > { %v10885_v14 = vpop.eup %10884 }
0x44e3   : > { %v8260_v60 = vmul.f32 %v10885_v14, %v10881_v3 }
0x44e5   : > { %10414 = vmatmul.mubr.msk.f32.vlgmr.msra.gmra.mrb[78].mxu1 %vm1457_vm2, %v8260_v60 }
0x44e6   : > { %10422 = vmatpush3.msra.mxu1 %v9561_v0  ;;  %10423 = vmatprep.mubr.msk.f32.mxu1 %vm11003_vm1, %v11004_v19 }
0x44e7   : > { %10431 = vmatprep.subr.mxu1 %v11004_v19 }
0x4545   : > { %v8166_v18 = vpop.f32.mrb[76].mxu1 }
0x4546   : > { %v10405_v20 = vpop.f32.mrb[77].mxu1  ;;  %10424 = vmatmul.mubr.msk.f32.vlgmr.msra.gmra.mrb[80].mxu1 %vm1457_vm2, %v8166_v18  ;;  %v9590_v18 = vld [vmem:[%s12396_s19 + $0x20] sm:$0xff] }
0x4547   : > { %10433 = vmatprep.mubr.msk.f32.mxu1 %vm11003_vm1, %v11004_v19  ;;  %v9591_v20 = vld [vmem:[%s12396_s19 + $0x28] sm:$0xff] }
0x45b8   : > { %v8333_v21 = vpop.f32.mrb[78].mxu1 }
0x45b9   : > { %v10415_v23 = vpop.f32.mrb[79].mxu1  ;;  %10419 = vmatmul.mubr.msk.f32.vlgmr.msra.gmra.mrb[84].mxu0 %vm1457_vm2, %v8333_v21  ;;  %v10613_v21 = vpack.c.bf16 %v9591_v20, %v9590_v18 }
0x45ba   : > { %10427 = vmatpush3.xpose.msk.msra.mxu0 %vm1457_vm2, %v8486_v22  ;;  %10428 = vmatprep.mubr.msk.f32.mxu0 %vm11003_vm1, %v11004_v19  ;;  %v9593_v22 = vld [vmem:[%s12396_s19 + $0x38] sm:$0xff] }
0x45bb   : > { %10436 = vmatprep.subr.mxu0 %v11004_v19 }
0x45bd   : > { %10429 = vmatmul.mubr.msk.f32.vlgmr.msra.gmra.mrb[86].mxu0 %vm1457_vm2, %v8484_v52  ;;  %v9595_v52 = vld [vmem:[%s12397_s27 + $0x40] sm:$0xff] }
0x45be   : > { %10438 = vmatprep.mubr.msk.f32.mxu0 %vm11003_vm1, %v11004_v19  ;;  %10437 = vmatpush3.msra.mxu0 %v9563_v27 }
0x45bf   : > { %10446 = vmatprep.subr.mxu0 %v11004_v19 }
0x4619   : > { %v8479_v24 = vpop.f32.mrb[80].mxu1 }
0x461a   : > { %v10425_v25 = vpop.f32.mrb[81].mxu1 }
0x461b   : > { %v9597_v25 = vld [vmem:[%s12397_s27 + $0x50] sm:$0xff] }
0x468c   : > { %v8406_v26 = vpop.f32.mrb[84].mxu0 }
0x468d   : > { %v8480_v28 = vadd.f32 %v8479_v24, %v8406_v26  ;;  %v10420_v29 = vpop.f32.mrb[85].mxu0  ;;  %v9596_v24 = vld [vmem:[%s12397_s27 + $0x48] sm:$0xff] }
0x468e   : > { %v10619_v26 = vpack.c.bf16 %v9596_v24, %v9595_v52 }
0x4690   : > { %v8557_v30 = vpop.f32.mrb[86].mxu0 }
0x4691   : > { %v8561_v32 = vmul.f32 0.35355338, %v8557_v30  ;;  %v10430_v33 = vpop.f32.mrb[87].mxu0  ;;  %v9599_v30 = vld [vmem:[%s12397_s27 + $0x60] sm:$0xff] }
0x4693   : > { %v8562_v34 = vsel %vm5516_vm6, -1e+09, %v8561_v32  ;;  %v9600_v32 = vld [vmem:[%s12397_s27 + $0x68] sm:$0xff] }
0x4694   : > { %v8563_v16 = vsel %vm1457_vm2, %v8562_v34, -inf  ;;  %v10625_v33 = vpack.c.bf16 %v9600_v32, %v9599_v30 }
0x4695   : > { %8564 = vmax.xlane.f32.xlu1 %v8563_v16 }
0x46a6   : > { %8726 = vrot.lane.b32.xlu1 %v12093_v10, %s12377_s3 }
0x46aa   : > { %8724 = vrot.lane.b32.xlu1 %v12100_v46, %s12377_s3  ;;  %s12405_s3 = sld [smem:[#allocation22_spill]] }
0x4722   : > { %v8565_v36 = vpop.xlane.xlu1 %8564 }
0x4723   : > { %v8566_v38 = vsub.f32 %v8562_v34, %v8565_v36 }
0x4725   : > { %v8567_v37 = vmul.f32 1.442695, %v8566_v38 }
0x4726   : > { %v8727_v31 = vpop.permute.xlu1 %8726 }
0x4727   : > { %10886 = vpow2.f32 %v8567_v37  ;;  %v9588_v37 = vld [vmem:[%s12398_s11 + $0x1] ss:$0 sm:$0xff] }
0x472a   : > { %v8725_v47 = vpop.permute.xlu1 %8724 }
0x4731   : > { %v10887_v40 = vpop.eup %10886 }
0x4732   : > { %v8569_v41 = vsel %vm1457_vm2, %v10887_v40, 0.0 }
0x4733   : > { %8570 = vadd.xlane.f32.xlu0 %v8569_v41  ;;  %v9589_v41 = vld [vmem:[%s12400_s2 + $0x1] ss:$0 sm:$0xff] }
0x4749   : > { %8574 = vrot.lane.b32.xlu0 %v12093_v10, %s12378_s4  ;;  %s1223_s4 = sand.u32 1, %s10952_s23  }
0x474a   : > { %s9376_s22 = sshll.u32 %s1223_s4, 3  ;;  %s9213_s1 = scalar_lea.sflag [#allocation3], %s1223_s4 }
0x474b   : > { %s1225_s7 = scalar_lea.vmem [#allocation2], %s9376_s22 }
0x474c   : > { %s9226_s18 = sshll.u32 %s1225_s7, 4  ;;  %s12226_s18 = int_to_ptr.vmem [resolvable:$true] %s9226_s18 }
0x474d   : > { %s10898_s2 = scalar_lea.vmem %s12226_s18, 128 }
0x474e   : > { %p10899_p11 = scmp.ne.s32.totalorder %s12226_s18, %s10898_s2 }
0x4750   : > { %p10900_p12 = pnand %p10899_p11, %p11255_p5 }
0x4752   : > { %p10901_p13 = pneg %p10900_p12 }
0x47c0   : > { %v8571_v44 = vpop.xlane.xlu0 %8570 }
0x47c1   : > { %10888 = vrcp.f32 %v8571_v44 }
0x47c4   : > { %v8575_v43 = vpop.permute.xlu0 %8574 }
0x47c5   : > { %10432 = vmatpush3.msra.mxu1 %v8575_v43 }
0x47c6   : > { %10441 = vmatprep.subr.mxu1 %v11004_v19 }
0x47cb   : > { %v10889_v45 = vpop.eup %10888 }
0x47cc   : > { %v8573_v46 = vmul.f32 %v10889_v45, %v10887_v40  ;;  %v9601_v45 = vld [vmem:[%s12397_s27 + $0x70] sm:$0xff] }
0x47ce   : > { %10434 = vmatmul.mubr.msk.f32.vlgmr.msra.gmra.mrb[82].mxu1 %vm1457_vm2, %v8573_v46 }
0x47cf   : > { %10442 = vmatpush3.xpose.msk.msra.mxu1 %vm1457_vm2, %v8727_v31  ;;  %10443 = vmatprep.mubr.msk.f32.mxu1 %vm11003_vm1, %v11004_v19  ;;  %v9602_v31 = vld [vmem:[%s12397_s27 + $0x78] sm:$0xff] }
0x47d0   : > { %10451 = vmatprep.subr.mxu1 %v11004_v19  ;;  %v10628_v46 = vpack.c.bf16 %v9602_v31, %v9601_v45 }
0x47d2   : > { %10444 = vmatmul.mubr.msk.f32.vlgmr.msra.gmra.mrb[84].mxu1 %vm1457_vm2, %v8725_v47  ;;  %v9604_v47 = vld [vmem:[%s12401_s16 + $0x1] ss:$0 sm:$0xff] }
0x47d3   : > { %10453 = vmatprep.mubr.msk.f32.mxu1 %vm11003_vm1, %v11004_v19  ;;  %10452 = vmatpush3.msra.mxu1 %v9564_v42 }
0x47d4   : > { %10618 = vmatprep.subr.bf16.mxu1 %v11002_v15 }
0x48a1   : > { %v8646_v48 = vpop.f32.mrb[82].mxu1 }
0x48a2   : > { %v10435_v49 = vpop.f32.mrb[83].mxu1  ;;  %10439 = vmatmul.mubr.msk.f32.vlgmr.msra.gmra.mrb[88].mxu0 %vm1457_vm2, %v8646_v48 }
0x48a3   : > { %10448 = vmatprep.mubr.msk.f32.mxu0 %vm11003_vm1, %v11004_v19 }
0x48a5   : > { %v8798_v50 = vpop.f32.mrb[84].mxu1 }
0x48a6   : > { %v8802_v51 = vmul.f32 0.35355338, %v8798_v50  ;;  %v10445_v54 = vpop.f32.mrb[85].mxu1  ;;  %v9606_v50 = vld [vmem:[%s12403_s15 + $0x1] ss:$0 sm:$0xff] }
0x48a8   : > { %v8803_v55 = vsel %vm5516_vm6, -1e+09, %v8802_v51 }
0x48a9   : > { %v8804_v17 = vsel %vm1457_vm2, %v8803_v55, -inf }
0x48aa   : > { %8805 = vmax.xlane.f32.xlu0 %v8804_v17 }
0x48c0   : > { %8815 = vrot.lane.b32.xlu0 %v12093_v10, %s12379_s5  ;;  %s12404_s5 = sld [smem:[#allocation23_spill]] }
0x4937   : > { %v8806_v56 = vpop.xlane.xlu0 %8805 }
0x4938   : > { %v8807_v57 = vsub.f32 %v8803_v55, %v8806_v56 }
0x493a   : > { %v8808_v58 = vmul.f32 1.442695, %v8807_v57 }
0x493b   : > { %v8816_v61 = vpop.permute.xlu0 %8815 }
0x493c   : > { %10890 = vpow2.f32 %v8808_v58  ;;  %10447 = vmatpush3.msra.mxu0 %v8816_v61 }
0x493d   : > { %10612 = vmatprep.subr.bf16.mxu0 %v11002_v15 }
0x4946   : > { %v10891_v62 = vpop.eup %10890 }
0x4947   : > { %v8810_v63 = vsel %vm1457_vm2, %v10891_v62, 0.0 }
0x4948   : > { %8811 = vadd.xlane.f32.xlu1 %v8810_v63 }
0x4975   : > { %v8719_v35 = vpop.f32.mrb[88].mxu0 }
0x4976   : > { %v8723_v59 = vadd.f32 %v8719_v35, %v8480_v28  ;;  %v10440_v10 = vpop.f32.mrb[89].mxu0  ;;  %v9598_v28 = vld [vmem:[%s12397_s27 + $0x58] sm:$0xff] }
0x4977   : > { %v10622_v29 = vpack.c.bf16 %v9598_v28, %v9597_v25 }
0x49d5   : > { %v8812_v39 = vpop.xlane.xlu1 %8811 }
0x49d6   : > { %10892 = vrcp.f32 %v8812_v39  ;;  %v9608_v39 = vld [vmem:[%s12404_s5] ss:$0 sm:$0xff]  ;;  %s10902_s5 = sshll.u32 %s11011_s0, 4  ;;  %s10903_s5 = int_to_ptr.vmem [resolvable:$false] %s10902_s5 }
0x49d7   : > { %p10905_p0 = scmp.lt.s32.totalorder %s12226_s18, %s10903_s5 }
0x49e0   : > { %v10893_v1 = vpop.eup %10892 }
0x49e1   : > { %v8814_v53 = vmul.f32 %v10893_v1, %v10891_v62 }
0x49e3   : > { %10449 = vmatmul.mubr.msk.f32.vlgmr.msra.gmra.mrb[90].mxu0 %vm1457_vm2, %v8814_v53  ;;  %v9609_v53 = vld [vmem:[%s12405_s3] ss:$0 sm:$0xff]  ;;  %s10904_s3 = scalar_lea.vmem %s10903_s5, 256 }
0x49e4   : > { %10464 = vmatprep.mubr.msk.f32.mxu0 %vm11003_vm1, %v11004_v19  ;;  %10614 = vmatpush3.bf16.msra.mxu0 %v10613_v21  ;;  %p10906_p1 = scmp.lt.s32.totalorder %s10904_s3, %s10898_s2 }
0x49e5   : > { %10615 = vmatprep.subr.bf16.mxu0 %v11002_v15 }
0x49e6   : > { %p10907_p2 = por %p10906_p1, %p10905_p0 }
0x49e8   : > { %p10908_p3 = pnand %p10907_p2, %p10901_p13 }
0x4ab6   : > { %v8887_v2 = vpop.f32.mrb[90].mxu0 }
0x4ab7   : > { %v10450_v3 = vpop.f32.mrb[91].mxu0  ;;  %10454 = vmatmul.mubr.msk.f32.vlgmr.msra.gmra.mrb[86].mxu1 %vm1457_vm2, %v8887_v2 }
0x4ab8   : > { %10483 = vmatprep.mubr.msk.f32.mxu1 %vm11003_vm1, %v11004_v19  ;;  %10620 = vmatpush3.bf16.msra.mxu1 %v10619_v26 }
0x4ab9   : > { %10621 = vmatprep.subr.bf16.mxu1 %v11002_v15 }
0x4abc   : > { %10623 = vmatpush3.bf16.msra.mxu1 %v10622_v29 }
0x4abd   : > { %10624 = vmatprep.subr.bf16.mxu1 %v11002_v15 }
0x4ac0   : > { %10626 = vmatpush3.bf16.msra.mxu1 %v10625_v33 }
0x4ac1   : > { %10627 = vmatprep.subr.bf16.mxu1 %v11002_v15 }
0x4ac4   : > { %10629 = vmatpush3.bf16.msra.mxu1 %v10628_v46 }
0x4b8a   : > { %v8960_v6 = vpop.f32.mrb[86].mxu1 }
0x4b8b   : > { %v8964_v7 = vadd.f32 %v8960_v6, %v8723_v59  ;;  %v10455_v8 = vpop.f32.mrb[87].mxu1 }
0x4b8d   : > { %v8971_v9 = vadd.f32 %v9585_v5, %v8964_v7 }
0x4b8f   : > { %v8972_v11 = vadd.f32 %v8971_v9, %v12066_v4  ;;  %v9592_v4 = vld [vmem:[%s12396_s19 + $0x30] sm:$0xff] }
0x4b90   : > { %v10616_v23 = vpack.c.bf16 %v9593_v22, %v9592_v4 }
0x4b91   : > { %v8977_v12 = vsel %vm1250_vm0, %v8972_v11, 0.0 }
0x4b92   : > { %8978 = vadd.xlane.f32.xlu1 %v8977_v12  ;;  %10617 = vmatpush3.bf16.msra.mxu0 %v10616_v23 }
0x4c1f   : > { %v8979_v13 = vpop.xlane.xlu1 %8978 }
0x4c20   : > { %v8980_v14 = vmul.f32 0.03125, %v8979_v13 }
0x4c22   : > { %v8981_v60 = vsub.f32 %v8972_v11, %v8980_v14 }
0x4c24   : > { %v8982_v19 = vmul.f32 %v8981_v60, %v8981_v60 }
0x4c26   : > { %v8983_v0 = vsel %vm1250_vm0, %v8982_v19, 0.0 }
0x4c27   : > { %8984 = vadd.xlane.f32.xlu1 %v8983_v0 }
0x4cb4   : > { %v8985_v34 = vpop.xlane.xlu1 %8984 }
0x4cb5   : > { %v8986_v16 = vmul.f32 0.03125, %v8985_v34 }
0x4cb7   : > { %v8987_v36 = vadd.f32 1e-06, %v8986_v16 }
0x4cb9   : > { %10894 = vrsqrt.f32 %v8987_v36 }
0x4cc3   : > { %v10895_v38 = vpop.eup %10894 }
0x4cc4   : > { %v8989_v40 = vmul.f32 %v10895_v38, %v8981_v60 }
0x4cc6   : > { %v8996_v44 = vmul.f32 %v9588_v37, %v8989_v40 }
0x4cc8   : > { %v9003_v43 = vadd.f32 %v9589_v41, %v8996_v44 }
0x4cca   : > { %10465 = vmatmul.mubr.msk.f32.vlgmr.msra.gmra.mrb[92].mxu0 %vm1250_vm0, %v9003_v43 }
0x4d9d   : > { %v9097_v15 = vpop.f32.mrb[92].mxu0 }
0x4d9e   : > { %v9098_v27 = vadd.f32 %v9604_v47, %v9097_v15  ;;  %v10466_v48 = vpop.f32.mrb[93].mxu0 }
0x4da0   : > { %v9101_v49 = vmax.f32 %v9098_v27, 0.0 }
0x4da2   : > { %10484 = vmatmul.mubr.msk.f32.vlgmr.msra.gmra.mrb[88].mxu1 %vm2556_vm4, %v9101_v49 }
0x4e75   : > { %v9177_v51 = vpop.f32.mrb[88].mxu1 }
0x4e76   : > { %v9178_v54 = vadd.f32 %v9606_v50, %v9177_v51  ;;  %v10485_v55 = vpop.f32.mrb[89].mxu1 }
0x4e78   : > { %v9181_v17 = vadd.f32 %v9178_v54, %v8972_v11 }
0x4e7a   : > { %v9184_v56 = vsel %vm1250_vm0, %v9181_v17, 0.0 }
0x4e7b   : > { %9185 = vadd.xlane.f32.xlu1 %v9184_v56 }
0x4f08   : > { %v9186_v57 = vpop.xlane.xlu1 %9185 }
0x4f09   : > { %v9187_v58 = vmul.f32 0.03125, %v9186_v57 }
0x4f0b   : > { %v9188_v61 = vsub.f32 %v9181_v17, %v9187_v58 }
0x4f0d   : > { %v9189_v62 = vmul.f32 %v9188_v61, %v9188_v61 }
0x4f0f   : > { %v9190_v63 = vsel %vm1250_vm0, %v9189_v62, 0.0 }
0x4f10   : > { %9191 = vadd.xlane.f32.xlu1 %v9190_v63 }
0x4f9d   : > { %v9192_v42 = vpop.xlane.xlu1 %9191 }
0x4f9e   : > { %v9193_v35 = vmul.f32 0.03125, %v9192_v42 }
0x4fa0   : > { %v9194_v59 = vadd.f32 1e-06, %v9193_v35 }
0x4fa2   : > { %10896 = vrsqrt.f32 %v9194_v59 }
0x4fac   : > { %v10897_v10 = vpop.eup %10896 }
0x4fad   : > { %v9196_v1 = vmul.f32 %v10897_v10, %v9188_v61 }
0x4faf   : > { %v9203_v2 = vmul.f32 %v9608_v39, %v9196_v1 }
0x4fb1   : > { %v9210_v3 = vadd.f32 %v9609_v53, %v9203_v2 }
0x4fb3   : > { %9211 = vst.msk [vmem:[%s1225_s7] sm:$0xff] %vm1250_vm0, %v9210_v3 }
0x4fb4   : > { %10911 = shalt.err (!%p10908_p3)
}
0x4fb5   : > { %s10912_s4 = scalar_lea.hbm %s12224_s6, 128  ;;  %s10916_s22 = scalar_lea.hbm %s11215_s30, 256 }
0x4fb6   : > { %p10913_p4 = scmp.ne.s32.totalorder %s12224_s6, %s10912_s4  ;;  %p10917_p9 = scmp.lt.u32.totalorder %s12224_s6, %s11215_s30 }
0x4fb7   : > { %p10918_p10 = scmp.lt.u32.totalorder %s10916_s22, %s10912_s4  ;;  %p10920_p12 = scmp.lt.u32.totalorder %s10912_s4, %s12224_s6 }
0x4fb8   : > { %p10914_p7 = pnand %p10913_p4, %p11255_p5 }
0x4fb9   : > { %p10919_p11 = por %p10918_p10, %p10917_p9 }
0x4fba   : > { %p10915_p8 = pneg %p10914_p7 }
0x4fbb   : > { %p10921_p0 = por %p10920_p12, %p10919_p11 }
0x4fbd   : > { %p10922_p13 = pnand %p10921_p0, %p10915_p8 }
0x4fbf   : > { %10925 = shalt.err (!%p10922_p13)
}
0x4fc0   : > { %10630 = dma.vmem_to_hbm [thread:$0]  (%p11255_p5), %s12226_s18, 128, %s12224_s6, %s9213_s1  }
0x4fc1 PF: > { %s12407_s2 = sld [smem:[#allocation42_spill]]  ;;  %p10636_p1 = scmp.ge.s32.totalorder %s10960_s28, 2 }
0x4fc3   : > { %p10633_p2 = pnand %p10636_p1, %p11259_p6 }
0x4fc7   : > { %s9238_s7 = sand.u32 1, %s12407_s2  }
0x4fc8   : > { %s9239_s0 = scalar_lea.sflag [#allocation3], %s9238_s7 }
0x4fc9   : > { %10943 = dma.done.wait (!%p10633_p2), %s9239_s0, 128  }
0x4fca   : > { %10945 = vsyncadd (!%p10633_p2), %s9239_s0, 4294967168  ;;  %s12409_s28 = sld [smem:[#allocation44_spill]]  ;;  %s12410_s5 = sld [smem:[#allocation43_spill]] }
0x4fcb   : > { %s12411_s26 = sld [smem:[#allocation45_spill]]  ;;  %s12412_s22 = smov %s10952_s23 }
0x4fd0   : > { %p89_p3 = scmp.ge.s32.totalorder %s12409_s28, 4   ;;  %s12413_s23 = smov %s12410_s5 }
0x4fd2   :  { %91 = sbr.rel (!%p89_p3) target bundleno = 84 (0x54), region = 292 }
0x4fd9   :  { %9244 = vsyncpa [#allocation3], 1 }
0x4fda   :  { %9246 = vsyncpa [#allocation3 + $0x1], 1 }

</bundles_post_ra>
